<compile_context>
chip_gen: v6e
topology: v6e:2x2x1
jax: 0.10.0
libtpu: 0.0.40
codegen_flags: <defaults>
</compile_context>

<pallas_src>
import functools

import numpy as np

import jax
import jax.numpy as jnp
from jax.experimental import pallas as pl
from jax.experimental.pallas import tpu as pltpu

LANES = 128
BN_EPS = 1e-5
F32 = jnp.float32
BF16 = jnp.bfloat16

GRID_W = 11            # compact width grid (= conv0 output width)
ROWS_PER_B = 8 * GRID_W  # 88 rows per sample on the (h<8, w<11) grid


def _pad8(n):
    return ((n + 7) // 8) * 8


# ---------------------------------------------------------------------------
# Parameter packing: tight (C_in-per-tap) bf16 weight slabs, folded scale/shift.
# ---------------------------------------------------------------------------
def _pack_conv_w(w, cin_pad):
    """torch (C_out, C_in, kh, kw) -> (kh*kw*cin_pad, 128); per tap k = di*kw+dj the
    rows [k*cin_pad, k*cin_pad+C_in) hold w[:, :, di, dj].T (lanes = C_out)."""
    c_out, c_in, kh, kw = w.shape
    out = np.zeros((kh * kw * cin_pad, LANES), np.float32)
    for di in range(kh):
        for dj in range(kw):
            k = di * kw + dj
            out[k * cin_pad: k * cin_pad + c_in, :c_out] = w[:, :, di, dj].T
    return out


def _pack_w0(w):
    """conv0 (20,1,3,3) -> (24,128): row di*8+dj = w[:,0,di,dj] on 20 lanes."""
    out = np.zeros((24, LANES), np.float32)
    for di in range(3):
        for dj in range(3):
            out[di * 8 + dj, :20] = w[:, 0, di, dj]
    return out


def _fold_bn(bias, gamma, beta, rmean, rvar):
    """Inference BN folded with the conv bias: y = scale*conv + shift."""
    scale = gamma / np.sqrt(rvar + BN_EPS)
    shift = beta + scale * (bias - rmean)
    return scale, shift


# ---------------------------------------------------------------------------
# The single fused kernel.  Activation rows follow the width-11 grid
# r = (b*8 + h)*11 + w; channels sit on (zero-padded) lanes.
# ---------------------------------------------------------------------------
def _stft_fused_kernel(ph_ref, w0_ref, w1_ref, w2_ref, w3_ref,
                       wl2_ref, wl3_ref, ssq_ref, sb_ref, out_ref, *,
                       m0c, m1, mp, m2, m3, offs1, offs2, offs3, cps):
    f32 = jnp.float32
    bf16 = jnp.bfloat16
    sb = sb_ref[...]                                      # (16,128) f32 scale/shift rows

    def scale_shift(y, layer, relu):
        y = y * sb[2 * layer:2 * layer + 1, :] + sb[2 * layer + 1:2 * layer + 2, :]
        return jnp.maximum(y, 0.0) if relu else y

    # --- conv0: complex front-end placeholder (|z| -> Conv2d(1,20,(3,3),(1,3)) -> ReLU).
    # ph holds |z| in width-phase layout: ph[q, dj] = mag_flat[3*q + dj]; the tap
    # (di, dj) of output row rc is simply ph[rc + 11*di, dj] -> 9 broadcast FMAs (VPU).
    ph = ph_ref[...]                                      # (PH, 3) f32
    w0 = w0_ref[...].astype(f32)                          # (24, 128)
    acc0 = None
    for di in range(3):
        blk = ph[11 * di: 11 * di + m0c, :]               # (m0c, 3)
        for dj in range(3):
            term = blk[:, dj:dj + 1] * w0[8 * di + dj: 8 * di + dj + 1, :]
            acc0 = term if acc0 is None else acc0 + term
    h0 = scale_shift(acc0, 0, True)                       # (m0c,128), 20 ch valid

    def conv(a, w_ref, cin_p, offs, m_out, layer):
        # Stride-1 conv on the width-11 grid: each tap is a static row-offset slice
        # of `a`, lane-sliced to the packed C_in and fed to one small MXU dot.
        acc = None
        for k, off in enumerate(offs):
            lhs = a[off:off + m_out, 0:cin_p].astype(bf16)
            rhs = w_ref[k * cin_p:(k + 1) * cin_p, :]      # bf16
            t = jnp.dot(lhs, rhs, preferred_element_type=f32)
            acc = t if acc is None else acc + t
        return scale_shift(acc, layer, True)

    h1 = conv(h0, w1_ref, cps[0], offs1, m1, 1)            # 40 ch (conv_1 + bn_1 + relu)
    hp = jnp.maximum(h1[0:mp, :], h1[1:mp + 1, :])         # mp_1 = MaxPool2d((1,2))
    h2 = conv(hp, w2_ref, cps[1], offs2, m2, 2)            # 60 ch (conv_2 + bn_2 + relu)
    h3 = conv(h2, w3_ref, cps[2], offs3, m3, 3)            # 80 ch (conv_3 + bn_3 + relu)

    # squeeze(-1,-1): pick row (h=0, w=0) of every sample -> lane-dense (8,128) slab.
    hsq = jnp.dot(ssq_ref[...], h3, preferred_element_type=f32)

    # linear_2 + ReLU, then linear_3.
    # TODO(synk): nn.Dropout(0.5) treated as identity (inference mode).
    h4 = jnp.dot(hsq[:, 0:80].astype(bf16), wl2_ref[...], preferred_element_type=f32)
    h4 = scale_shift(h4, 4, True)
    h5 = jnp.dot(h4[:, 0:40].astype(bf16), wl3_ref[...], preferred_element_type=f32)
    out_ref[...] = scale_shift(h5, 5, False).astype(out_ref.dtype)   # (8,128) lane-dense


# ---------------------------------------------------------------------------
# Deterministic parameter construction (shapes from STFT.__init__), incl. the
# BatchNorm running statistics used for inference-mode folding.
# ---------------------------------------------------------------------------
def init_params(seed=42):
    key = jax.random.PRNGKey(seed)
    ks = jax.random.split(key, 22)

    def conv_w(k, c_out, c_in, kh, kw):
        std = (2.0 / (c_in * kh * kw)) ** 0.5
        return std * jax.random.normal(k, (c_out, c_in, kh, kw), jnp.float32)

    def lin_w(k, c_out, c_in):
        std = (2.0 / c_in) ** 0.5
        return std * jax.random.normal(k, (c_out, c_in), jnp.float32)

    p = {}
    # complex_conv1 placeholder: ComplexConv2Deffangle4Dxy(1, 20, (3,3), (1,3))
    p["w0"] = conv_w(ks[0], 20, 1, 3, 3)
    p["b0"] = 0.01 * jax.random.normal(ks[1], (20,), jnp.float32)

    def bn_block(k0, w_key, c_out, c_in, kh, kw):
        w = conv_w(ks[k0], c_out, c_in, kh, kw)
        b = 0.01 * jax.random.normal(ks[k0 + 1], (c_out,), jnp.float32)
        g = 1.0 + 0.1 * jax.random.normal(ks[k0 + 2], (c_out,), jnp.float32)
        be = 0.1 * jax.random.normal(ks[k0 + 3], (c_out,), jnp.float32)
        rm = 0.05 * jax.random.normal(ks[k0 + 4], (c_out,), jnp.float32)
        rv = 1.0 + 0.05 * jax.random.uniform(ks[k0 + 5], (c_out,), jnp.float32)
        return w, b, g, be, rm, rv

    (p["w1"], p["b1"], p["g1"], p["be1"], p["rm1"], p["rv1"]) = bn_block(2, None, 40, 20, 3, 3)
    (p["w2"], p["b2"], p["g2"], p["be2"], p["rm2"], p["rv2"]) = bn_block(8, None, 60, 40, 3, 3)
    (p["w3"], p["b3"], p["g3"], p["be3"], p["rm3"], p["rv3"]) = bn_block(14, None, 80, 60, 2, 2)

    p["wl2"] = lin_w(ks[20], 40, 80)
    p["bl2"] = jnp.zeros((40,), jnp.float32)
    p["wl3"] = lin_w(ks[21], 11, 40)
    p["bl3"] = jnp.zeros((11,), jnp.float32)
    # loss_weight (unused: labels None -> losses None -> res_loss = 0)
    p["loss_weight"] = jnp.asarray([0.5], jnp.float32)
    return p


# ---------------------------------------------------------------------------
# Build the fused pallas_call for a fixed batch size and return forward().
# ---------------------------------------------------------------------------
def build_stft(params, batch):
    B = batch

    # Tap row-offsets on the width-11 grid (conv_2/conv_3 inputs live at even w).
    offs1 = tuple(11 * di + dj for di in range(3) for dj in range(3))        # conv_1
    offs2 = tuple(11 * di + 2 * dj for di in range(3) for dj in range(3))    # conv_2
    offs3 = tuple(11 * di + 2 * dj for di in range(2) for dj in range(2))    # conv_3

    # Backward-propagated row budgets (each slab must cover its consumer's reads).
    m3 = _pad8(ROWS_PER_B * (B - 1) + 1)          # conv_3 output rows (valid at b*88)
    m2 = _pad8(m3 + max(offs3))
    mp = _pad8(m2 + max(offs2))
    m1 = _pad8(mp + 1)                            # +1 for the (1,2) pool
    m0c = _pad8(m1 + max(offs1))
    ph_rows = _pad8(max(m0c + 22, ROWS_PER_B * B))  # 22 = max conv0 row offset (11*di)

    npf = lambda a: np.asarray(a, np.float32)
    cps = (_pad8(20), _pad8(40), _pad8(60))       # packed C_in per conv layer

    w0p = _pack_w0(npf(params["w0"]))
    w1p = _pack_conv_w(npf(params["w1"]), cps[0])
    w2p = _pack_conv_w(npf(params["w2"]), cps[1])
    w3p = _pack_conv_w(npf(params["w3"]), cps[2])
    wl2p = np.zeros((80, LANES), np.float32)
    wl2p[:, :40] = npf(params["wl2"]).T
    wl3p = np.zeros((40, LANES), np.float32)
    wl3p[:, :11] = npf(params["wl3"]).T

    ssq = np.zeros((8, m3), np.float32)           # squeeze: row b <- conv_3 row b*88
    for b in range(B):
        ssq[b, ROWS_PER_B * b] = 1.0

    # Per-layer (scale, shift) rows; conv bias + inference BN pre-folded.
    sb = np.zeros((16, LANES), np.float32)
    sb[0, :20] = 1.0
    sb[1, :20] = npf(params["b0"])
    for layer, (tag, c) in enumerate((("1", 40), ("2", 60), ("3", 80)), start=1):
        sc, sh = _fold_bn(npf(params["b" + tag]), npf(params["g" + tag]),
                          npf(params["be" + tag]), npf(params["rm" + tag]),
                          npf(params["rv" + tag]))
        sb[2 * layer, :c] = sc
        sb[2 * layer + 1, :c] = sh
    sb[8, :40] = 1.0
    sb[9, :40] = npf(params["bl2"])
    sb[10, :11] = 1.0
    sb[11, :11] = npf(params["bl3"])

    # bf16 weights (halved DMA, f32 accumulation in every dot); tiny f32 ssq/sb.
    consts = [jnp.asarray(w0p, BF16), jnp.asarray(w1p, BF16), jnp.asarray(w2p, BF16),
              jnp.asarray(w3p, BF16), jnp.asarray(wl2p, BF16), jnp.asarray(wl3p, BF16),
              jnp.asarray(ssq, F32), jnp.asarray(sb, F32)]

    kernel = functools.partial(_stft_fused_kernel,
                               m0c=m0c, m1=m1, mp=mp, m2=m2, m3=m3,
                               offs1=offs1, offs2=offs2, offs3=offs3, cps=cps)

    in_shapes = [(ph_rows, 3)] + [tuple(np.asarray(c.shape)) for c in consts]

    def _mm(m, k, n):
        return 2 * m * k * n

    flops = (9 * 2 * m0c * LANES
             + 9 * _mm(m1, cps[0], LANES)
             + 9 * _mm(m2, cps[1], LANES)
             + 4 * _mm(m3, cps[2], LANES)
             + _mm(8, m3, LANES)
             + _mm(8, 80, LANES) + _mm(8, 40, LANES))
    const_bytes = sum(int(np.prod(c.shape)) * c.dtype.itemsize for c in consts)
    bytes_accessed = 4 * ph_rows * 3 + const_bytes + 4 * 8 * LANES
    cost = pl.CostEstimate(flops=int(flops), transcendentals=0,
                           bytes_accessed=int(bytes_accessed))

    fused = pl.pallas_call(
        kernel,
        out_shape=jax.ShapeDtypeStruct((8, LANES), F32),
        grid=(1,),
        in_specs=[pl.BlockSpec(s, lambda i: (0, 0)) for s in in_shapes],
        out_specs=pl.BlockSpec((8, LANES), lambda i: (0, 0)),
        compiler_params=pltpu.CompilerParams(dimension_semantics=("arbitrary",)),
        cost_estimate=cost,
    )

    def forward(x, labels=None):
        """x: (batch, 2, 8, 33) NCHW; dim 1 = (real, imag) of the complex input."""
        assert x.shape == (B, 2, 8, 33), x.shape
        # TODO(synk): complex.ComplexConv2Deffangle4Dxy / ReLU4Dsp / JS.SURE_pure4D
        # sources not provided; approximated as |z| -> real Conv2d(1,20,(3,3),(1,3))
        # -> ReLU, with SURE as identity (losses=None when labels is None).
        mag = jnp.sqrt(x[:, 0] ** 2 + x[:, 1] ** 2 + 1e-12)            # (B, 8, 33)
        # Width-phase layout: ph[q, dj] = mag_flat[3*q + dj], q = (b*8+h)*11 + j.
        ph = jnp.zeros((ph_rows, 3), F32).at[:ROWS_PER_B * B, :].set(
            mag.reshape(ROWS_PER_B * B, 3))

        logits_pad = fused(ph, *consts)                                 # (8, 128)
        logits = logits_pad[:B, :11]

        losses = None
        res_loss = jnp.float32(0.0)
        if losses is not None:
            res_loss = losses * params["loss_weight"][0] ** 2
        return logits, res_loss

    return forward


# ---------------------------------------------------------------------------
if __name__ == "__main__":
    params = init_params(seed=42)
    forward = build_stft(params, batch=2)

    key = jax.random.PRNGKey(0)
    # (B=2, [real,imag]=2, H=8, W=33): complex_conv1 (3,3)/(1,3) -> (2,20,6,11),
    # matching the SURE_pure4D size hint torch.Size([2, 20, 6, 11]).
    x = jax.random.normal(key, (2, 2, 8, 33), jnp.float32)

    fwd = jax.jit(forward)
    logits, res_loss = fwd(x)
    jax.block_until_ready((logits, res_loss))

    assert logits.shape == (2, 11), logits.shape
    assert bool(jnp.all(jnp.isfinite(logits)))
    print("KERNEL_OK")
</pallas_src>

<mosaic_0001>
module attributes {stable_mosaic.version = 11 : i64} {
  func.func @_stft_fused_kernel(%arg0: i32, %arg1: memref<200x3xf32, #tpu.memory_space<vmem>>, %arg2: memref<24x128xbf16, #tpu.memory_space<vmem>>, %arg3: memref<216x128xbf16, #tpu.memory_space<vmem>>, %arg4: memref<360x128xbf16, #tpu.memory_space<vmem>>, %arg5: memref<256x128xbf16, #tpu.memory_space<vmem>>, %arg6: memref<80x128xbf16, #tpu.memory_space<vmem>>, %arg7: memref<40x128xbf16, #tpu.memory_space<vmem>>, %arg8: memref<8x96xf32, #tpu.memory_space<vmem>>, %arg9: memref<16x128xf32, #tpu.memory_space<vmem>>, %arg10: memref<8x128xf32, #tpu.memory_space<vmem>>) attributes {dimension_semantics = [#tpu.dimension_semantics<arbitrary>], iteration_bounds = array<i64: 1>, scalar_prefetch = 0 : i64, scratch_operands = 0 : i64, tpu.core_type = #tpu.core_type<tc>, window_params = [{pipeline_mode = #tpu.pipeline_mode<synchronous>, transform_indices = @transform_0, window_bounds = array<i64: 200, 3>}, {pipeline_mode = #tpu.pipeline_mode<synchronous>, transform_indices = @transform_1, window_bounds = array<i64: 24, 128>}, {pipeline_mode = #tpu.pipeline_mode<synchronous>, transform_indices = @transform_2, window_bounds = array<i64: 216, 128>}, {pipeline_mode = #tpu.pipeline_mode<synchronous>, transform_indices = @transform_3, window_bounds = array<i64: 360, 128>}, {pipeline_mode = #tpu.pipeline_mode<synchronous>, transform_indices = @transform_4, window_bounds = array<i64: 256, 128>}, {pipeline_mode = #tpu.pipeline_mode<synchronous>, transform_indices = @transform_5, window_bounds = array<i64: 80, 128>}, {pipeline_mode = #tpu.pipeline_mode<synchronous>, transform_indices = @transform_6, window_bounds = array<i64: 40, 128>}, {pipeline_mode = #tpu.pipeline_mode<synchronous>, transform_indices = @transform_7, window_bounds = array<i64: 8, 96>}, {pipeline_mode = #tpu.pipeline_mode<synchronous>, transform_indices = @transform_8, window_bounds = array<i64: 16, 128>}, {pipeline_mode = #tpu.pipeline_mode<synchronous>, transform_indices = @transform_9, window_bounds = array<i64: 8, 128>}]} {
    %c0 = arith.constant 0 : index
    %c0_0 = arith.constant 0 : index
    %0 = vector.load %arg9[%c0, %c0_0] : memref<16x128xf32, #tpu.memory_space<vmem>>, vector<16x128xf32>
    %c0_1 = arith.constant 0 : index
    %c0_2 = arith.constant 0 : index
    %1 = vector.load %arg1[%c0_1, %c0_2] : memref<200x3xf32, #tpu.memory_space<vmem>>, vector<200x3xf32>
    %c0_3 = arith.constant 0 : index
    %c0_4 = arith.constant 0 : index
    %2 = vector.load %arg2[%c0_3, %c0_4] : memref<24x128xbf16, #tpu.memory_space<vmem>>, vector<24x128xbf16>
    %3 = arith.extf %2 : vector<24x128xbf16> to vector<24x128xf32>
    %4 = vector.extract_strided_slice %1 {offsets = [0, 0], sizes = [176, 3], strides = [1, 1]} : vector<200x3xf32> to vector<176x3xf32>
    %5 = vector.extract_strided_slice %4 {offsets = [0, 0], sizes = [176, 1], strides = [1, 1]} : vector<176x3xf32> to vector<176x1xf32>
    %6 = vector.extract_strided_slice %3 {offsets = [0, 0], sizes = [1, 128], strides = [1, 1]} : vector<24x128xf32> to vector<1x128xf32>
    %7 = vector.broadcast %5 : vector<176x1xf32> to vector<176x128xf32>
    %8 = vector.broadcast %6 : vector<1x128xf32> to vector<176x128xf32>
    %9 = arith.mulf %7, %8 : vector<176x128xf32>
    %10 = vector.extract_strided_slice %4 {offsets = [0, 1], sizes = [176, 1], strides = [1, 1]} : vector<176x3xf32> to vector<176x1xf32>
    %11 = vector.extract_strided_slice %3 {offsets = [1, 0], sizes = [1, 128], strides = [1, 1]} : vector<24x128xf32> to vector<1x128xf32>
    %12 = vector.broadcast %10 : vector<176x1xf32> to vector<176x128xf32>
    %13 = vector.broadcast %11 : vector<1x128xf32> to vector<176x128xf32>
    %14 = arith.mulf %12, %13 : vector<176x128xf32>
    %15 = arith.addf %9, %14 : vector<176x128xf32>
    %16 = vector.extract_strided_slice %4 {offsets = [0, 2], sizes = [176, 1], strides = [1, 1]} : vector<176x3xf32> to vector<176x1xf32>
    %17 = vector.extract_strided_slice %3 {offsets = [2, 0], sizes = [1, 128], strides = [1, 1]} : vector<24x128xf32> to vector<1x128xf32>
    %18 = vector.broadcast %16 : vector<176x1xf32> to vector<176x128xf32>
    %19 = vector.broadcast %17 : vector<1x128xf32> to vector<176x128xf32>
    %20 = arith.mulf %18, %19 : vector<176x128xf32>
    %21 = arith.addf %15, %20 : vector<176x128xf32>
    %22 = vector.extract_strided_slice %1 {offsets = [11, 0], sizes = [176, 3], strides = [1, 1]} : vector<200x3xf32> to vector<176x3xf32>
    %23 = vector.extract_strided_slice %22 {offsets = [0, 0], sizes = [176, 1], strides = [1, 1]} : vector<176x3xf32> to vector<176x1xf32>
    %24 = vector.extract_strided_slice %3 {offsets = [8, 0], sizes = [1, 128], strides = [1, 1]} : vector<24x128xf32> to vector<1x128xf32>
    %25 = vector.broadcast %23 : vector<176x1xf32> to vector<176x128xf32>
    %26 = vector.broadcast %24 : vector<1x128xf32> to vector<176x128xf32>
    %27 = arith.mulf %25, %26 : vector<176x128xf32>
    %28 = arith.addf %21, %27 : vector<176x128xf32>
    %29 = vector.extract_strided_slice %22 {offsets = [0, 1], sizes = [176, 1], strides = [1, 1]} : vector<176x3xf32> to vector<176x1xf32>
    %30 = vector.extract_strided_slice %3 {offsets = [9, 0], sizes = [1, 128], strides = [1, 1]} : vector<24x128xf32> to vector<1x128xf32>
    %31 = vector.broadcast %29 : vector<176x1xf32> to vector<176x128xf32>
    %32 = vector.broadcast %30 : vector<1x128xf32> to vector<176x128xf32>
    %33 = arith.mulf %31, %32 : vector<176x128xf32>
    %34 = arith.addf %28, %33 : vector<176x128xf32>
    %35 = vector.extract_strided_slice %22 {offsets = [0, 2], sizes = [176, 1], strides = [1, 1]} : vector<176x3xf32> to vector<176x1xf32>
    %36 = vector.extract_strided_slice %3 {offsets = [10, 0], sizes = [1, 128], strides = [1, 1]} : vector<24x128xf32> to vector<1x128xf32>
    %37 = vector.broadcast %35 : vector<176x1xf32> to vector<176x128xf32>
    %38 = vector.broadcast %36 : vector<1x128xf32> to vector<176x128xf32>
    %39 = arith.mulf %37, %38 : vector<176x128xf32>
    %40 = arith.addf %34, %39 : vector<176x128xf32>
    %41 = vector.extract_strided_slice %1 {offsets = [22, 0], sizes = [176, 3], strides = [1, 1]} : vector<200x3xf32> to vector<176x3xf32>
    %42 = vector.extract_strided_slice %41 {offsets = [0, 0], sizes = [176, 1], strides = [1, 1]} : vector<176x3xf32> to vector<176x1xf32>
    %43 = vector.extract_strided_slice %3 {offsets = [16, 0], sizes = [1, 128], strides = [1, 1]} : vector<24x128xf32> to vector<1x128xf32>
    %44 = vector.broadcast %42 : vector<176x1xf32> to vector<176x128xf32>
    %45 = vector.broadcast %43 : vector<1x128xf32> to vector<176x128xf32>
    %46 = arith.mulf %44, %45 : vector<176x128xf32>
    %47 = arith.addf %40, %46 : vector<176x128xf32>
    %48 = vector.extract_strided_slice %41 {offsets = [0, 1], sizes = [176, 1], strides = [1, 1]} : vector<176x3xf32> to vector<176x1xf32>
    %49 = vector.extract_strided_slice %3 {offsets = [17, 0], sizes = [1, 128], strides = [1, 1]} : vector<24x128xf32> to vector<1x128xf32>
    %50 = vector.broadcast %48 : vector<176x1xf32> to vector<176x128xf32>
    %51 = vector.broadcast %49 : vector<1x128xf32> to vector<176x128xf32>
    %52 = arith.mulf %50, %51 : vector<176x128xf32>
    %53 = arith.addf %47, %52 : vector<176x128xf32>
    %54 = vector.extract_strided_slice %41 {offsets = [0, 2], sizes = [176, 1], strides = [1, 1]} : vector<176x3xf32> to vector<176x1xf32>
    %55 = vector.extract_strided_slice %3 {offsets = [18, 0], sizes = [1, 128], strides = [1, 1]} : vector<24x128xf32> to vector<1x128xf32>
    %56 = vector.broadcast %54 : vector<176x1xf32> to vector<176x128xf32>
    %57 = vector.broadcast %55 : vector<1x128xf32> to vector<176x128xf32>
    %58 = arith.mulf %56, %57 : vector<176x128xf32>
    %59 = arith.addf %53, %58 : vector<176x128xf32>
    %60 = vector.extract_strided_slice %0 {offsets = [0, 0], sizes = [1, 128], strides = [1, 1]} : vector<16x128xf32> to vector<1x128xf32>
    %61 = vector.broadcast %60 : vector<1x128xf32> to vector<176x128xf32>
    %62 = arith.mulf %59, %61 : vector<176x128xf32>
    %63 = vector.extract_strided_slice %0 {offsets = [1, 0], sizes = [1, 128], strides = [1, 1]} : vector<16x128xf32> to vector<1x128xf32>
    %64 = vector.broadcast %63 : vector<1x128xf32> to vector<176x128xf32>
    %65 = arith.addf %62, %64 : vector<176x128xf32>
    %cst = arith.constant 0.000000e+00 : f32
    %66 = vector.broadcast %cst : f32 to vector<176x128xf32>
    %67 = arith.maximumf %65, %66 : vector<176x128xf32>
    %68 = vector.extract_strided_slice %67 {offsets = [0, 0], sizes = [152, 24], strides = [1, 1]} : vector<176x128xf32> to vector<152x24xf32>
    %69 = arith.truncf %68 : vector<152x24xf32> to vector<152x24xbf16>
    %c0_5 = arith.constant 0 : index
    %c0_6 = arith.constant 0 : index
    %70 = vector.load %arg3[%c0_5, %c0_6] : memref<216x128xbf16, #tpu.memory_space<vmem>>, vector<24x128xbf16>
    %cst_7 = arith.constant dense<0.000000e+00> : vector<152x128xf32>
    %71 = tpu.matmul %69, %70, %cst_7 {dimension_numbers = #tpu.dot_dimension_numbers<[1], [0], [0], [1], [0, 0, 1, 1], [], []>} : vector<152x24xbf16>, vector<24x128xbf16>, vector<152x128xf32> -> vector<152x128xf32>
    %72 = vector.extract_strided_slice %67 {offsets = [1, 0], sizes = [152, 24], strides = [1, 1]} : vector<176x128xf32> to vector<152x24xf32>
    %73 = arith.truncf %72 : vector<152x24xf32> to vector<152x24xbf16>
    %c24 = arith.constant 24 : index
    %c0_8 = arith.constant 0 : index
    %74 = vector.load %arg3[%c24, %c0_8] : memref<216x128xbf16, #tpu.memory_space<vmem>>, vector<24x128xbf16>
    %cst_9 = arith.constant dense<0.000000e+00> : vector<152x128xf32>
    %75 = tpu.matmul %73, %74, %cst_9 {dimension_numbers = #tpu.dot_dimension_numbers<[1], [0], [0], [1], [0, 0, 1, 1], [], []>} : vector<152x24xbf16>, vector<24x128xbf16>, vector<152x128xf32> -> vector<152x128xf32>
    %76 = arith.addf %71, %75 : vector<152x128xf32>
    %77 = vector.extract_strided_slice %67 {offsets = [2, 0], sizes = [152, 24], strides = [1, 1]} : vector<176x128xf32> to vector<152x24xf32>
    %78 = arith.truncf %77 : vector<152x24xf32> to vector<152x24xbf16>
    %c48 = arith.constant 48 : index
    %c0_10 = arith.constant 0 : index
    %79 = vector.load %arg3[%c48, %c0_10] : memref<216x128xbf16, #tpu.memory_space<vmem>>, vector<24x128xbf16>
    %cst_11 = arith.constant dense<0.000000e+00> : vector<152x128xf32>
    %80 = tpu.matmul %78, %79, %cst_11 {dimension_numbers = #tpu.dot_dimension_numbers<[1], [0], [0], [1], [0, 0, 1, 1], [], []>} : vector<152x24xbf16>, vector<24x128xbf16>, vector<152x128xf32> -> vector<152x128xf32>
    %81 = arith.addf %76, %80 : vector<152x128xf32>
    %82 = vector.extract_strided_slice %67 {offsets = [11, 0], sizes = [152, 24], strides = [1, 1]} : vector<176x128xf32> to vector<152x24xf32>
    %83 = arith.truncf %82 : vector<152x24xf32> to vector<152x24xbf16>
    %c72 = arith.constant 72 : index
    %c0_12 = arith.constant 0 : index
    %84 = vector.load %arg3[%c72, %c0_12] : memref<216x128xbf16, #tpu.memory_space<vmem>>, vector<24x128xbf16>
    %cst_13 = arith.constant dense<0.000000e+00> : vector<152x128xf32>
    %85 = tpu.matmul %83, %84, %cst_13 {dimension_numbers = #tpu.dot_dimension_numbers<[1], [0], [0], [1], [0, 0, 1, 1], [], []>} : vector<152x24xbf16>, vector<24x128xbf16>, vector<152x128xf32> -> vector<152x128xf32>
    %86 = arith.addf %81, %85 : vector<152x128xf32>
    %87 = vector.extract_strided_slice %67 {offsets = [12, 0], sizes = [152, 24], strides = [1, 1]} : vector<176x128xf32> to vector<152x24xf32>
    %88 = arith.truncf %87 : vector<152x24xf32> to vector<152x24xbf16>
    %c96 = arith.constant 96 : index
    %c0_14 = arith.constant 0 : index
    %89 = vector.load %arg3[%c96, %c0_14] : memref<216x128xbf16, #tpu.memory_space<vmem>>, vector<24x128xbf16>
    %cst_15 = arith.constant dense<0.000000e+00> : vector<152x128xf32>
    %90 = tpu.matmul %88, %89, %cst_15 {dimension_numbers = #tpu.dot_dimension_numbers<[1], [0], [0], [1], [0, 0, 1, 1], [], []>} : vector<152x24xbf16>, vector<24x128xbf16>, vector<152x128xf32> -> vector<152x128xf32>
    %91 = arith.addf %86, %90 : vector<152x128xf32>
    %92 = vector.extract_strided_slice %67 {offsets = [13, 0], sizes = [152, 24], strides = [1, 1]} : vector<176x128xf32> to vector<152x24xf32>
    %93 = arith.truncf %92 : vector<152x24xf32> to vector<152x24xbf16>
    %c120 = arith.constant 120 : index
    %c0_16 = arith.constant 0 : index
    %94 = vector.load %arg3[%c120, %c0_16] : memref<216x128xbf16, #tpu.memory_space<vmem>>, vector<24x128xbf16>
    %cst_17 = arith.constant dense<0.000000e+00> : vector<152x128xf32>
    %95 = tpu.matmul %93, %94, %cst_17 {dimension_numbers = #tpu.dot_dimension_numbers<[1], [0], [0], [1], [0, 0, 1, 1], [], []>} : vector<152x24xbf16>, vector<24x128xbf16>, vector<152x128xf32> -> vector<152x128xf32>
    %96 = arith.addf %91, %95 : vector<152x128xf32>
    %97 = vector.extract_strided_slice %67 {offsets = [22, 0], sizes = [152, 24], strides = [1, 1]} : vector<176x128xf32> to vector<152x24xf32>
    %98 = arith.truncf %97 : vector<152x24xf32> to vector<152x24xbf16>
    %c144 = arith.constant 144 : index
    %c0_18 = arith.constant 0 : index
    %99 = vector.load %arg3[%c144, %c0_18] : memref<216x128xbf16, #tpu.memory_space<vmem>>, vector<24x128xbf16>
    %cst_19 = arith.constant dense<0.000000e+00> : vector<152x128xf32>
    %100 = tpu.matmul %98, %99, %cst_19 {dimension_numbers = #tpu.dot_dimension_numbers<[1], [0], [0], [1], [0, 0, 1, 1], [], []>} : vector<152x24xbf16>, vector<24x128xbf16>, vector<152x128xf32> -> vector<152x128xf32>
    %101 = arith.addf %96, %100 : vector<152x128xf32>
    %102 = vector.extract_strided_slice %67 {offsets = [23, 0], sizes = [152, 24], strides = [1, 1]} : vector<176x128xf32> to vector<152x24xf32>
    %103 = arith.truncf %102 : vector<152x24xf32> to vector<152x24xbf16>
    %c168 = arith.constant 168 : index
    %c0_20 = arith.constant 0 : index
    %104 = vector.load %arg3[%c168, %c0_20] : memref<216x128xbf16, #tpu.memory_space<vmem>>, vector<24x128xbf16>
    %cst_21 = arith.constant dense<0.000000e+00> : vector<152x128xf32>
    %105 = tpu.matmul %103, %104, %cst_21 {dimension_numbers = #tpu.dot_dimension_numbers<[1], [0], [0], [1], [0, 0, 1, 1], [], []>} : vector<152x24xbf16>, vector<24x128xbf16>, vector<152x128xf32> -> vector<152x128xf32>
    %106 = arith.addf %101, %105 : vector<152x128xf32>
    %107 = vector.extract_strided_slice %67 {offsets = [24, 0], sizes = [152, 24], strides = [1, 1]} : vector<176x128xf32> to vector<152x24xf32>
    %108 = arith.truncf %107 : vector<152x24xf32> to vector<152x24xbf16>
    %c192 = arith.constant 192 : index
    %c0_22 = arith.constant 0 : index
    %109 = vector.load %arg3[%c192, %c0_22] : memref<216x128xbf16, #tpu.memory_space<vmem>>, vector<24x128xbf16>
    %cst_23 = arith.constant dense<0.000000e+00> : vector<152x128xf32>
    %110 = tpu.matmul %108, %109, %cst_23 {dimension_numbers = #tpu.dot_dimension_numbers<[1], [0], [0], [1], [0, 0, 1, 1], [], []>} : vector<152x24xbf16>, vector<24x128xbf16>, vector<152x128xf32> -> vector<152x128xf32>
    %111 = arith.addf %106, %110 : vector<152x128xf32>
    %112 = vector.extract_strided_slice %0 {offsets = [2, 0], sizes = [1, 128], strides = [1, 1]} : vector<16x128xf32> to vector<1x128xf32>
    %113 = vector.broadcast %112 : vector<1x128xf32> to vector<152x128xf32>
    %114 = arith.mulf %111, %113 : vector<152x128xf32>
    %115 = vector.extract_strided_slice %0 {offsets = [3, 0], sizes = [1, 128], strides = [1, 1]} : vector<16x128xf32> to vector<1x128xf32>
    %116 = vector.broadcast %115 : vector<1x128xf32> to vector<152x128xf32>
    %117 = arith.addf %114, %116 : vector<152x128xf32>
    %cst_24 = arith.constant 0.000000e+00 : f32
    %118 = vector.broadcast %cst_24 : f32 to vector<152x128xf32>
    %119 = arith.maximumf %117, %118 : vector<152x128xf32>
    %120 = vector.extract_strided_slice %119 {offsets = [0, 0], sizes = [144, 128], strides = [1, 1]} : vector<152x128xf32> to vector<144x128xf32>
    %121 = vector.extract_strided_slice %119 {offsets = [1, 0], sizes = [144, 128], strides = [1, 1]} : vector<152x128xf32> to vector<144x128xf32>
    %122 = arith.maximumf %120, %121 : vector<144x128xf32>
    %123 = vector.extract_strided_slice %122 {offsets = [0, 0], sizes = [112, 40], strides = [1, 1]} : vector<144x128xf32> to vector<112x40xf32>
    %124 = arith.truncf %123 : vector<112x40xf32> to vector<112x40xbf16>
    %c0_25 = arith.constant 0 : index
    %c0_26 = arith.constant 0 : index
    %125 = vector.load %arg4[%c0_25, %c0_26] : memref<360x128xbf16, #tpu.memory_space<vmem>>, vector<40x128xbf16>
    %cst_27 = arith.constant dense<0.000000e+00> : vector<112x128xf32>
    %126 = tpu.matmul %124, %125, %cst_27 {dimension_numbers = #tpu.dot_dimension_numbers<[1], [0], [0], [1], [0, 0, 1, 1], [], []>} : vector<112x40xbf16>, vector<40x128xbf16>, vector<112x128xf32> -> vector<112x128xf32>
    %127 = vector.extract_strided_slice %122 {offsets = [2, 0], sizes = [112, 40], strides = [1, 1]} : vector<144x128xf32> to vector<112x40xf32>
    %128 = arith.truncf %127 : vector<112x40xf32> to vector<112x40xbf16>
    %c40 = arith.constant 40 : index
    %c0_28 = arith.constant 0 : index
    %129 = vector.load %arg4[%c40, %c0_28] : memref<360x128xbf16, #tpu.memory_space<vmem>>, vector<40x128xbf16>
    %cst_29 = arith.constant dense<0.000000e+00> : vector<112x128xf32>
    %130 = tpu.matmul %128, %129, %cst_29 {dimension_numbers = #tpu.dot_dimension_numbers<[1], [0], [0], [1], [0, 0, 1, 1], [], []>} : vector<112x40xbf16>, vector<40x128xbf16>, vector<112x128xf32> -> vector<112x128xf32>
    %131 = arith.addf %126, %130 : vector<112x128xf32>
    %132 = vector.extract_strided_slice %122 {offsets = [4, 0], sizes = [112, 40], strides = [1, 1]} : vector<144x128xf32> to vector<112x40xf32>
    %133 = arith.truncf %132 : vector<112x40xf32> to vector<112x40xbf16>
    %c80 = arith.constant 80 : index
    %c0_30 = arith.constant 0 : index
    %134 = vector.load %arg4[%c80, %c0_30] : memref<360x128xbf16, #tpu.memory_space<vmem>>, vector<40x128xbf16>
    %cst_31 = arith.constant dense<0.000000e+00> : vector<112x128xf32>
    %135 = tpu.matmul %133, %134, %cst_31 {dimension_numbers = #tpu.dot_dimension_numbers<[1], [0], [0], [1], [0, 0, 1, 1], [], []>} : vector<112x40xbf16>, vector<40x128xbf16>, vector<112x128xf32> -> vector<112x128xf32>
    %136 = arith.addf %131, %135 : vector<112x128xf32>
    %137 = vector.extract_strided_slice %122 {offsets = [11, 0], sizes = [112, 40], strides = [1, 1]} : vector<144x128xf32> to vector<112x40xf32>
    %138 = arith.truncf %137 : vector<112x40xf32> to vector<112x40xbf16>
    %c120_32 = arith.constant 120 : index
    %c0_33 = arith.constant 0 : index
    %139 = vector.load %arg4[%c120_32, %c0_33] : memref<360x128xbf16, #tpu.memory_space<vmem>>, vector<40x128xbf16>
    %cst_34 = arith.constant dense<0.000000e+00> : vector<112x128xf32>
    %140 = tpu.matmul %138, %139, %cst_34 {dimension_numbers = #tpu.dot_dimension_numbers<[1], [0], [0], [1], [0, 0, 1, 1], [], []>} : vector<112x40xbf16>, vector<40x128xbf16>, vector<112x128xf32> -> vector<112x128xf32>
    %141 = arith.addf %136, %140 : vector<112x128xf32>
    %142 = vector.extract_strided_slice %122 {offsets = [13, 0], sizes = [112, 40], strides = [1, 1]} : vector<144x128xf32> to vector<112x40xf32>
    %143 = arith.truncf %142 : vector<112x40xf32> to vector<112x40xbf16>
    %c160 = arith.constant 160 : index
    %c0_35 = arith.constant 0 : index
    %144 = vector.load %arg4[%c160, %c0_35] : memref<360x128xbf16, #tpu.memory_space<vmem>>, vector<40x128xbf16>
    %cst_36 = arith.constant dense<0.000000e+00> : vector<112x128xf32>
    %145 = tpu.matmul %143, %144, %cst_36 {dimension_numbers = #tpu.dot_dimension_numbers<[1], [0], [0], [1], [0, 0, 1, 1], [], []>} : vector<112x40xbf16>, vector<40x128xbf16>, vector<112x128xf32> -> vector<112x128xf32>
    %146 = arith.addf %141, %145 : vector<112x128xf32>
    %147 = vector.extract_strided_slice %122 {offsets = [15, 0], sizes = [112, 40], strides = [1, 1]} : vector<144x128xf32> to vector<112x40xf32>
    %148 = arith.truncf %147 : vector<112x40xf32> to vector<112x40xbf16>
    %c200 = arith.constant 200 : index
    %c0_37 = arith.constant 0 : index
    %149 = vector.load %arg4[%c200, %c0_37] : memref<360x128xbf16, #tpu.memory_space<vmem>>, vector<40x128xbf16>
    %cst_38 = arith.constant dense<0.000000e+00> : vector<112x128xf32>
    %150 = tpu.matmul %148, %149, %cst_38 {dimension_numbers = #tpu.dot_dimension_numbers<[1], [0], [0], [1], [0, 0, 1, 1], [], []>} : vector<112x40xbf16>, vector<40x128xbf16>, vector<112x128xf32> -> vector<112x128xf32>
    %151 = arith.addf %146, %150 : vector<112x128xf32>
    %152 = vector.extract_strided_slice %122 {offsets = [22, 0], sizes = [112, 40], strides = [1, 1]} : vector<144x128xf32> to vector<112x40xf32>
    %153 = arith.truncf %152 : vector<112x40xf32> to vector<112x40xbf16>
    %c240 = arith.constant 240 : index
    %c0_39 = arith.constant 0 : index
    %154 = vector.load %arg4[%c240, %c0_39] : memref<360x128xbf16, #tpu.memory_space<vmem>>, vector<40x128xbf16>
    %cst_40 = arith.constant dense<0.000000e+00> : vector<112x128xf32>
    %155 = tpu.matmul %153, %154, %cst_40 {dimension_numbers = #tpu.dot_dimension_numbers<[1], [0], [0], [1], [0, 0, 1, 1], [], []>} : vector<112x40xbf16>, vector<40x128xbf16>, vector<112x128xf32> -> vector<112x128xf32>
    %156 = arith.addf %151, %155 : vector<112x128xf32>
    %157 = vector.extract_strided_slice %122 {offsets = [24, 0], sizes = [112, 40], strides = [1, 1]} : vector<144x128xf32> to vector<112x40xf32>
    %158 = arith.truncf %157 : vector<112x40xf32> to vector<112x40xbf16>
    %c280 = arith.constant 280 : index
    %c0_41 = arith.constant 0 : index
    %159 = vector.load %arg4[%c280, %c0_41] : memref<360x128xbf16, #tpu.memory_space<vmem>>, vector<40x128xbf16>
    %cst_42 = arith.constant dense<0.000000e+00> : vector<112x128xf32>
    %160 = tpu.matmul %158, %159, %cst_42 {dimension_numbers = #tpu.dot_dimension_numbers<[1], [0], [0], [1], [0, 0, 1, 1], [], []>} : vector<112x40xbf16>, vector<40x128xbf16>, vector<112x128xf32> -> vector<112x128xf32>
    %161 = arith.addf %156, %160 : vector<112x128xf32>
    %162 = vector.extract_strided_slice %122 {offsets = [26, 0], sizes = [112, 40], strides = [1, 1]} : vector<144x128xf32> to vector<112x40xf32>
    %163 = arith.truncf %162 : vector<112x40xf32> to vector<112x40xbf16>
    %c320 = arith.constant 320 : index
    %c0_43 = arith.constant 0 : index
    %164 = vector.load %arg4[%c320, %c0_43] : memref<360x128xbf16, #tpu.memory_space<vmem>>, vector<40x128xbf16>
    %cst_44 = arith.constant dense<0.000000e+00> : vector<112x128xf32>
    %165 = tpu.matmul %163, %164, %cst_44 {dimension_numbers = #tpu.dot_dimension_numbers<[1], [0], [0], [1], [0, 0, 1, 1], [], []>} : vector<112x40xbf16>, vector<40x128xbf16>, vector<112x128xf32> -> vector<112x128xf32>
    %166 = arith.addf %161, %165 : vector<112x128xf32>
    %167 = vector.extract_strided_slice %0 {offsets = [4, 0], sizes = [1, 128], strides = [1, 1]} : vector<16x128xf32> to vector<1x128xf32>
    %168 = vector.broadcast %167 : vector<1x128xf32> to vector<112x128xf32>
    %169 = arith.mulf %166, %168 : vector<112x128xf32>
    %170 = vector.extract_strided_slice %0 {offsets = [5, 0], sizes = [1, 128], strides = [1, 1]} : vector<16x128xf32> to vector<1x128xf32>
    %171 = vector.broadcast %170 : vector<1x128xf32> to vector<112x128xf32>
    %172 = arith.addf %169, %171 : vector<112x128xf32>
    %cst_45 = arith.constant 0.000000e+00 : f32
    %173 = vector.broadcast %cst_45 : f32 to vector<112x128xf32>
    %174 = arith.maximumf %172, %173 : vector<112x128xf32>
    %175 = vector.extract_strided_slice %174 {offsets = [0, 0], sizes = [96, 64], strides = [1, 1]} : vector<112x128xf32> to vector<96x64xf32>
    %176 = arith.truncf %175 : vector<96x64xf32> to vector<96x64xbf16>
    %c0_46 = arith.constant 0 : index
    %c0_47 = arith.constant 0 : index
    %177 = vector.load %arg5[%c0_46, %c0_47] : memref<256x128xbf16, #tpu.memory_space<vmem>>, vector<64x128xbf16>
    %cst_48 = arith.constant dense<0.000000e+00> : vector<96x128xf32>
    %178 = tpu.matmul %176, %177, %cst_48 {dimension_numbers = #tpu.dot_dimension_numbers<[1], [0], [0], [1], [0, 0, 1, 1], [], []>} : vector<96x64xbf16>, vector<64x128xbf16>, vector<96x128xf32> -> vector<96x128xf32>
    %179 = vector.extract_strided_slice %174 {offsets = [2, 0], sizes = [96, 64], strides = [1, 1]} : vector<112x128xf32> to vector<96x64xf32>
    %180 = arith.truncf %179 : vector<96x64xf32> to vector<96x64xbf16>
    %c64 = arith.constant 64 : index
    %c0_49 = arith.constant 0 : index
    %181 = vector.load %arg5[%c64, %c0_49] : memref<256x128xbf16, #tpu.memory_space<vmem>>, vector<64x128xbf16>
    %cst_50 = arith.constant dense<0.000000e+00> : vector<96x128xf32>
    %182 = tpu.matmul %180, %181, %cst_50 {dimension_numbers = #tpu.dot_dimension_numbers<[1], [0], [0], [1], [0, 0, 1, 1], [], []>} : vector<96x64xbf16>, vector<64x128xbf16>, vector<96x128xf32> -> vector<96x128xf32>
    %183 = arith.addf %178, %182 : vector<96x128xf32>
    %184 = vector.extract_strided_slice %174 {offsets = [11, 0], sizes = [96, 64], strides = [1, 1]} : vector<112x128xf32> to vector<96x64xf32>
    %185 = arith.truncf %184 : vector<96x64xf32> to vector<96x64xbf16>
    %c128 = arith.constant 128 : index
    %c0_51 = arith.constant 0 : index
    %186 = vector.load %arg5[%c128, %c0_51] : memref<256x128xbf16, #tpu.memory_space<vmem>>, vector<64x128xbf16>
    %cst_52 = arith.constant dense<0.000000e+00> : vector<96x128xf32>
    %187 = tpu.matmul %185, %186, %cst_52 {dimension_numbers = #tpu.dot_dimension_numbers<[1], [0], [0], [1], [0, 0, 1, 1], [], []>} : vector<96x64xbf16>, vector<64x128xbf16>, vector<96x128xf32> -> vector<96x128xf32>
    %188 = arith.addf %183, %187 : vector<96x128xf32>
    %189 = vector.extract_strided_slice %174 {offsets = [13, 0], sizes = [96, 64], strides = [1, 1]} : vector<112x128xf32> to vector<96x64xf32>
    %190 = arith.truncf %189 : vector<96x64xf32> to vector<96x64xbf16>
    %c192_53 = arith.constant 192 : index
    %c0_54 = arith.constant 0 : index
    %191 = vector.load %arg5[%c192_53, %c0_54] : memref<256x128xbf16, #tpu.memory_space<vmem>>, vector<64x128xbf16>
    %cst_55 = arith.constant dense<0.000000e+00> : vector<96x128xf32>
    %192 = tpu.matmul %190, %191, %cst_55 {dimension_numbers = #tpu.dot_dimension_numbers<[1], [0], [0], [1], [0, 0, 1, 1], [], []>} : vector<96x64xbf16>, vector<64x128xbf16>, vector<96x128xf32> -> vector<96x128xf32>
    %193 = arith.addf %188, %192 : vector<96x128xf32>
    %194 = vector.extract_strided_slice %0 {offsets = [6, 0], sizes = [1, 128], strides = [1, 1]} : vector<16x128xf32> to vector<1x128xf32>
    %195 = vector.broadcast %194 : vector<1x128xf32> to vector<96x128xf32>
    %196 = arith.mulf %193, %195 : vector<96x128xf32>
    %197 = vector.extract_strided_slice %0 {offsets = [7, 0], sizes = [1, 128], strides = [1, 1]} : vector<16x128xf32> to vector<1x128xf32>
    %198 = vector.broadcast %197 : vector<1x128xf32> to vector<96x128xf32>
    %199 = arith.addf %196, %198 : vector<96x128xf32>
    %cst_56 = arith.constant 0.000000e+00 : f32
    %200 = vector.broadcast %cst_56 : f32 to vector<96x128xf32>
    %201 = arith.maximumf %199, %200 : vector<96x128xf32>
    %c0_57 = arith.constant 0 : index
    %c0_58 = arith.constant 0 : index
    %202 = vector.load %arg8[%c0_57, %c0_58] : memref<8x96xf32, #tpu.memory_space<vmem>>, vector<8x96xf32>
    %cst_59 = arith.constant dense<0.000000e+00> : vector<8x128xf32>
    %203 = tpu.matmul %202, %201, %cst_59 {dimension_numbers = #tpu.dot_dimension_numbers<[1], [0], [0], [1], [0, 0, 1, 1], [], []>} : vector<8x96xf32>, vector<96x128xf32>, vector<8x128xf32> -> vector<8x128xf32>
    %204 = vector.extract_strided_slice %203 {offsets = [0, 0], sizes = [8, 80], strides = [1, 1]} : vector<8x128xf32> to vector<8x80xf32>
    %205 = arith.truncf %204 : vector<8x80xf32> to vector<8x80xbf16>
    %c0_60 = arith.constant 0 : index
    %c0_61 = arith.constant 0 : index
    %206 = vector.load %arg6[%c0_60, %c0_61] : memref<80x128xbf16, #tpu.memory_space<vmem>>, vector<80x128xbf16>
    %cst_62 = arith.constant dense<0.000000e+00> : vector<8x128xf32>
    %207 = tpu.matmul %205, %206, %cst_62 {dimension_numbers = #tpu.dot_dimension_numbers<[1], [0], [0], [1], [0, 0, 1, 1], [], []>} : vector<8x80xbf16>, vector<80x128xbf16>, vector<8x128xf32> -> vector<8x128xf32>
    %208 = vector.extract_strided_slice %0 {offsets = [8, 0], sizes = [1, 128], strides = [1, 1]} : vector<16x128xf32> to vector<1x128xf32>
    %209 = vector.broadcast %208 : vector<1x128xf32> to vector<8x128xf32>
    %210 = arith.mulf %207, %209 : vector<8x128xf32>
    %211 = vector.extract_strided_slice %0 {offsets = [9, 0], sizes = [1, 128], strides = [1, 1]} : vector<16x128xf32> to vector<1x128xf32>
    %212 = vector.broadcast %211 : vector<1x128xf32> to vector<8x128xf32>
    %213 = arith.addf %210, %212 : vector<8x128xf32>
    %cst_63 = arith.constant 0.000000e+00 : f32
    %214 = vector.broadcast %cst_63 : f32 to vector<8x128xf32>
    %215 = arith.maximumf %213, %214 : vector<8x128xf32>
    %216 = vector.extract_strided_slice %215 {offsets = [0, 0], sizes = [8, 40], strides = [1, 1]} : vector<8x128xf32> to vector<8x40xf32>
    %217 = arith.truncf %216 : vector<8x40xf32> to vector<8x40xbf16>
    %c0_64 = arith.constant 0 : index
    %c0_65 = arith.constant 0 : index
    %218 = vector.load %arg7[%c0_64, %c0_65] : memref<40x128xbf16, #tpu.memory_space<vmem>>, vector<40x128xbf16>
    %cst_66 = arith.constant dense<0.000000e+00> : vector<8x128xf32>
    %219 = tpu.matmul %217, %218, %cst_66 {dimension_numbers = #tpu.dot_dimension_numbers<[1], [0], [0], [1], [0, 0, 1, 1], [], []>} : vector<8x40xbf16>, vector<40x128xbf16>, vector<8x128xf32> -> vector<8x128xf32>
    %220 = vector.extract_strided_slice %0 {offsets = [10, 0], sizes = [1, 128], strides = [1, 1]} : vector<16x128xf32> to vector<1x128xf32>
    %221 = vector.broadcast %220 : vector<1x128xf32> to vector<8x128xf32>
    %222 = arith.mulf %219, %221 : vector<8x128xf32>
    %223 = vector.extract_strided_slice %0 {offsets = [11, 0], sizes = [1, 128], strides = [1, 1]} : vector<16x128xf32> to vector<1x128xf32>
    %224 = vector.broadcast %223 : vector<1x128xf32> to vector<8x128xf32>
    %225 = arith.addf %222, %224 : vector<8x128xf32>
    %c0_67 = arith.constant 0 : index
    %c0_68 = arith.constant 0 : index
    %226 = vector.load %arg10[%c0_67, %c0_68] : memref<8x128xf32, #tpu.memory_space<vmem>>, vector<8x128xf32>
    tpu.vector_store %arg10[%c0_67, %c0_68], %225 {strides = array<i32>} : memref<8x128xf32, #tpu.memory_space<vmem>>, vector<8x128xf32>,
    return
  }
  func.func @transform_0(%arg0: i32) -> (i32, i32) {
    %c0_i32 = arith.constant 0 : i32
    %c0_i32_0 = arith.constant 0 : i32
    %c0_i32_1 = arith.constant 0 : i32
    return %c0_i32, %c0_i32_0 : i32, i32
  }
  func.func @transform_1(%arg0: i32) -> (i32, i32) {
    %c0_i32 = arith.constant 0 : i32
    %c0_i32_0 = arith.constant 0 : i32
    %c0_i32_1 = arith.constant 0 : i32
    return %c0_i32, %c0_i32_0 : i32, i32
  }
  func.func @transform_2(%arg0: i32) -> (i32, i32) {
    %c0_i32 = arith.constant 0 : i32
    %c0_i32_0 = arith.constant 0 : i32
    %c0_i32_1 = arith.constant 0 : i32
    return %c0_i32, %c0_i32_0 : i32, i32
  }
  func.func @transform_3(%arg0: i32) -> (i32, i32) {
    %c0_i32 = arith.constant 0 : i32
    %c0_i32_0 = arith.constant 0 : i32
    %c0_i32_1 = arith.constant 0 : i32
    return %c0_i32, %c0_i32_0 : i32, i32
  }
  func.func @transform_4(%arg0: i32) -> (i32, i32) {
    %c0_i32 = arith.constant 0 : i32
    %c0_i32_0 = arith.constant 0 : i32
    %c0_i32_1 = arith.constant 0 : i32
    return %c0_i32, %c0_i32_0 : i32, i32
  }
  func.func @transform_5(%arg0: i32) -> (i32, i32) {
    %c0_i32 = arith.constant 0 : i32
    %c0_i32_0 = arith.constant 0 : i32
    %c0_i32_1 = arith.constant 0 : i32
    return %c0_i32, %c0_i32_0 : i32, i32
  }
  func.func @transform_6(%arg0: i32) -> (i32, i32) {
    %c0_i32 = arith.constant 0 : i32
    %c0_i32_0 = arith.constant 0 : i32
    %c0_i32_1 = arith.constant 0 : i32
    return %c0_i32, %c0_i32_0 : i32, i32
  }
  func.func @transform_7(%arg0: i32) -> (i32, i32) {
    %c0_i32 = arith.constant 0 : i32
    %c0_i32_0 = arith.constant 0 : i32
    %c0_i32_1 = arith.constant 0 : i32
    return %c0_i32, %c0_i32_0 : i32, i32
  }
  func.func @transform_8(%arg0: i32) -> (i32, i32) {
    %c0_i32 = arith.constant 0 : i32
    %c0_i32_0 = arith.constant 0 : i32
    %c0_i32_1 = arith.constant 0 : i32
    return %c0_i32, %c0_i32_0 : i32, i32
  }
  func.func @transform_9(%arg0: i32) -> (i32, i32) {
    %c0_i32 = arith.constant 0 : i32
    %c0_i32_0 = arith.constant 0 : i32
    %c0_i32_1 = arith.constant 0 : i32
    return %c0_i32, %c0_i32_0 : i32, i32
  }
}

</mosaic_0001>

<bundles_post_ra>
// kernel: forward.1
= control target key start
LH: loop header
LB: loop body
LE: loop exit
PB: predicated region body
PF: predicated region fallthrough
CT: control target
= control target key end

     0   :  { %v10718_v0 = vmov 1   ;;  %v10716_v1 = vmov 0   ;;  %v10728_v11 = vmov 2   ;;  %vm1560_vm0 = vcmask 1043456   ;;  %s10706_s0 = inlined_call_operand.vmem [shape: f32[200,3], index: 0, kind: input, shape index: {}]   ;;  %s10707_s2 = inlined_call_operand.vmem [shape: bf16[216,128], index: 2, kind: input, shape index: {}]   ;;  %s10708_s1 = inlined_call_operand.vmem [shape: bf16[24,128], index: 1, kind: input, shape index: {}]   ;;  %s10709_s8 = inlined_call_operand.vmem [shape: f32[16,128], index: 8, kind: input, shape index: {}]   ;;  %s10710_s3 = inlined_call_operand.vmem [shape: bf16[360,128], index: 3, kind: input, shape index: {}]   ;;  %s10711_s4 = inlined_call_operand.vmem [shape: bf16[256,128], index: 4, kind: input, shape index: {}]   ;;  %s10712_s5 = inlined_call_operand.vmem [shape: bf16[80,128], index: 5, kind: input, shape index: {}]   ;;  %s10713_s7 = inlined_call_operand.vmem [shape: f32[8,96], index: 7, kind: input, shape index: {}]   ;;  %s10714_s6 = inlined_call_operand.vmem [shape: bf16[40,128], index: 6, kind: input, shape index: {}]   ;;  %s10715_s9 = inlined_call_operand.vmem [shape: f32[8,128], index: 9, kind: output, shape index: {}]  }
   0x1   :  { %7192 = vset.pattern.permute.xlu1 %v10718_v0  ;;  %7191 = vset.pattern.permute.xlu0 %v10716_v1  ;;  %v35_v2 = vld [vmem:[%s10706_s0] sm:$0xff]  ;;  %v36_v3 = vld [vmem:[%s10706_s0 + $0x8] sm:$0xff]  ;;  %v37_v4 = vld [vmem:[%s10706_s0 + $0x10] sm:$0xff]  ;;  %v176_v37 = vlaneseq  ;;  %vm973_vm1 = vcmask 1041408   ;;  %vm534_vm2 = vcmask 1044480   ;;  %vm1529_vm3 = vcmask 195584  }
   0x2   :  { %203 = vperm.xlu1 %7192, %v35_v2   ;;  %68 = vperm.xlu0 %7191, %v35_v2   ;;  %v38_v5 = vld [vmem:[%s10706_s0 + $0x18] sm:$0xff]  ;;  %v40_v6 = vld [vmem:[%s10706_s0 + $0x28] sm:$0xff]  ;;  %v39_v8 = vld [vmem:[%s10706_s0 + $0x20] sm:$0xff]  ;;  %vm1440_vm4 = vsmask.f32 7424  ;;  %vm1834_vm6 = vcmask 1046528  }
   0x3   :  { %v7383_v7 = vld [vmem:[%s10706_s0 + $0x58] sm:$0xff]  ;;  %v41_v13 = vld [vmem:[%s10706_s0 + $0x30] sm:$0xff]  ;;  %v43_v14 = vld [vmem:[%s10706_s0 + $0x40] sm:$0xff]  ;;  %v7520_v40 = vshrl.u32 %v176_v37, 7  ;;  %vm2040_vm5 = vsmask.f32 6400 }
   0x4   :  { %v7392_v9 = vld [vmem:[%s10706_s0 + $0x78] sm:$0xff]  ;;  %v45_v15 = vld [vmem:[%s10706_s0 + $0x50] sm:$0xff]  ;;  %v44_v16 = vld [vmem:[%s10706_s0 + $0x48] sm:$0xff]  ;;  %vm2512_vm7 = vsmask.f32 5376  ;;  %vm2316_vm8 = vcmask 1045504  }
   0x5   :  { %v7399_v10 = vld [vmem:[%s10706_s0 + $0x98] sm:$0xff]  ;;  %v47_v17 = vld [vmem:[%s10706_s0 + $0x60] sm:$0xff]  ;;  %v7437_v18 = vld [vmem:[%s10706_s0 + $0x70] sm:$0xff]  ;;  %10815 = vst [vmem:[#allocation5_spill] sm:$0xff] %v7520_v40  ;;  %v7534_v46 = vsub.s32 0, %v7520_v40  ;;  %v7537_v47 = vsub.s32 1, %v7520_v40 }
   0x6   :  { %207 = vperm.xlu1 %7192, %v36_v3   ;;  %73 = vperm.xlu0 %7191, %v36_v3   ;;  %v42_v12 = vld [vmem:[%s10706_s0 + $0x38] sm:$0xff]  ;;  %v7235_v19 = vld [vmem:[%s10707_s2 + $0x8] ss:$0 sps:$4 sm:$0xff]   ;;  %v7446_v20 = vld [vmem:[%s10706_s0 + $0x80] sm:$0xff]  ;;  %v7564_v58 = vsub.s32 2, %v7520_v40  ;;  %vm7310_vm10 = vmmov 0  }
   0x7   :  { %7178 = vmatprep.subr.msk.bf16.mxu1 %vm1560_vm0, %v7235_v19  ;;  %v1707_v21 = vsel %vm1560_vm0, %v7235_v19, 0  ;;  %v7236_v22 = vld [vmem:[%s10707_s2] sm:$0xff]   ;;  %v7457_v23 = vld [vmem:[%s10706_s0 + $0x90] sm:$0xff]  ;;  %v7472_v25 = vld [vmem:[%s10706_s0 + $0xa8] sm:$0xff]  ;;  %10816 = vst [vmem:[#allocation6_spill] sm:$0xff] %v7534_v46  ;;  %vm3526_vm11 = vcmask 326656  }
   0x8   :  { %6549 = vmatpush3.bf16.msra.mxu1 %v1707_v21  ;;  %v7465_v24 = vld [vmem:[%s10706_s0 + $0xa0] sm:$0xff]  ;;  %v7480_v26 = vld [vmem:[%s10706_s0 + $0xb0] sm:$0xff]  ;;  %v7487_v27 = vld [vmem:[%s10706_s0 + $0xb8] sm:$0xff]  ;;  %10817 = vst [vmem:[#allocation7_spill] sm:$0xff] %v7537_v47  ;;  %vm2926_vm9 = vsmask.f32 4352 }
   0x9   :  { %6550 = vmatprep.subr.bf16.mxu1 %v7236_v22  ;;  %10812 = vst [vmem:[#allocation2_spill] sm:$0xff] %v7480_v26  ;;  %10813 = vst [vmem:[#allocation3_spill] sm:$0xff] %v7487_v27  ;;  %v7237_v28 = vld [vmem:[%s10707_s2 + $0x14] ss:$0 sps:$4 sm:$0xff]   ;;  %v48_v29 = vld [vmem:[%s10706_s0 + $0x68] sm:$0xff]  ;;  %vm5108_vm12 = vcmask 523264  }
   0xa   :  { %7193 = vset.pattern.permute.xlu1 %v10716_v1  ;;  %78 = vperm.xlu0 %7191, %v37_v4   ;;  %v1562_v30 = vsel %vm1560_vm0, %v7237_v28, 0  ;;  %v7503_v31 = vld [vmem:[%s10706_s0 + $0xc0] sm:$0xff]  ;;  %v7238_v32 = vld [vmem:[%s10707_s2 + $0xc] sm:$0xff]   ;;  %v62_v43 = vld [vmem:[%s10708_s1 + $0x8] sm:$0xf]  ;;  %10820 = vst [vmem:[#allocation10_spill] sm:$0xff] %v7564_v58 }
   0xb   :  { %83 = vperm.xlu1 %7193, %v38_v5   ;;  %7177 = vmatprep.subr.msk.bf16.mxu0 %vm1560_vm0, %v7237_v28  ;;  %10814 = vst [vmem:[#allocation4_spill] sm:$0xff] %v7503_v31  ;;  %v6260_v41 = vld [vmem:[%s10708_s1] sm:$0xff]   ;;  %v65_v49 = vunpack.c.l.bf16 %v62_v43  ;;  %v7569_v59 = vld [vmem:[%s10706_s0 + $0x88] sm:$0xff]  ;;  %vm5758_vm13 = vcmask 785408   ;;  %vm5873_vm14 = vcmask 654336  }
   0xc   :  { %6551 = vmatpush3.bf16.msra.mxu1 %v7236_v22  ;;  %6525 = vmatpush3.bf16.msra.mxu0 %v1562_v30  ;;  %v6261_v45 = vunpack.c.l.bf16 %v6260_v41  ;;  %v6262_v48 = vunpack.c.h.bf16 %v6260_v41 }
   0xd   :  { %6526 = vmatprep.subr.bf16.mxu0 %v7238_v32  ;;  %v7558_v56 = vrot.slane %v65_v49, %v7534_v46 }
   0xe   :  { %93 = vperm.xlu0 %7191, %v40_v6   ;;  %v7543_v51 = vrot.slane %v6261_v45, %v7537_v47  ;;  %v7546_v52 = vrot.slane %v6261_v45, %v7534_v46  ;;  %v7552_v54 = vrot.slane %v6262_v48, %v7534_v46  ;;  %v7555_v55 = vrot.slane %v6262_v48, %v7537_v47 }
   0xf   :  { %7194 = vset.pattern.permute.xlu1 %v10718_v0  ;;  %10819 = vst [vmem:[#allocation9_spill] sm:$0xff] %v7558_v56  ;;  %v7572_v60 = vrot.slane %v6262_v48, %v7564_v58 }
  0x10   :  { %215 = vperm.xlu1 %7194, %v38_v5   ;;  %6527 = vmatpush3.bf16.msra.mxu0 %v7238_v32  ;;  %10818 = vst [vmem:[#allocation8_spill] sm:$0xff] %v7546_v52 }
  0x12   :  { %123 = vperm.xlu0 %7191, %v7383_v7  }
  0x14   :  { %7195 = vset.pattern.permute.xlu1 %v10716_v1 }
  0x15   :  { %88 = vperm.xlu1 %7195, %v39_v8  }
  0x16   :  { %143 = vperm.xlu0 %7191, %v7392_v9  }
  0x19   :  { %7196 = vset.pattern.permute.xlu1 %v10728_v11 }
  0x1a   :  { %339 = vperm.xlu1 %7196, %v35_v2   ;;  %163 = vperm.xlu0 %7191, %v7399_v10  }
  0x1e   :  { %343 = vperm.xlu1 %7196, %v36_v3   ;;  %7218 = vset.pattern.permute.xlu0 %v10728_v11 }
  0x1f   :  { %351 = vperm.xlu0 %7218, %v38_v5  }
  0x22   :  { %7197 = vset.pattern.permute.xlu1 %v10718_v0 }
  0x23   :  { %223 = vperm.xlu1 %7197, %v40_v6   ;;  %355 = vperm.xlu0 %7218, %v39_v8  }
  0x27   :  { %7198 = vset.pattern.permute.xlu1 %v10728_v11  ;;  %367 = vperm.xlu0 %7218, %v42_v12  }
  0x28   :  { %347 = vperm.xlu1 %7198, %v37_v4  }
  0x2b   :  { %383 = vperm.xlu0 %7218, %v7383_v7  }
  0x2c   :  { %7199 = vset.pattern.permute.xlu1 %v10716_v1 }
  0x2d   :  { %98 = vperm.xlu1 %7199, %v41_v13  }
  0x2f   :  { %399 = vperm.xlu0 %7218, %v7392_v9  }
  0x31   :  { %103 = vperm.xlu1 %7199, %v42_v12  }
  0x33   :  { %415 = vperm.xlu0 %7218, %v7399_v10  }
  0x35   :  { %7200 = vset.pattern.permute.xlu1 %v10728_v11 }
  0x36   :  { %359 = vperm.xlu1 %7200, %v40_v6  }
  0x37   :  { %7222 = vset.pattern.permute.xlu0 %v10718_v0 }
  0x38   :  { %211 = vperm.xlu0 %7222, %v37_v4  }
  0x3a   :  { %7201 = vset.pattern.permute.xlu1 %v10718_v0 }
  0x3b   :  { %231 = vperm.xlu1 %7201, %v42_v12  }
  0x3c   :  { %219 = vperm.xlu0 %7222, %v39_v8   ;;  %v7591_v8 = vrot.slane %v65_v49, %v7537_v47 }
  0x3f   :  { %7202 = vset.pattern.permute.xlu1 %v10728_v11 }
  0x40   :  { %363 = vperm.xlu1 %7202, %v41_v13   ;;  %227 = vperm.xlu0 %7222, %v41_v13  }
  0x44   :  { %7203 = vset.pattern.permute.xlu1 %v10716_v1  ;;  %235 = vperm.xlu0 %7222, %v43_v14  }
  0x45   :  { %108 = vperm.xlu1 %7203, %v43_v14  }
  0x48   :  { %243 = vperm.xlu0 %7222, %v45_v15  }
  0x49   :  { %113 = vperm.xlu1 %7203, %v44_v16  }
  0x4c   :  { %251 = vperm.xlu0 %7222, %v47_v17  }
  0x4d   :  { %7204 = vset.pattern.permute.xlu1 %v10718_v0 }
  0x4e   :  { %239 = vperm.xlu1 %7204, %v44_v16  }
  0x50   :  { %259 = vperm.xlu0 %7222, %v7437_v18  }
  0x52   :  { %7205 = vset.pattern.permute.xlu1 %v10716_v1 }
  0x53   :  { %118 = vperm.xlu1 %7205, %v45_v15  }
  0x54   :  { %267 = vperm.xlu0 %7222, %v7446_v20  }
  0x57   :  { %7206 = vset.pattern.permute.xlu1 %v10728_v11 }
  0x58   :  { %371 = vperm.xlu1 %7206, %v43_v14   ;;  %275 = vperm.xlu0 %7222, %v7457_v23  }
  0x5c   :  { %375 = vperm.xlu1 %7206, %v44_v16   ;;  %283 = vperm.xlu0 %7222, %v7465_v24  }
  0x60   :  { %7207 = vset.pattern.permute.xlu1 %v10718_v0  ;;  %7226 = vset.pattern.permute.xlu0 %v10728_v11 }
  0x61   :  { %247 = vperm.xlu1 %7207, %v7383_v7   ;;  %423 = vperm.xlu0 %7226, %v7472_v25   ;;  %v33_v7 = vld [vmem:[%s10709_s8] sm:$0xff] }
  0x62   :  { %v7611_v19 = vrot.slane %v33_v7, %v7537_v47 }
  0x64   :  { %10822 = vst [vmem:[#allocation12_spill] sm:$0xff] %v7611_v19 }
  0x65   :  { %7208 = vset.pattern.permute.xlu1 %v10728_v11  ;;  %772 = vperm.xlu0 %7226, %v7480_v26  }
  0x66   :  { %379 = vperm.xlu1 %7208, %v45_v15  }
  0x69   :  { %7230 = vset.pattern.permute.xlu0 %v10718_v0 }
  0x6a   :  { %7209 = vset.pattern.permute.xlu1 %v10716_v1  ;;  %629 = vperm.xlu0 %7230, %v7487_v27  }
  0x6b   :  { %128 = vperm.xlu1 %7209, %v47_v17  }
  0x6e   :  { %1064 = vperm.xlu0 %7230, %v7503_v31  }
  0x6f   :  { %133 = vperm.xlu1 %7209, %v48_v29  }
  0x72   :  { %7234 = vset.pattern.permute.xlu0 %v10728_v11 }
  0x73   :  { %7210 = vset.pattern.permute.xlu1 %v10718_v0 }
  0x74   :  { %255 = vperm.xlu1 %7210, %v48_v29  }
  0x78   :  { %7211 = vset.pattern.permute.xlu1 %v10716_v1 }
  0x79   :  { %138 = vperm.xlu1 %7211, %v7437_v18  }
  0x7d   :  { %7212 = vset.pattern.permute.xlu1 %v10728_v11  ;;  %v204_v33 = vpop.permute.xlu1 %203  ;;  %v69_v34 = vpop.permute.xlu0 %68 }
  0x7e   :  { %387 = vperm.xlu1 %7212, %v47_v17   ;;  %v294_v61 = vmul.f32 %v7543_v51, %v204_v33  ;;  %v180_v62 = vmul.f32 %v7546_v52, %v69_v34  ;;  %v7605_v17 = vrot.slane %v6261_v45, %v7564_v58 }
  0x80   :  { %v316_v16 = vadd.f32 %v294_v61, %v180_v62 }
  0x81   :  { %v208_v35 = vpop.permute.xlu1 %207  ;;  %v74_v36 = vpop.permute.xlu0 %73 }
  0x82   :  { %391 = vperm.xlu1 %7212, %v48_v29   ;;  %v7577_v63 = vmul.f32 %v7555_v55, %v208_v35  ;;  %v488_v2 = vmul.f32 %v7552_v54, %v74_v36  ;;  %v295_v14 = vmul.f32 %v7543_v51, %v208_v35  ;;  %v181_v15 = vmul.f32 %v7546_v52, %v74_v36 }
  0x84   :  { %v535_v22 = vrot.slane %v488_v2, 3  ;;  %v317_v37 = vadd.f32 %v295_v14, %v181_v15 }
  0x85   :  { %v7514_v38 = vpop.permute.xlu0 %78 }
  0x86   :  { %7213 = vset.pattern.permute.xlu1 %v10718_v0  ;;  %v7517_v39 = vpop.permute.xlu1 %83  ;;  %v489_v3 = vmul.f32 %v7552_v54, %v7514_v38  ;;  %v927_v4 = vmul.f32 %v7558_v56, %v7514_v38  ;;  %v7627_v41 = vmul.f32 %v7546_v52, %v7514_v38 }
  0x87   :  { %263 = vperm.xlu1 %7213, %v7392_v9   ;;  %v7594_v9 = vrot.slane %v65_v49, %v7564_v58  ;;  %v490_v12 = vmul.f32 %v7552_v54, %v7517_v39  ;;  %v7600_v13 = vmul.f32 %v7558_v56, %v7517_v39  ;;  %v183_v48 = vmul.f32 %v7546_v52, %v7517_v39 }
  0x88   :  { %v536_v28 = vrot.slane %v489_v3, 3  ;;  %v974_v29 = vrot.slane %v927_v4, 6 }
  0x89   :  { %v7525_v42 = vpop.permute.xlu0 %93  ;;  %v538_v32 = vrot.slane %v490_v12, 3  ;;  %v975_v33 = vrot.slane %v7600_v13, 6 }
  0x8a   :  { %v7618_v34 = vmul.f32 %v7552_v54, %v7525_v42  ;;  %v7622_v35 = vmul.f32 %v7558_v56, %v7525_v42  ;;  %v7637_v49 = vmul.f32 %v7546_v52, %v7525_v42  ;;  %v537_v42 = vsel %vm534_vm2, %v535_v22, %v536_v28 }
  0x8b   :  { %7214 = vset.pattern.permute.xlu1 %v10728_v11  ;;  %v7531_v44 = vpop.permute.xlu1 %215  ;;  %v7659_v3 = vsel %vm973_vm1, %v974_v29, %v975_v33 }
  0x8c   :  { %395 = vperm.xlu1 %7214, %v7437_v18   ;;  %v7608_v18 = vrot.slane %v33_v7, %v7534_v46  ;;  %v297_v43 = vmul.f32 %v7543_v51, %v7531_v44  ;;  %v7641_v61 = vmul.f32 %v7555_v55, %v7531_v44  ;;  %v7647_v62 = vmul.f32 %v7591_v8, %v7531_v44 }
  0x8d   :  { %v7540_v50 = vpop.permute.xlu0 %123  ;;  %v539_v44 = vsel %vm534_vm2, %v536_v28, %v538_v32  ;;  %v10831_v46 = vrot.slane %v7622_v35, 6  ;;  %v10832_v40 = vrot.slane %v7618_v34, 3 }
  0x8e   :  { %10821 = vst [vmem:[#allocation11_spill] sm:$0xff] %v7608_v18  ;;  %v7651_v2 = vmul.f32 %v7552_v54, %v7540_v50  ;;  %v7655_v39 = vmul.f32 %v7558_v56, %v7540_v50  ;;  %v319_v14 = vadd.f32 %v297_v43, %v183_v48  ;;  %v7677_v28 = vmul.f32 %v7546_v52, %v7540_v50 }
  0x8f   :  { %v10843_v18 = vmov 2  }
  0x90   :  { %7215 = vset.pattern.permute.xlu1 %v10716_v1  ;;  %v7549_v53 = vpop.permute.xlu1 %88  ;;  %10823 = vst [vmem:[#allocation13_spill] sm:$0xff] %v7651_v2  ;;  %10824 = vst [vmem:[#allocation14_spill] sm:$0xff] %v7655_v39 }
  0x91   :  { %148 = vperm.xlu1 %7215, %v7446_v20   ;;  %v7561_v57 = vpop.permute.xlu0 %143  ;;  %v491_v45 = vmul.f32 %v7552_v54, %v7549_v53  ;;  %v929_v38 = vmul.f32 %v7558_v56, %v7549_v53  ;;  %10827 = vst [vmem:[#allocation17_spill] sm:$0xff] %v7677_v28  ;;  %v7686_v7 = vmul.f32 %v7546_v52, %v7549_v53 }
  0x92   :  { %v7667_v21 = vmul.f32 %v7552_v54, %v7561_v57  ;;  %v7671_v22 = vmul.f32 %v7558_v56, %v7561_v57  ;;  %v7690_v29 = vmul.f32 %v7546_v52, %v7561_v57 }
  0x93   :  { %v540_v15 = vrot.slane %v491_v45, 3 }
  0x94   :  { %10825 = vst [vmem:[#allocation15_spill] sm:$0xff] %v7667_v21  ;;  %10826 = vst [vmem:[#allocation16_spill] sm:$0xff] %v7671_v22 }
  0x95   :  { %153 = vperm.xlu1 %7215, %v7569_v59   ;;  %v340_v5 = vpop.permute.xlu1 %339  ;;  %v7585_v6 = vpop.permute.xlu0 %163  ;;  %10828 = vst [vmem:[#allocation18_spill] sm:$0xff] %v7690_v29  ;;  %v7698_v48 = vsel %vm534_vm2, %v538_v32, %v540_v15  ;;  %v543_v21 = vsel %vm534_vm2, %v540_v15, %v10832_v40 }
  0x96   :  { %v430_v43 = vmul.f32 %v7605_v17, %v340_v5  ;;  %v7694_v50 = vmul.f32 %v7552_v54, %v7585_v6  ;;  %v7704_v53 = vmul.f32 %v7558_v56, %v7585_v6  ;;  %v7724_v22 = vmul.f32 %v7546_v52, %v7585_v6 }
  0x98   :  { %10829 = vst [vmem:[#allocation19_spill] sm:$0xff] %v7694_v50  ;;  %10830 = vst [vmem:[#allocation20_spill] sm:$0xff] %v7704_v53  ;;  %v452_v32 = vadd.f32 %v430_v43, %v316_v16 }
  0x99   :  { %7216 = vset.pattern.permute.xlu1 %v10718_v0  ;;  %v344_v30 = vpop.permute.xlu1 %343  ;;  %10833 = vst [vmem:[#allocation21_spill] sm:$0xff] %v7724_v22 }
  0x9a   :  { %271 = vperm.xlu1 %7216, %v7569_v59   ;;  %v352_v36 = vpop.permute.xlu0 %351  ;;  %v431_v4 = vmul.f32 %v7605_v17, %v344_v30  ;;  %v783_v0 = vmul.f32 %v7572_v60, %v344_v30 }
  0x9b   :  { %v433_v5 = vmul.f32 %v7605_v17, %v352_v36 }
  0x9c   :  { %v453_v45 = vadd.f32 %v431_v4, %v317_v37  ;;  %v7738_v4 = vadd.f32 %v537_v42, %v452_v32  ;;  %v829_v6 = vrot.slane %v783_v0, 3 }
  0x9e   :  { %7217 = vset.pattern.permute.xlu1 %v10716_v1  ;;  %v224_v12 = vpop.permute.xlu1 %223  ;;  %v356_v13 = vpop.permute.xlu0 %355  ;;  %v977_v1 = vrot.slane %v929_v38, 6 }
  0x9f   :  { %158 = vperm.xlu1 %7217, %v7457_v23   ;;  %v299_v16 = vmul.f32 %v7543_v51, %v224_v12  ;;  %v7730_v37 = vmul.f32 %v7555_v55, %v224_v12  ;;  %v7733_v40 = vmul.f32 %v7591_v8, %v224_v12  ;;  %v7741_v15 = vmul.f32 %v7594_v9, %v356_v13 }
  0xa0   :  { %v7708_v47 = vsel %vm973_vm1, %v975_v33, %v977_v1  ;;  %v7713_v58 = vsel %vm973_vm1, %v977_v1, %v10831_v46  ;;  %v1215_v33 = vmul.f32 %v7594_v9, %v352_v36  ;;  %v455_v46 = vadd.f32 %v433_v5, %v319_v14 }
  0xa1   :  { %v7745_v5 = vadd.f32 %v539_v44, %v453_v45  ;;  %v321_v42 = vadd.f32 %v299_v16, %v7637_v49  ;;  %v7752_v0 = vmul.f32 %v7605_v17, %v356_v13 }
  0xa2   :  { %v368_v38 = vpop.permute.xlu0 %367  ;;  %v7748_v22 = vadd.f32 %v543_v21, %v455_v46  ;;  %v10834_v46 = vmov 1  }
  0xa3   :  { %7219 = vset.pattern.permute.xlu1 %v10728_v11  ;;  %v348_v57 = vpop.permute.xlu1 %347  ;;  %v785_v11 = vmul.f32 %v7572_v60, %v352_v36  ;;  %v7736_v36 = vmul.f32 %v7572_v60, %v356_v13  ;;  %v7755_v32 = vmul.f32 %v7572_v60, %v368_v38  ;;  %v7761_v45 = vmul.f32 %v7594_v9, %v368_v38 }
  0xa4   :  { %403 = vperm.xlu1 %7219, %v7446_v20   ;;  %v784_v14 = vmul.f32 %v7572_v60, %v348_v57  ;;  %v1261_v20 = vrot.slane %v1215_v33, 6  ;;  %v1214_v12 = vmul.f32 %v7594_v9, %v348_v57  ;;  %v7765_v49 = vmul.f32 %v7605_v17, %v368_v38 }
  0xa5   :  { %v832_v1 = vrot.slane %v785_v11, 3  ;;  %v10738_v11 = vrot.slane %v7736_v36, 3  ;;  %v10836_v38 = vrot.slane %v7741_v15, 6  ;;  %v432_v29 = vmul.f32 %v7605_v17, %v348_v57 }
  0xa6   :  { %v384_v30 = vpop.permute.xlu0 %383  ;;  %v830_v33 = vrot.slane %v784_v14, 3 }
  0xa7   :  { %v7772_v44 = vsel %vm534_vm2, %v832_v1, %v10738_v11  ;;  %v7775_v53 = vmul.f32 %v7572_v60, %v384_v30  ;;  %v7782_v14 = vsel %vm973_vm1, %v1261_v20, %v10836_v38  ;;  %v7787_v11 = vmul.f32 %v7594_v9, %v384_v30 }
  0xa8   :  { %407 = vperm.xlu1 %7219, %v7569_v59   ;;  %v99_v43 = vpop.permute.xlu1 %98  ;;  %v1260_v59 = vrot.slane %v1214_v12, 6  ;;  %v7791_v39 = vmul.f32 %v7605_v17, %v384_v30  ;;  %v831_v38 = vsel %vm534_vm2, %v829_v6, %v830_v33  ;;  %v833_v57 = vsel %vm534_vm2, %v830_v33, %v832_v1 }
  0xa9   :  { %v493_v13 = vmul.f32 %v7552_v54, %v99_v43  ;;  %10835 = vst [vmem:[#allocation22_spill] sm:$0xff] %v7775_v53  ;;  %v931_v21 = vmul.f32 %v7558_v56, %v99_v43  ;;  %10837 = vst [vmem:[#allocation23_spill] sm:$0xff] %v7787_v11  ;;  %v7814_v1 = vmul.f32 %v7546_v52, %v99_v43  ;;  %v10847_v43 = vrot.slane %v7618_v34, 3 }
  0xaa   :  { %v400_v50 = vpop.permute.xlu0 %399  ;;  %10838 = vst [vmem:[#allocation24_spill] sm:$0xff] %v7791_v39  ;;  %v7805_v19 = vsel %vm973_vm1, %v1260_v59, %v1261_v20 }
  0xab   :  { %v7797_v31 = vmul.f32 %v7594_v9, %v400_v50  ;;  %v544_v2 = vrot.slane %v493_v13, 3  ;;  %v981_v28 = vrot.slane %v931_v21, 6  ;;  %v7824_v59 = vmul.f32 %v7605_v17, %v400_v50 }
  0xac   :  { %7220 = vset.pattern.permute.xlu1 %v10834_v46  ;;  %v104_v16 = vpop.permute.xlu1 %103 }
  0xad   :  { %279 = vperm.xlu1 %7220, %v7399_v10   ;;  %v7794_v10 = vmul.f32 %v7572_v60, %v400_v50  ;;  %10840 = vst [vmem:[#allocation26_spill] sm:$0xff] %v7797_v31  ;;  %v7802_v27 = vmul.f32 %v7552_v54, %v104_v16  ;;  %v7809_v39 = vmul.f32 %v7558_v56, %v104_v16  ;;  %10846 = vst [vmem:[#allocation31_spill] sm:$0xff] %v7824_v59 }
  0xae   :  { %v416_v12 = vpop.permute.xlu0 %415  ;;  %v7832_v11 = vsel %vm534_vm2, %v10847_v43, %v544_v2  ;;  %v187_v53 = vmul.f32 %v7546_v52, %v104_v16  ;;  %v10848_v50 = vrot.slane %v7622_v35, 6  ;;  %v10850_v35 = vmov 0  }
  0xaf   :  { %10839 = vst [vmem:[#allocation25_spill] sm:$0xff] %v7794_v10  ;;  %10841 = vst [vmem:[#allocation27_spill] sm:$0xff] %v7802_v27  ;;  %v7817_v33 = vmul.f32 %v7572_v60, %v416_v12  ;;  %v7820_v20 = vmul.f32 %v7594_v9, %v416_v12  ;;  %v7844_v31 = vmul.f32 %v7605_v17, %v416_v12  ;;  %v10851_v16 = vrot.slane %v7802_v27, 3 }
  0xb0   :  { %10842 = vst [vmem:[#allocation28_spill] sm:$0xff] %v7809_v39  ;;  %v7840_v21 = vsel %vm973_vm1, %v10848_v50, %v981_v28 }
  0xb1   :  { %7221 = vset.pattern.permute.xlu1 %v10843_v18  ;;  %v360_v26 = vpop.permute.xlu1 %359  ;;  %10844 = vst [vmem:[#allocation29_spill] sm:$0xff] %v7817_v33  ;;  %10845 = vst [vmem:[#allocation30_spill] sm:$0xff] %v7820_v20  ;;  %v547_v20 = vsel %vm534_vm2, %v544_v2, %v10851_v16 }
  0xb2   :  { %411 = vperm.xlu1 %7221, %v7457_v23   ;;  %v435_v6 = vmul.f32 %v7605_v17, %v360_v26  ;;  %10849 = vst [vmem:[#allocation32_spill] sm:$0xff] %v7844_v31  ;;  %v7850_v56 = vmul.f32 %v7572_v60, %v360_v26  ;;  %v7855_v13 = vmul.f32 %v7594_v9, %v360_v26 }
  0xb3   :  { %v212_v30 = vpop.permute.xlu0 %211 }
  0xb4   :  { %v296_v23 = vmul.f32 %v7543_v51, %v212_v30  ;;  %v637_v34 = vmul.f32 %v7555_v55, %v212_v30  ;;  %v457_v59 = vadd.f32 %v435_v6, %v321_v42  ;;  %v1071_v31 = vmul.f32 %v7591_v8, %v212_v30 }
  0xb5   :  { %v10852_v42 = vrot.slane %v7809_v39, 6  ;;  %v10854_v6 = vrot.slane %v7577_v63, 3  ;;  %v1265_v63 = vrot.slane %v7855_v13, 6 }
  0xb6   :  { %v318_v10 = vadd.f32 %v296_v23, %v7627_v41  ;;  %7223 = vset.pattern.permute.xlu1 %v10850_v35  ;;  %v232_v50 = vpop.permute.xlu1 %231  ;;  %v683_v12 = vrot.slane %v637_v34, 3  ;;  %v10855_v34 = vrot.slane %v7641_v61, 3 }
  0xb7   :  { %168 = vperm.xlu1 %7223, %v7465_v24   ;;  %v220_v43 = vpop.permute.xlu0 %219  ;;  %v7867_v26 = vsel %vm973_vm1, %v981_v28, %v10852_v42  ;;  %v301_v2 = vmul.f32 %v7543_v51, %v232_v50  ;;  %v7880_v28 = vadd.f32 %v547_v20, %v457_v59  ;;  %v1117_v42 = vrot.slane %v1071_v31, 6 }
  0xb8   :  { %v454_v33 = vadd.f32 %v432_v29, %v318_v10  ;;  %v298_v41 = vmul.f32 %v7543_v51, %v220_v43  ;;  %v639_v23 = vmul.f32 %v7555_v55, %v220_v43  ;;  %10853 = vst [vmem:[#allocation33_spill] sm:$0xff] %v7867_v26  ;;  %v684_v30 = vsel %vm534_vm2, %v10854_v6, %v683_v12 }
  0xb9   :  { %v686_v27 = vsel %vm534_vm2, %v683_v12, %v10855_v34  ;;  %v836_v29 = vrot.slane %v7850_v56, 3  ;;  %v749_v16 = vadd.f32 %v684_v30, %v7738_v4  ;;  %v1073_v56 = vmul.f32 %v7591_v8, %v220_v43 }
  0xba   :  { %v604_v10 = vadd.f32 %v7698_v48, %v454_v33  ;;  %v750_v39 = vadd.f32 %v686_v27, %v7745_v5  ;;  %v687_v6 = vrot.slane %v639_v23, 3  ;;  %v320_v52 = vadd.f32 %v298_v41, %v7686_v7 }
  0xbb   :  { %173 = vperm.xlu1 %7223, %v7472_v25   ;;  %v364_v26 = vpop.permute.xlu1 %363  ;;  %v896_v12 = vadd.f32 %v831_v38, %v749_v16  ;;  %v323_v48 = vadd.f32 %v301_v2, %v187_v53  ;;  %v7887_v4 = vmul.f32 %v7555_v55, %v232_v50  ;;  %v10856_v27 = vrot.slane %v7641_v61, 3 }
  0xbc   :  { %v897_v34 = vadd.f32 %v833_v57, %v750_v39  ;;  %v10857_v31 = vrot.slane %v7730_v37, 3  ;;  %v788_v7 = vmul.f32 %v7572_v60, %v364_v26  ;;  %v228_v57 = vpop.permute.xlu0 %227  ;;  %v10858_v53 = vrot.slane %v7736_v36, 3 }
  0xbd   :  { %v688_v5 = vsel %vm534_vm2, %v10856_v27, %v687_v6  ;;  %v1041_v20 = vadd.f32 %v7659_v3, %v896_v12  ;;  %v10859_v61 = vrot.slane %v7741_v15, 6  ;;  %v1120_v41 = vrot.slane %v1073_v56, 6 }
  0xbe   :  { %v690_v33 = vsel %vm534_vm2, %v687_v6, %v10857_v31  ;;  %v751_v38 = vadd.f32 %v688_v5, %v604_v10  ;;  %v837_v59 = vsel %vm534_vm2, %v10858_v53, %v836_v29  ;;  %v1042_v43 = vadd.f32 %v7708_v47, %v897_v34 }
  0xbf   :  { %v752_v39 = vadd.f32 %v690_v33, %v7748_v22  ;;  %v1266_v13 = vsel %vm973_vm1, %v10859_v61, %v1265_v63  ;;  %7224 = vset.pattern.permute.xlu1 %v10834_v46  ;;  %v7907_v3 = vmul.f32 %v7591_v8, %v232_v50  ;;  %v456_v22 = vadd.f32 %v7752_v0, %v320_v52 }
  0xc0   :  { %v898_v23 = vadd.f32 %v7772_v44, %v751_v38  ;;  %v1218_v36 = vmul.f32 %v7594_v9, %v364_v26  ;;  %287 = vperm.xlu1 %7224, %v7472_v25   ;;  %v109_v30 = vpop.permute.xlu1 %108  ;;  %v10860_v15 = vrot.slane %v7647_v62, 6  ;;  %v7917_v47 = vadd.f32 %v7765_v49, %v323_v48 }
  0xc1   :  { %v693_v10 = vrot.slane %v7887_v4, 3  ;;  %v899_v50 = vadd.f32 %v837_v59, %v752_v39  ;;  %v838_v6 = vrot.slane %v788_v7, 3  ;;  %v300_v12 = vmul.f32 %v7543_v51, %v228_v57 }
  0xc2   :  { %v1119_v2 = vsel %vm973_vm1, %v1117_v42, %v10860_v15  ;;  %v1043_v52 = vadd.f32 %v7713_v58, %v898_v23  ;;  %v10861_v0 = vmov %v10860_v15  ;;  %v641_v34 = vmul.f32 %v7555_v55, %v228_v57  ;;  %v236_v58 = vpop.permute.xlu0 %235 }
  0xc3   :  { %v1184_v16 = vadd.f32 %v1119_v2, %v1041_v20  ;;  %v1121_v44 = vsel %vm973_vm1, %v10861_v0, %v1120_v41  ;;  %v1075_v42 = vmul.f32 %v7591_v8, %v228_v57  ;;  %v1126_v49 = vrot.slane %v7907_v3, 6 }
  0xc4   :  { %v1185_v25 = vadd.f32 %v1121_v44, %v1042_v43  ;;  %v606_v56 = vadd.f32 %v7832_v11, %v456_v22  ;;  %v436_v48 = vmul.f32 %v7605_v17, %v364_v26  ;;  %v1267_v27 = vrot.slane %v1218_v36, 6  ;;  %7225 = vset.pattern.permute.xlu1 %v10843_v18  ;;  %v7931_v62 = vpop.permute.xlu1 %113 }
  0xc5   :  { %v10862_v5 = vrot.slane %v7733_v40, 6  ;;  %v1044_v33 = vadd.f32 %v7840_v21, %v899_v50  ;;  %v691_v20 = vrot.slane %v641_v34, 3  ;;  %v1124_v38 = vrot.slane %v1075_v42, 6  ;;  %419 = vperm.xlu1 %7225, %v7465_v24   ;;  %v10867_v40 = vld [vmem:[#allocation9_spill] sm:$0xff] }
  0xc6   :  { %v1327_v11 = vadd.f32 %v7805_v19, %v1184_v16  ;;  %v839_v26 = vsel %vm534_vm2, %v836_v29, %v838_v6  ;;  %v10863_v7 = vrot.slane %v7755_v32, 3  ;;  %v1328_v53 = vadd.f32 %v7782_v14, %v1185_v25  ;;  %v10870_v42 = vld [vmem:[#allocation33_spill] sm:$0xff] }
  0xc7   :  { %v1123_v31 = vsel %vm973_vm1, %v1120_v41, %v10862_v5  ;;  %v322_v59 = vadd.f32 %v300_v12, %v7814_v1  ;;  %v10864_v61 = vrot.slane %v7730_v37, 3  ;;  %v7949_v43 = vmul.f32 %v7555_v55, %v236_v58 }
  0xc8   :  { %v1186_v39 = vadd.f32 %v1123_v31, %v1043_v52  ;;  %v841_v57 = vsel %vm534_vm2, %v838_v6, %v10863_v7  ;;  %v1268_v24 = vsel %vm973_vm1, %v1265_v63, %v1267_v27  ;;  %v694_v19 = vsel %vm534_vm2, %v691_v20, %v693_v10  ;;  %v10868_v52 = vld [vmem:[#allocation2_spill] sm:$0xff]  ;;  %v10869_v6 = vld [vmem:[#allocation8_spill] sm:$0xff] }
  0xc9   :  { %v692_v21 = vsel %vm534_vm2, %v10864_v61, %v691_v20  ;;  %v10865_v41 = vmov %v10862_v5  ;;  %v10866_v1 = vrot.slane %v7761_v45, 6  ;;  %v7962_v23 = vmul.f32 %v7591_v8, %v236_v58  ;;  %7227 = vset.pattern.permute.xlu1 %v10850_v35  ;;  %v240_v63 = vpop.permute.xlu1 %239 }
  0xca   :  { %v753_v29 = vadd.f32 %v692_v21, %v606_v56  ;;  %v1125_v14 = vsel %vm973_vm1, %v10865_v41, %v1124_v38  ;;  %v495_v36 = vmul.f32 %v7552_v54, %v109_v30  ;;  %v1329_v15 = vadd.f32 %v1266_v13, %v1186_v39  ;;  %476 = vperm.xlu1 %7227, %v10868_v52  }
  0xcb   :  { %v1270_v37 = vsel %vm973_vm1, %v1267_v27, %v10866_v1  ;;  %v1187_v22 = vadd.f32 %v1125_v14, %v1044_v33  ;;  %v302_v50 = vmul.f32 %v7543_v51, %v236_v58  ;;  %v933_v16 = vmul.f32 %v10867_v40, %v109_v30 }
  0xcc   :  { %v900_v2 = vadd.f32 %v839_v26, %v753_v29  ;;  %v754_v0 = vadd.f32 %v694_v19, %v7880_v28  ;;  %v695_v44 = vrot.slane %v7949_v43, 3  ;;  %v188_v25 = vmul.f32 %v10869_v6, %v109_v30  ;;  %v10871_v30 = vld [vmem:[#allocation11_spill] sm:$0xff]  ;;  %v244_v19 = vpop.permute.xlu0 %243  ;;  %v10874_v29 = vld [vmem:[#allocation28_spill] sm:$0xff] }
  0xcd   :  { %v548_v12 = vrot.slane %v495_v36, 3  ;;  %v458_v34 = vadd.f32 %v436_v48, %v322_v59  ;;  %v985_v27 = vrot.slane %v933_v16, 6  ;;  %v7975_v13 = vmul.f32 %v7552_v54, %v7931_v62  ;;  %v10872_v48 = vld [vmem:[#allocation27_spill] sm:$0xff]  ;;  %v7997_v59 = vld [vmem:[%s10707_s2 + $0x20] ss:$0 sps:$4 sm:$0xff]   ;;  %v10876_v16 = vld [vmem:[#allocation12_spill] sm:$0xff] }
  0xce   :  { %v1045_v56 = vadd.f32 %v10870_v42, %v900_v2  ;;  %v1127_v58 = vsel %vm973_vm1, %v1124_v38, %v1126_v49  ;;  %v1330_v5 = vadd.f32 %v1268_v24, %v1187_v22  ;;  %v1128_v28 = vrot.slane %v7962_v23, 6  ;;  %7228 = vset.pattern.permute.xlu1 %v10834_v46  ;;  %v119_v38 = vpop.permute.xlu1 %118  ;;  %7179 = vmatprep.subr.msk.bf16.mxu0 %vm1560_vm0, %v7997_v59  ;;  %v10877_v42 = vld [vmem:[#allocation3_spill] sm:$0xff] }
  0xcf   :  { %v7982_v31 = vmul.f32 %v7555_v55, %v240_v63  ;;  %v1355_v33 = vmul.f32 %v10871_v30, %v1329_v15  ;;  %v10873_v20 = vrot.slane %v10872_v48, 3  ;;  %v550_v26 = vrot.slane %v7975_v13, 3  ;;  %625 = vperm.xlu1 %7228, %v10868_v52  }
  0xd0   :  { %v7991_v7 = vmul.f32 %v10867_v40, %v7931_v62  ;;  %v1188_v61 = vadd.f32 %v1127_v58, %v1045_v56  ;;  %v696_v21 = vsel %vm534_vm2, %v693_v10, %v695_v44  ;;  %v8002_v43 = vadd.f32 %v302_v50, %v188_v25 }
  0xd1   :  { %v549_v39 = vsel %vm534_vm2, %v10873_v20, %v548_v12  ;;  %v901_v24 = vadd.f32 %v841_v57, %v754_v0  ;;  %v10875_v41 = vrot.slane %v10874_v29, 6  ;;  %v303_v14 = vmul.f32 %v7543_v51, %v240_v63 }
  0xd2   :  { %v697_v1 = vrot.slane %v7982_v31, 3  ;;  %v8011_v22 = vmul.f32 %v7591_v8, %v240_v63  ;;  %v1356_v4 = vmul.f32 %v10871_v30, %v1330_v5  ;;  %v8019_v10 = vsel %vm973_vm1, %v1126_v49, %v1128_v28 }
  0xd3   :  { %v986_v46 = vsel %vm973_vm1, %v10875_v41, %v985_v27  ;;  %v608_v57 = vadd.f32 %v549_v39, %v458_v34  ;;  %v189_v23 = vmul.f32 %v10869_v6, %v7931_v62  ;;  %v551_v36 = vsel %vm534_vm2, %v548_v12, %v550_v26  ;;  %7229 = vset.pattern.permute.xlu1 %v10850_v35  ;;  %v372_v62 = vpop.permute.xlu1 %371 }
  0xd4   :  { %v987_v63 = vrot.slane %v7991_v7, 6  ;;  %v8028_v15 = vmul.f32 %v7555_v55, %v244_v19  ;;  %v1353_v2 = vmul.f32 %v10871_v30, %v1327_v11  ;;  %v1331_v50 = vadd.f32 %v1270_v37, %v1188_v61  ;;  %481 = vperm.xlu1 %7229, %v10877_v42  }
  0xd5   :  { %v1046_v3 = vadd.f32 %v986_v46, %v901_v24  ;;  %v1354_v49 = vmul.f32 %v10871_v30, %v1328_v53  ;;  %v1381_v52 = vadd.f32 %v10876_v16, %v1355_v33  ;;  %v8034_v0 = vadd.f32 %v303_v14, %v189_v23 }
  0xd6   :  { %v698_v25 = vsel %vm534_vm2, %v695_v44, %v697_v1  ;;  %v1130_v12 = vrot.slane %v8011_v22, 6  ;;  %v1379_v34 = vadd.f32 %v10876_v16, %v1353_v2  ;;  %v609_v11 = vadd.f32 %v551_v36, %v7917_v47 }
  0xd7   :  { %v8042_v37 = vmul.f32 %v7591_v8, %v244_v19  ;;  %v1380_v53 = vadd.f32 %v10876_v16, %v1354_v49  ;;  %v1403_v56 = vmax.f32 %v1381_v52, 0.0  ;;  %v988_v58 = vsel %vm973_vm1, %v985_v27, %v987_v63  ;;  %v376_v39 = vpop.permute.xlu1 %375 }
  0xd8   :  { %v304_v44 = vmul.f32 %v7543_v51, %v244_v19  ;;  %v699_v5 = vrot.slane %v8028_v15, 3  ;;  %v1401_v31 = vmax.f32 %v1379_v34, 0.0  ;;  %v8051_v33 = vmul.f32 %v10871_v30, %v1331_v50  ;;  %7231 = vset.pattern.permute.xlu1 %v10843_v18 }
  0xd9   :  { %v8053_v47 = vadd.f32 %v698_v25, %v609_v11  ;;  %v1402_v48 = vmax.f32 %v1380_v53, 0.0  ;;  %v8056_v20 = vadd.f32 %v10876_v16, %v1356_v4  ;;  %v8059_v61 = vsel %vm973_vm1, %v1128_v28, %v1130_v12  ;;  %776 = vperm.xlu1 %7231, %v10877_v42  }
  0xda   :  { %v8062_v27 = vmul.f32 %v7552_v54, %v119_v38  ;;  %v438_v24 = vmul.f32 %v7605_v17, %v372_v62  ;;  %v790_v19 = vmul.f32 %v7572_v60, %v372_v62  ;;  %v1132_v29 = vrot.slane %v8042_v37, 6 }
  0xdb   :  { %v8068_v41 = vpack.c.bf16 %v1402_v48, %v1401_v31  ;;  %v8070_v46 = vpack.c.bf16 %v1403_v56, %v1402_v48  ;;  %v1404_v14 = vmax.f32 %v8056_v20, 0.0  ;;  %v700_v28 = vsel %vm534_vm2, %v697_v1, %v699_v5  ;;  %v10881_v31 = vld [vmem:[#allocation4_spill] sm:$0xff] }
  0xdc   :  { %v190_v22 = vmul.f32 %v10869_v6, %v119_v38  ;;  %v935_v4 = vmul.f32 %v10867_v40, %v119_v38  ;;  %v842_v23 = vrot.slane %v790_v19, 3  ;;  %v755_v2 = vadd.f32 %v696_v21, %v608_v57  ;;  %v248_v42 = vpop.permute.xlu1 %247 }
  0xdd   :  { %10878 = vst [vmem:[#allocation9_spill] sm:$0xff] %v8068_v41  ;;  %6552 = vmatprep.mubr.msk.bf16.mxu1 %vm1529_vm3, %v8068_v41  ;;  %v8083_v36 = vpack.c.bf16 %v1404_v14, %v1403_v56  ;;  %v8086_v50 = vmul.f32 %v7594_v9, %v372_v62  ;;  %v1444_v49 = vshll.u32 %v8068_v41, 16  ;;  %v552_v1 = vrot.slane %v8062_v27, 3  ;;  %7232 = vset.pattern.permute.xlu1 %v10850_v35 }
  0xde   :  { %v460_v52 = vadd.f32 %v438_v24, %v8002_v43  ;;  %v10880_v38 = vrot.slane %v7755_v32, 3  ;;  %v1442_v34 = vshrl.u32 %v8068_v41, 16  ;;  %v8103_v32 = vsel %vm973_vm1, %v1130_v12, %v1132_v29  ;;  %920 = vperm.xlu1 %7232, %v10881_v31  }
  0xdf   :  { %10879 = vst [vmem:[#allocation2_spill] sm:$0xff] %v8083_v36  ;;  %6553 = vmatmul.mubr.msk.bf16.vlgmr.msra.gmra.mxu1 %vm1529_vm3, %v8083_v36  ;;  %v1271_v57 = vrot.slane %v8086_v50, 6  ;;  %v1446_v62 = vrot.slane %v1444_v49, 1  ;;  %v10768_v11 = vshll.u32 %v8083_v36, 16  ;;  %v989_v43 = vrot.slane %v935_v4, 6 }
  0xe0   :  { %v843_v25 = vsel %vm534_vm2, %v10880_v38, %v842_v23  ;;  %v1189_v53 = vadd.f32 %v8019_v10, %v1046_v3  ;;  %v8107_v56 = vmul.f32 %v7572_v60, %v376_v39  ;;  %v10882_v48 = vrot.slane %v7761_v45, 6 }
  0xe1   :  { %v902_v21 = vadd.f32 %v843_v25, %v755_v2  ;;  %v1447_v24 = vor.u32 %v1446_v62, %v1442_v34  ;;  %v1451_v35 = vrot.slane %v10768_v11, 1  ;;  %v439_v19 = vmul.f32 %v7605_v17, %v376_v39  ;;  %v380_v38 = vpop.permute.xlu1 %379 }
  0xe2   :  { %v1272_v27 = vsel %vm973_vm1, %v10882_v48, %v1271_v57  ;;  %v8116_v12 = vadd.f32 %v304_v44, %v190_v22  ;;  %v553_v10 = vsel %vm534_vm2, %v550_v26, %v552_v1  ;;  %v844_v4 = vrot.slane %v8107_v56, 3  ;;  %v252_v22 = vpop.permute.xlu0 %251  ;;  %7233 = vset.pattern.permute.xlu1 %v10843_v18 }
  0xe3   :  { %v1332_v3 = vadd.f32 %v1272_v27, %v1189_v53  ;;  %v610_v2 = vadd.f32 %v553_v10, %v460_v52  ;;  %v1047_v50 = vadd.f32 %v988_v58, %v902_v21  ;;  %v1452_v45 = vsel %vm1440_vm4, %v1447_v24, %v1451_v35  ;;  %v10883_v52 = vld [vmem:[#allocation14_spill] sm:$0xff]  ;;  %1207 = vperm.xlu1 %7233, %v10881_v31   ;;  %v10888_v10 = vld [vmem:[#allocation24_spill] sm:$0xff] }
  0xe4   :  { %v1221_v49 = vmul.f32 %v7594_v9, %v376_v39  ;;  %6528 = vmatprep.mubr.msk.bf16.mxu0 %vm1529_vm3, %v1452_v45  ;;  %v845_v44 = vsel %vm534_vm2, %v842_v23, %v844_v4  ;;  %v305_v13 = vmul.f32 %v7543_v51, %v248_v42  ;;  %v646_v26 = vmul.f32 %v7555_v55, %v248_v42  ;;  %v8143_v23 = vld [vmem:[%s10707_s2 + $0x2c] ss:$0 sps:$4 sm:$0xff]  }
  0xe5   :  { %v1358_v25 = vmul.f32 %v10871_v30, %v1332_v3  ;;  %v990_v58 = vsel %vm973_vm1, %v987_v63, %v989_v43  ;;  %v10884_v34 = vrot.slane %v10883_v52, 6  ;;  %v461_v21 = vadd.f32 %v439_v19, %v8034_v0  ;;  %v10885_v63 = vld [vmem:[#allocation17_spill] sm:$0xff]  ;;  %7180 = vmatprep.subr.msk.bf16.mxu1 %vm1560_vm0, %v8143_v23 }
  0xe6   :  { %v8137_v62 = vmul.f32 %v7591_v8, %v248_v42  ;;  %v903_v7 = vadd.f32 %v845_v44, %v8053_v47  ;;  %v1273_v53 = vrot.slane %v1221_v49, 6  ;;  %v327_v56 = vadd.f32 %v305_v13, %v10885_v63  ;;  %v129_v45 = vpop.permute.xlu1 %128 }
  0xe7   :  { %v992_v39 = vsel %vm973_vm1, %v989_v43, %v10884_v34  ;;  %v701_v48 = vrot.slane %v646_v26, 3  ;;  %v10767_v0 = vshrl.u32 %v8083_v36, 16  ;;  %v10886_v43 = vld [vmem:[#allocation13_spill] sm:$0xff]  ;;  %v1190_v18 = vadd.f32 %v8059_v61, %v1047_v50 }
  0xe8   :  { %v10887_v42 = vrot.slane %v10886_v43, 3  ;;  %v8154_v24 = vmul.f32 %v7555_v55, %v252_v22  ;;  %v757_v47 = vadd.f32 %v700_v28, %v610_v2  ;;  %v8159_v19 = vadd.f32 %v10876_v16, %v1358_v25 }
  0xe9   :  { %v8162_v31 = vadd.f32 %v10888_v10, %v327_v56  ;;  %v1134_v3 = vrot.slane %v8137_v62, 6  ;;  %v702_v50 = vsel %vm534_vm2, %v699_v5, %v701_v48  ;;  %v8171_v49 = vmul.f32 %v7591_v8, %v252_v22 }
  0xea   :  { %v555_v27 = vsel %vm534_vm2, %v552_v1, %v10887_v42  ;;  %v1455_v1 = vor.u32 %v10767_v0, %v1451_v35  ;;  %v1048_v28 = vadd.f32 %v990_v58, %v903_v7  ;;  %v1274_v2 = vsel %vm973_vm1, %v1271_v57, %v1273_v53  ;;  %v134_v34 = vpop.permute.xlu1 %133 }
  0xeb   :  { %v611_v61 = vadd.f32 %v555_v27, %v461_v21  ;;  %v8175_v25 = vmul.f32 %v7543_v51, %v252_v22  ;;  %v792_v44 = vmul.f32 %v7572_v60, %v380_v38  ;;  %v1333_v13 = vadd.f32 %v1274_v2, %v1190_v18 }
  0xec   :  { %v703_v26 = vrot.slane %v8154_v24, 3  ;;  %v1222_v35 = vmul.f32 %v7594_v9, %v380_v38  ;;  %v1383_v15 = vadd.f32 %v10876_v16, %v8051_v33  ;;  %v1135_v57 = vsel %vm973_vm1, %v1132_v29, %v1134_v3  ;;  %v10889_v33 = vld [vmem:[#allocation22_spill] sm:$0xff] }
  0xed   :  { %v758_v5 = vadd.f32 %v702_v50, %v611_v61  ;;  %v846_v58 = vrot.slane %v792_v44, 3  ;;  %v1406_v22 = vmax.f32 %v8159_v19, 0.0  ;;  %v1136_v21 = vrot.slane %v8171_v49, 6 }
  0xee   :  { %v1275_v7 = vrot.slane %v1222_v35, 6  ;;  %v1405_v63 = vmax.f32 %v1383_v15, 0.0  ;;  %v937_v56 = vmul.f32 %v10867_v40, %v129_v45  ;;  %v10890_v27 = vrot.slane %v10889_v33, 3 }
  0xef   :  { %v847_v42 = vsel %vm534_vm2, %v844_v4, %v846_v58  ;;  %v1191_v37 = vadd.f32 %v8103_v32, %v1048_v28  ;;  %v499_v29 = vmul.f32 %v7552_v54, %v129_v45  ;;  %v1359_v10 = vmul.f32 %v10871_v30, %v1333_v13 }
  0xf0   :  { %v849_v18 = vsel %vm534_vm2, %v846_v58, %v10890_v27  ;;  %v904_v61 = vadd.f32 %v847_v42, %v757_v47  ;;  %v1276_v2 = vsel %vm973_vm1, %v1273_v53, %v1275_v7  ;;  %v440_v44 = vmul.f32 %v7605_v17, %v380_v38  ;;  %v256_v38 = vpop.permute.xlu1 %255  ;;  %v10893_v42 = vld [vmem:[#allocation23_spill] sm:$0xff] }
  0xf1   :  { %v905_v50 = vadd.f32 %v849_v18, %v758_v5  ;;  %v1334_v35 = vadd.f32 %v1276_v2, %v1191_v37  ;;  %v8201_v4 = vpack.c.bf16 %v1406_v22, %v1405_v63  ;;  %v8205_v15 = vpack.c.bf16 %v1405_v63, %v1404_v14 }
  0xf2   :  { %v8210_v32 = vsel %vm534_vm2, %v701_v48, %v703_v26  ;;  %v1049_v47 = vadd.f32 %v992_v39, %v904_v61  ;;  %v993_v28 = vrot.slane %v937_v56, 6  ;;  %v8213_v53 = vmul.f32 %v7552_v54, %v134_v34 }
  0xf3   :  { %10891 = vst [vmem:[#allocation8_spill] sm:$0xff] %v8201_v4  ;;  %v1360_v13 = vmul.f32 %v10871_v30, %v1334_v35  ;;  %6556 = vmatprep.mubr.msk.bf16.mxu1 %vm1529_vm3, %v8201_v4  ;;  %v556_v5 = vrot.slane %v499_v29, 3  ;;  %v10769_v20 = vshll.u32 %v8201_v4, 16  ;;  %v8220_v14 = vmul.f32 %v10867_v40, %v134_v34  ;;  %v260_v35 = vpop.permute.xlu0 %259 }
  0xf4   :  { %v1385_v48 = vadd.f32 %v10876_v16, %v1359_v10  ;;  %v1192_v58 = vadd.f32 %v1135_v57, %v1049_v47  ;;  %v10892_v39 = vrot.slane %v10883_v52, 6  ;;  %v558_v56 = vrot.slane %v8213_v53, 3 }
  0xf5   :  { %v10894_v27 = vrot.slane %v10893_v42, 6  ;;  %v8231_v37 = vadd.f32 %v10876_v16, %v1360_v13  ;;  %v1459_v61 = vrot.slane %v10769_v20, 1  ;;  %v192_v57 = vmul.f32 %v10869_v6, %v129_v45 }
  0xf6   :  { %v994_v63 = vsel %vm973_vm1, %v10892_v39, %v993_v28  ;;  %v307_v52 = vmul.f32 %v7543_v51, %v256_v38  ;;  %v648_v2 = vmul.f32 %v7555_v55, %v256_v38  ;;  %v10895_v47 = vrot.slane %v10886_v43, 3 }
  0xf7   :  { %v1278_v18 = vsel %vm973_vm1, %v1275_v7, %v10894_v27  ;;  %v8233_v29 = vadd.f32 %v994_v63, %v905_v50  ;;  %v1460_v13 = vsel %vm1440_vm4, %v1455_v1, %v1459_v61  ;;  %v995_v50 = vrot.slane %v8220_v14, 6  ;;  %v139_v63 = vpop.permute.xlu1 %138 }
  0xf8   :  { %v1335_v10 = vadd.f32 %v1278_v18, %v1192_v58  ;;  %v557_v7 = vsel %vm534_vm2, %v10895_v47, %v556_v5  ;;  %v1082_v39 = vmul.f32 %v7591_v8, %v256_v38  ;;  %v462_v58 = vadd.f32 %v440_v44, %v8116_v12  ;;  %6529 = vmatmul.mubr.msk.bf16.vlgmr.msra.gmra.mxu0 %vm1529_vm3, %v1460_v13 }
  0xf9   :  { %v193_v45 = vmul.f32 %v10869_v6, %v134_v34  ;;  %v559_v27 = vsel %vm534_vm2, %v556_v5, %v558_v56  ;;  %v705_v43 = vrot.slane %v648_v2, 3  ;;  %v1137_v1 = vsel %vm973_vm1, %v1134_v3, %v1136_v21 }
  0xfa   :  { %v8258_v38 = vmul.f32 %v7555_v55, %v260_v35  ;;  %v1407_v18 = vmax.f32 %v1385_v48, 0.0  ;;  %v10772_v12 = vmax.f32 %v8231_v37, 0.0  ;;  %v1361_v44 = vmul.f32 %v10871_v30, %v1335_v10 }
  0xfb   :  { %v328_v34 = vadd.f32 %v8175_v25, %v192_v57  ;;  %v612_v47 = vadd.f32 %v557_v7, %v462_v58  ;;  %v329_v13 = vadd.f32 %v307_v52, %v193_v45  ;;  %v613_v5 = vadd.f32 %v559_v27, %v8162_v31 }
  0xfc   :  { %v996_v62 = vsel %vm973_vm1, %v993_v28, %v995_v50  ;;  %v1138_v2 = vrot.slane %v1082_v39, 6  ;;  %v8269_v3 = vpack.c.bf16 %v10772_v12, %v1407_v18  ;;  %v706_v48 = vsel %vm534_vm2, %v703_v26, %v705_v43  ;;  %v388_v28 = vpop.permute.xlu1 %387 }
  0xfd   :  { %v8275_v10 = vmul.f32 %v7591_v8, %v260_v35  ;;  %v8279_v25 = vpack.c.bf16 %v1407_v18, %v1406_v22  ;;  %v8282_v31 = vmul.f32 %v7552_v54, %v139_v63  ;;  %v308_v57 = vmul.f32 %v7543_v51, %v260_v35 }
  0xfe   :  { %10896 = vst [vmem:[#allocation33_spill] sm:$0xff] %v8269_v3  ;;  %v707_v52 = vrot.slane %v8258_v38, 3  ;;  %6557 = vmatmul.mubr.msk.bf16.gmra.mxu1 %vm1529_vm3, %v8269_v3  ;;  %v10770_v24 = vshrl.u32 %v8201_v4, 16  ;;  %v10771_v26 = vshll.u32 %v8269_v3, 16  ;;  %v8291_v7 = vadd.f32 %v10876_v16, %v1361_v44 }
  0xff   :  { %v194_v19 = vmul.f32 %v10869_v6, %v139_v63  ;;  %v442_v22 = vmul.f32 %v7605_v17, %v388_v28  ;;  %v794_v39 = vmul.f32 %v7572_v60, %v388_v28  ;;  %v760_v58 = vadd.f32 %v706_v48, %v613_v5 }
 0x100   :  { %v1139_v35 = vsel %vm973_vm1, %v1136_v21, %v1138_v2  ;;  %v1463_v45 = vor.u32 %v10770_v24, %v1459_v61  ;;  %v8303_v27 = vrot.slane %v10771_v26, 1  ;;  %v1140_v18 = vrot.slane %v8275_v10, 6  ;;  %v392_v20 = vpop.permute.xlu1 %391 }
 0x101   :  { %v560_v44 = vrot.slane %v8282_v31, 3  ;;  %v939_v0 = vmul.f32 %v10867_v40, %v139_v63  ;;  %v850_v11 = vrot.slane %v794_v39, 3  ;;  %v708_v49 = vsel %vm534_vm2, %v705_v43, %v707_v52 }
 0x102   :  { %v1468_v21 = vsel %vm1440_vm4, %v1463_v45, %v8303_v27  ;;  %v759_v61 = vadd.f32 %v8210_v32, %v612_v47  ;;  %v1224_v5 = vmul.f32 %v7594_v9, %v388_v28  ;;  %v8315_v48 = vadd.f32 %v308_v57, %v194_v19 }
 0x103   :  { %6532 = vmatprep.mubr.msk.bf16.mxu0 %vm1529_vm3, %v1468_v21  ;;  %v464_v31 = vadd.f32 %v442_v22, %v328_v34  ;;  %v10897_v63 = vrot.slane %v10889_v33, 3  ;;  %v443_v24 = vmul.f32 %v7605_v17, %v392_v20  ;;  %v795_v12 = vmul.f32 %v7572_v60, %v392_v20 }
 0x104   :  { %v1279_v43 = vrot.slane %v1224_v5, 6  ;;  %v1225_v45 = vmul.f32 %v7594_v9, %v392_v20  ;;  %v1141_v32 = vsel %vm973_vm1, %v1138_v2, %v1140_v18  ;;  %v997_v47 = vrot.slane %v939_v0, 6  ;;  %v268_v2 = vpop.permute.xlu0 %267 }
 0x105   :  { %v851_v39 = vsel %vm534_vm2, %v10897_v63, %v850_v11  ;;  %v561_v34 = vsel %vm534_vm2, %v558_v56, %v560_v44  ;;  %v1193_v33 = vadd.f32 %v1137_v1, %v8233_v29  ;;  %v10898_v57 = vrot.slane %v10893_v42, 6 }
 0x106   :  { %v906_v26 = vadd.f32 %v851_v39, %v759_v61  ;;  %v852_v22 = vrot.slane %v795_v12, 3  ;;  %v1281_v21 = vrot.slane %v1225_v45, 6  ;;  %v264_v61 = vpop.permute.xlu1 %263  ;;  %v614_v20 = vadd.f32 %v561_v34, %v464_v31  ;;  %v10900_v45 = vld [vmem:[#allocation16_spill] sm:$0xff] }
 0x107   :  { %v1280_v19 = vsel %vm973_vm1, %v10898_v57, %v1279_v43  ;;  %v309_v63 = vmul.f32 %v7543_v51, %v264_v61  ;;  %v650_v0 = vmul.f32 %v7555_v55, %v264_v61  ;;  %v465_v53 = vadd.f32 %v443_v24, %v329_v13 }
 0x108   :  { %v1051_v28 = vadd.f32 %v996_v62, %v906_v26  ;;  %v1336_v5 = vadd.f32 %v1280_v19, %v1193_v33  ;;  %v853_v56 = vsel %vm534_vm2, %v850_v11, %v852_v22  ;;  %v1084_v29 = vmul.f32 %v7591_v8, %v264_v61  ;;  %v10899_v62 = vld [vmem:[#allocation18_spill] sm:$0xff] }
 0x109   :  { %v907_v1 = vadd.f32 %v853_v56, %v760_v58  ;;  %v331_v12 = vadd.f32 %v309_v63, %v10899_v62  ;;  %v709_v26 = vrot.slane %v650_v0, 3  ;;  %v998_v31 = vsel %vm973_vm1, %v995_v50, %v997_v47  ;;  %v10903_v50 = vld [vmem:[#allocation15_spill] sm:$0xff] }
 0x10a   :  { %v1194_v39 = vadd.f32 %v1139_v35, %v1051_v28  ;;  %v1362_v42 = vmul.f32 %v10871_v30, %v1336_v5  ;;  %v10901_v34 = vrot.slane %v10900_v45, 6  ;;  %v1282_v13 = vsel %vm973_vm1, %v1279_v43, %v1281_v21  ;;  %v10902_v35 = vld [vmem:[#allocation31_spill] sm:$0xff]  ;;  %v396_v14 = vpop.permute.xlu1 %395 }
 0x10b   :  { %v8348_v11 = vmul.f32 %v7555_v55, %v268_v2  ;;  %v8354_v28 = vadd.f32 %v10902_v35, %v331_v12  ;;  %v1142_v57 = vrot.slane %v1084_v29, 6  ;;  %v761_v19 = vadd.f32 %v708_v49, %v614_v20 }
 0x10c   :  { %v1000_v33 = vsel %vm973_vm1, %v997_v47, %v10901_v34  ;;  %v8351_v24 = vadd.f32 %v10876_v16, %v1362_v42  ;;  %v1337_v58 = vadd.f32 %v1282_v13, %v1194_v39  ;;  %v10904_v61 = vrot.slane %v10903_v50, 3  ;;  %v10907_v13 = vld [vmem:[#allocation25_spill] sm:$0xff] }
 0x10d   :  { %v710_v43 = vsel %vm534_vm2, %v707_v52, %v709_v26  ;;  %v8363_v47 = vmul.f32 %v7591_v8, %v268_v2  ;;  %v1052_v0 = vadd.f32 %v998_v31, %v907_v1  ;;  %v310_v56 = vmul.f32 %v7543_v51, %v268_v2 }
 0x10e   :  { %v563_v5 = vsel %vm534_vm2, %v560_v44, %v10904_v61  ;;  %v796_v39 = vmul.f32 %v7572_v60, %v396_v14  ;;  %v711_v29 = vrot.slane %v8348_v11, 3  ;;  %v1226_v49 = vmul.f32 %v7594_v9, %v396_v14  ;;  %v149_v31 = vpop.permute.xlu1 %148 }
 0x10f   :  { %v615_v63 = vadd.f32 %v563_v5, %v465_v53  ;;  %v1409_v20 = vmax.f32 %v8291_v7, 0.0  ;;  %v1410_v44 = vmax.f32 %v8351_v24, 0.0  ;;  %v1363_v38 = vmul.f32 %v10871_v30, %v1337_v58 }
 0x110   :  { %v1143_v53 = vsel %vm973_vm1, %v1140_v18, %v1142_v57  ;;  %v854_v42 = vrot.slane %v796_v39, 3  ;;  %v1144_v2 = vrot.slane %v8363_v47, 6  ;;  %v1283_v1 = vrot.slane %v1226_v49, 6 }
 0x111   :  { %v762_v52 = vadd.f32 %v710_v43, %v615_v63  ;;  %v8378_v62 = vpack.c.bf16 %v1410_v44, %v1409_v20  ;;  %v10906_v12 = vmax.f32 %v8231_v37, 0.0  ;;  %v10908_v58 = vrot.slane %v10907_v13, 3 }
 0x112   :  { %v855_v34 = vsel %vm534_vm2, %v852_v22, %v854_v42  ;;  %v1195_v18 = vadd.f32 %v1141_v32, %v1052_v0  ;;  %v503_v35 = vmul.f32 %v7552_v54, %v149_v31  ;;  %v8392_v61 = vsel %vm534_vm2, %v709_v26, %v711_v29  ;;  %v154_v49 = vpop.permute.xlu1 %153 }
 0x113   :  { %10905 = vst [vmem:[#allocation11_spill] sm:$0xff] %v8378_v62  ;;  %v8382_v7 = vpack.c.bf16 %v1409_v20, %v10906_v12  ;;  %v857_v10 = vsel %vm534_vm2, %v854_v42, %v10908_v58  ;;  %v908_v5 = vadd.f32 %v855_v34, %v761_v19  ;;  %v1284_v37 = vsel %vm973_vm1, %v1281_v21, %v1283_v1  ;;  %v276_v34 = vpop.permute.xlu0 %275  ;;  %v10909_v58 = vld [vmem:[#allocation26_spill] sm:$0xff] }
 0x114   :  { %v909_v43 = vadd.f32 %v857_v10, %v762_v52  ;;  %6560 = vmatprep.mubr.msk.bf16.mxu1 %vm1529_vm3, %v8378_v62  ;;  %v1389_v22 = vadd.f32 %v10876_v16, %v1363_v38  ;;  %v444_v63 = vmul.f32 %v7605_v17, %v396_v14  ;;  %v1338_v39 = vadd.f32 %v1284_v37, %v1195_v18 }
 0x115   :  { %v941_v32 = vmul.f32 %v10867_v40, %v149_v31  ;;  %v8403_v0 = vsel %vm973_vm1, %v1142_v57, %v1144_v2  ;;  %v1053_v26 = vadd.f32 %v1000_v33, %v908_v5  ;;  %v10774_v19 = vshrl.u32 %v8269_v3, 16 }
 0x116   :  { %v10773_v21 = vshll.u32 %v8378_v62, 16  ;;  %v1364_v20 = vmul.f32 %v10871_v30, %v1338_v39  ;;  %v196_v38 = vmul.f32 %v10869_v6, %v149_v31  ;;  %v564_v52 = vrot.slane %v503_v35, 3 }
 0x117   :  { %v1001_v14 = vrot.slane %v941_v32, 6  ;;  %v1196_v42 = vadd.f32 %v1143_v53, %v1053_v26  ;;  %v1471_v12 = vor.u32 %v10774_v19, %v8303_v27  ;;  %v8415_v33 = vmul.f32 %v7552_v54, %v154_v49 }
 0x118   :  { %v1475_v57 = vrot.slane %v10773_v21, 1  ;;  %v10910_v10 = vrot.slane %v10909_v58, 6  ;;  %v8421_v31 = vadd.f32 %v10876_v16, %v1364_v20  ;;  %v10911_v53 = vrot.slane %v10900_v45, 6  ;;  %v272_v45 = vpop.permute.xlu1 %271 }
 0x119   :  { %v8427_v27 = vmul.f32 %v10867_v40, %v154_v49  ;;  %v10776_v32 = vrot.slane %v8415_v33, 3  ;;  %v466_v26 = vadd.f32 %v444_v63, %v8315_v48  ;;  %v312_v48 = vmul.f32 %v7543_v51, %v276_v34 }
 0x11a   :  { %v1286_v18 = vsel %vm973_vm1, %v1283_v1, %v10910_v10  ;;  %v1002_v35 = vsel %vm973_vm1, %v10911_v53, %v1001_v14  ;;  %v1476_v39 = vsel %vm1440_vm4, %v1471_v12, %v1475_v57  ;;  %v10912_v1 = vrot.slane %v10903_v50, 3 }
 0x11b   :  { %v1339_v5 = vadd.f32 %v1286_v18, %v1196_v42  ;;  %v1054_v37 = vadd.f32 %v1002_v35, %v909_v43  ;;  %6533 = vmatmul.mubr.msk.bf16.gmra.mxu0 %vm1529_vm3, %v1476_v39  ;;  %v8437_v10 = vmul.f32 %v7555_v55, %v276_v34  ;;  %v1411_v53 = vmax.f32 %v1389_v22, 0.0 }
 0x11c   :  { %v565_v20 = vsel %vm534_vm2, %v10912_v1, %v564_v52  ;;  %v567_v43 = vsel %vm534_vm2, %v564_v52, %v10776_v32  ;;  %v1003_v42 = vrot.slane %v8427_v27, 6  ;;  %v652_v12 = vmul.f32 %v7555_v55, %v272_v45 }
 0x11d   :  { %v1365_v50 = vmul.f32 %v10871_v30, %v1339_v5  ;;  %v8446_v63 = vadd.f32 %v310_v56, %v196_v38  ;;  %v1086_v18 = vmul.f32 %v7591_v8, %v272_v45  ;;  %v8450_v35 = vmul.f32 %v7591_v8, %v276_v34  ;;  %v284_v38 = vpop.permute.xlu0 %283 }
 0x11e   :  { %v616_v22 = vadd.f32 %v565_v20, %v466_v26  ;;  %v197_v39 = vmul.f32 %v10869_v6, %v154_v49  ;;  %v713_v1 = vrot.slane %v652_v12, 3  ;;  %v1412_v52 = vmax.f32 %v8421_v31, 0.0 }
 0x11f   :  { %v617_v27 = vadd.f32 %v567_v43, %v8354_v28  ;;  %v311_v21 = vmul.f32 %v7543_v51, %v272_v45  ;;  %v10775_v19 = vrot.slane %v8437_v10, 3  ;;  %v8459_v56 = vpack.c.bf16 %v1411_v53, %v1410_v44  ;;  %v159_v28 = vpop.permute.xlu1 %158 }
 0x120   :  { %v8462_v34 = vsel %vm973_vm1, %v1001_v14, %v1003_v42  ;;  %v714_v49 = vsel %vm534_vm2, %v711_v29, %v713_v1  ;;  %v1146_v5 = vrot.slane %v1086_v18, 6  ;;  %v8467_v31 = vpack.c.bf16 %v1412_v52, %v1411_v53 }
 0x121   :  { %v8470_v26 = vadd.f32 %v10876_v16, %v1365_v50  ;;  %v10779_v20 = vrot.slane %v8450_v35, 6  ;;  %v198_v24 = vmul.f32 %v10869_v6, %v159_v28  ;;  %v10778_v44 = vshrl.u32 %v8378_v62, 16 }
 0x122   :  { %10913 = vst [vmem:[#allocation27_spill] sm:$0xff] %v8467_v31  ;;  %6561 = vmatmul.mubr.msk.bf16.gmra.mxu1 %vm1529_vm3, %v8467_v31  ;;  %v505_v11 = vmul.f32 %v7552_v54, %v159_v28  ;;  %v943_v29 = vmul.f32 %v10867_v40, %v159_v28  ;;  %v10777_v14 = vshll.u32 %v8467_v31, 16  ;;  %v8481_v45 = vmul.f32 %v7555_v55, %v284_v38 }
 0x123   :  { %v8483_v53 = vadd.f32 %v311_v21, %v197_v39  ;;  %v764_v43 = vadd.f32 %v714_v49, %v617_v27  ;;  %v8488_v12 = vsel %vm534_vm2, %v713_v1, %v10775_v19  ;;  %v8491_v50 = vmul.f32 %v7543_v51, %v284_v38  ;;  %v404_v47 = vpop.permute.xlu1 %403  ;;  %v424_v19 = vpop.permute.xlu0 %423 }
 0x124   :  { %v1147_v18 = vsel %vm973_vm1, %v1144_v2, %v1146_v5  ;;  %v1479_v28 = vor.u32 %v10778_v44, %v1475_v57  ;;  %v1483_v21 = vrot.slane %v10777_v14, 1  ;;  %v8501_v39 = vmul.f32 %v7591_v8, %v284_v38  ;;  %v10915_v14 = vld [vmem:[#allocation20_spill] sm:$0xff] }
 0x125   :  { %v8506_v1 = vsel %vm973_vm1, %v1146_v5, %v10779_v20  ;;  %v8508_v27 = vadd.f32 %v312_v48, %v198_v24  ;;  %v1005_v49 = vrot.slane %v943_v29, 6  ;;  %v10782_v2 = vmax.f32 %v8470_v26, 0.0 }
 0x126   :  { %v568_v32 = vrot.slane %v505_v11, 3  ;;  %v1484_v57 = vsel %vm1440_vm4, %v1479_v28, %v1483_v21  ;;  %v763_v38 = vadd.f32 %v8392_v61, %v616_v22  ;;  %v446_v44 = vmul.f32 %v7605_v17, %v404_v47  ;;  %v7240_v11 = vld [vmem:[%s10707_s2 + $0x18] sm:$0xff]  }
 0x127   :  { %6536 = vmatprep.mubr.msk.bf16.mxu0 %vm1529_vm3, %v1484_v57  ;;  %v798_v5 = vmul.f32 %v7572_v60, %v404_v47  ;;  %v1197_v48 = vadd.f32 %v8403_v0, %v1054_v37  ;;  %v1228_v24 = vmul.f32 %v7594_v9, %v404_v47  ;;  %v8525_v28 = vpack.c.bf16 %v10782_v2, %v1412_v52  ;;  %v408_v47 = vpop.permute.xlu1 %407  ;;  %v773_v4 = vpop.permute.xlu0 %772 }
 0x128   :  { %v8529_v22 = vmul.f32 %v7605_v17, %v424_v19  ;;  %v1006_v57 = vsel %vm973_vm1, %v1003_v42, %v1005_v49  ;;  %v1894_v20 = vsel %vm1560_vm0, %v7997_v59, 0  ;;  %v10916_v62 = vrot.slane %v10915_v14, 6 }
 0x129   :  { %10914 = vst [vmem:[#allocation28_spill] sm:$0xff] %v8525_v28  ;;  %v858_v0 = vrot.slane %v798_v5, 3  ;;  %v1287_v37 = vrot.slane %v1228_v24, 6  ;;  %v10917_v52 = vrot.slane %v8415_v33, 3  ;;  %v8543_v61 = vmul.f32 %v7572_v60, %v408_v47  ;;  %6573 = vmatpush3.bf16.msra.mxu0 %v1894_v20  ;;  %v10920_v33 = vld [vmem:[#allocation19_spill] sm:$0xff]  ;;  %v10925_v28 = vld [vmem:[#allocation32_spill] sm:$0xff] }
 0x12a   :  { %v8537_v29 = vsel %vm973_vm1, %v1005_v49, %v10916_v62  ;;  %v8546_v42 = vmul.f32 %v7594_v9, %v408_v47  ;;  %v468_v5 = vadd.f32 %v446_v44, %v8446_v63  ;;  %v10918_v59 = vrot.slane %v10907_v13, 3  ;;  %6574 = vmatprep.subr.bf16.mxu0 %v7240_v11  ;;  %v8561_v20 = vld [vmem:[%s10707_s2 + $0x38] ss:$0 sps:$4 sm:$0xff]  }
 0x12b   :  { %v569_v2 = vsel %vm534_vm2, %v10917_v52, %v568_v32  ;;  %v10919_v62 = vrot.slane %v10909_v58, 6  ;;  %v10921_v3 = vrot.slane %v10920_v33, 3  ;;  %10922 = vst [vmem:[#allocation12_spill] sm:$0xff] %v8561_v20  ;;  %v447_v13 = vmul.f32 %v7605_v17, %v408_v47  ;;  %v280_v47 = vpop.permute.xlu1 %279 }
 0x12c   :  { %v859_v24 = vsel %vm534_vm2, %v10918_v59, %v858_v0  ;;  %v860_v59 = vrot.slane %v8543_v61, 3  ;;  %v1289_v58 = vrot.slane %v8546_v42, 6  ;;  %v8580_v61 = vmul.f32 %v7572_v60, %v773_v4 }
 0x12d   :  { %v1288_v49 = vsel %vm973_vm1, %v10919_v62, %v1287_v37  ;;  %v571_v52 = vsel %vm534_vm2, %v568_v32, %v10921_v3  ;;  %v910_v63 = vadd.f32 %v859_v24, %v763_v38  ;;  %v10923_v62 = vshrl.u32 %v8467_v31, 16  ;;  %6575 = vmatpush3.bf16.msra.mxu0 %v7240_v11 }
 0x12e   :  { %v1340_v44 = vadd.f32 %v1288_v49, %v1197_v48  ;;  %v8571_v3 = vmul.f32 %v7572_v60, %v424_v19  ;;  %v8574_v32 = vmul.f32 %v7594_v9, %v424_v19  ;;  %v861_v48 = vsel %vm534_vm2, %v858_v0, %v860_v59  ;;  %7181 = vmatprep.subr.msk.bf16.mxu0 %vm1560_vm0, %v8561_v20 }
 0x12f   :  { %v8568_v41 = vor.u32 %v10923_v62, %v1483_v21  ;;  %v1055_v36 = vadd.f32 %v8462_v34, %v910_v63  ;;  %v618_v42 = vadd.f32 %v569_v2, %v468_v5  ;;  %v911_v21 = vadd.f32 %v861_v48, %v764_v43  ;;  %v10924_v62 = vld [vmem:[#allocation21_spill] sm:$0xff] }
 0x130   :  { %v1366_v38 = vmul.f32 %v10871_v30, %v1340_v44  ;;  %v313_v24 = vmul.f32 %v7543_v51, %v280_v47  ;;  %v654_v49 = vmul.f32 %v7555_v55, %v280_v47  ;;  %v469_v34 = vadd.f32 %v447_v13, %v8483_v53 }
 0x131   :  { %v1198_v63 = vadd.f32 %v1147_v18, %v1055_v36  ;;  %v1088_v0 = vmul.f32 %v7591_v8, %v280_v47  ;;  %v1290_v44 = vsel %vm973_vm1, %v1287_v37, %v1289_v58  ;;  %v8592_v43 = vmul.f32 %v7594_v9, %v773_v4  ;;  %v412_v36 = vpop.permute.xlu1 %411 }
 0x132   :  { %v1392_v19 = vadd.f32 %v10876_v16, %v1366_v38  ;;  %v335_v11 = vadd.f32 %v313_v24, %v10924_v62  ;;  %v717_v2 = vrot.slane %v654_v49, 3  ;;  %v1056_v5 = vadd.f32 %v1006_v57, %v911_v21 }
 0x133   :  { %v1341_v48 = vadd.f32 %v1290_v44, %v1198_v63  ;;  %v10796_v20 = vrot.slane %v8580_v61, 3  ;;  %v765_v38 = vadd.f32 %v8488_v12, %v618_v42  ;;  %v10798_v18 = vrot.slane %v8571_v3, 3 }
 0x134   :  { %v1414_v31 = vmax.f32 %v1392_v19, 0.0  ;;  %v8597_v53 = vadd.f32 %v10925_v28, %v335_v11  ;;  %v10797_v37 = vrot.slane %v8574_v32, 6  ;;  %v619_v13 = vadd.f32 %v571_v52, %v469_v34  ;;  %v630_v11 = vpop.permute.xlu0 %629 }
 0x135   :  { %v1367_v47 = vmul.f32 %v10871_v30, %v1341_v48  ;;  %v10926_v4 = vrot.slane %v8437_v10, 3  ;;  %v1150_v21 = vrot.slane %v1088_v0, 6  ;;  %v800_v24 = vmul.f32 %v7572_v60, %v412_v36 }
 0x136   :  { %v1230_v12 = vmul.f32 %v7594_v9, %v412_v36  ;;  %v10927_v28 = vmax.f32 %v8470_v26, 0.0  ;;  %v10795_v49 = vrot.slane %v8592_v43, 6  ;;  %v10928_v52 = vrot.slane %v8481_v45, 3 }
 0x137   :  { %v718_v57 = vsel %vm534_vm2, %v10926_v4, %v717_v2  ;;  %v8613_v19 = vadd.f32 %v10876_v16, %v1367_v47  ;;  %v1199_v34 = vadd.f32 %v8506_v1, %v1056_v5  ;;  %v8626_v26 = vsel %vm534_vm2, %v10798_v18, %v10796_v20 }
 0x138   :  { %v8609_v42 = vpack.c.bf16 %v1414_v31, %v10927_v28  ;;  %v8618_v10 = vsel %vm534_vm2, %v717_v2, %v10928_v52  ;;  %v766_v63 = vadd.f32 %v718_v57, %v619_v13  ;;  %v862_v0 = vrot.slane %v800_v24, 3  ;;  %v169_v13 = vpop.permute.xlu1 %168  ;;  %v10931_v24 = vld [vmem:[#allocation29_spill] sm:$0xff] }
 0x139   :  { %v1291_v44 = vrot.slane %v1230_v12, 6  ;;  %v10929_v2 = vrot.slane %v8450_v35, 6  ;;  %v10930_v5 = vrot.slane %v8501_v39, 6  ;;  %v448_v47 = vmul.f32 %v7605_v17, %v412_v36 }
 0x13a   :  { %6564 = vmatprep.mubr.msk.bf16.mxu1 %vm1529_vm3, %v8609_v42  ;;  %v10794_v62 = vshll.u32 %v8609_v42, 16  ;;  %v1415_v4 = vmax.f32 %v8613_v19, 0.0  ;;  %v863_v57 = vsel %vm534_vm2, %v860_v59, %v862_v0  ;;  %v10932_v12 = vrot.slane %v10931_v24, 3 }
 0x13b   :  { %v1151_v1 = vsel %vm973_vm1, %v10929_v2, %v1150_v21  ;;  %v8637_v48 = vsel %vm973_vm1, %v1150_v21, %v10930_v5  ;;  %v1292_v35 = vsel %vm973_vm1, %v1289_v58, %v1291_v44  ;;  %v8651_v21 = vsel %vm973_vm1, %v10797_v37, %v10795_v49 }
 0x13c   :  { %v865_v28 = vsel %vm534_vm2, %v862_v0, %v10932_v12  ;;  %v912_v52 = vadd.f32 %v863_v57, %v765_v38  ;;  %v1342_v2 = vadd.f32 %v1292_v35, %v1199_v34  ;;  %v8654_v19 = vmul.f32 %v7555_v55, %v630_v11  ;;  %v7242_v12 = vld [vmem:[%s10707_s2 + $0x24] sm:$0xff]  }
 0x13d   :  { %v913_v36 = vadd.f32 %v865_v28, %v766_v63  ;;  %v507_v59 = vmul.f32 %v7552_v54, %v169_v13  ;;  %v945_v5 = vmul.f32 %v10867_v40, %v169_v13  ;;  %v1491_v58 = vrot.slane %v10794_v62, 1  ;;  %v174_v63 = vpop.permute.xlu1 %173 }
 0x13e   :  { %v8660_v0 = vpack.c.bf16 %v1415_v4, %v1414_v31  ;;  %v1057_v38 = vadd.f32 %v8537_v29, %v912_v52  ;;  %v1368_v34 = vmul.f32 %v10871_v30, %v1342_v2  ;;  %v8668_v57 = vmul.f32 %v7591_v8, %v630_v11 }
 0x13f   :  { %v2170_v28 = vsel %vm1560_vm0, %v8143_v23, 0  ;;  %v470_v35 = vadd.f32 %v448_v47, %v8508_v27  ;;  %v572_v62 = vrot.slane %v507_v59, 3  ;;  %v1009_v31 = vrot.slane %v945_v5, 6  ;;  %v8686_v23 = vld [vmem:[%s10707_s2 + $0x44] ss:$0 sps:$4 sm:$0xff]  }
 0x140   :  { %v1492_v49 = vsel %vm1440_vm4, %v8568_v41, %v1491_v58  ;;  %6597 = vmatpush3.bf16.msra.mxu1 %v2170_v28  ;;  %v1200_v20 = vadd.f32 %v1151_v1, %v1057_v38  ;;  %v1394_v29 = vadd.f32 %v10876_v16, %v1368_v34  ;;  %v8678_v52 = vmul.f32 %v7552_v54, %v174_v63  ;;  %v10933_v27 = vld [vmem:[#allocation30_spill] sm:$0xff] }
 0x141   :  { %6537 = vmatmul.mubr.msk.bf16.gmra.mxu0 %vm1529_vm3, %v1492_v49  ;;  %v8681_v11 = vmul.f32 %v10867_v40, %v174_v63  ;;  %v10934_v47 = vrot.slane %v10933_v27, 6  ;;  %v10935_v1 = vrot.slane %v10915_v14, 6  ;;  %v10799_v49 = vshrl.u32 %v8609_v42, 16  ;;  %6598 = vmatprep.subr.bf16.mxu1 %v7242_v12  ;;  %v288_v14 = vpop.permute.xlu1 %287 }
 0x142   :  { %v10936_v38 = vrot.slane %v10920_v33, 3  ;;  %v574_v37 = vrot.slane %v8678_v52, 3  ;;  %v200_v18 = vmul.f32 %v10869_v6, %v169_v13  ;;  %v315_v33 = vmul.f32 %v7543_v51, %v288_v14 }
 0x143   :  { %v1294_v41 = vsel %vm973_vm1, %v1291_v44, %v10934_v47  ;;  %v1010_v2 = vsel %vm973_vm1, %v10935_v1, %v1009_v31  ;;  %v201_v44 = vmul.f32 %v10869_v6, %v174_v63  ;;  %v1416_v47 = vmax.f32 %v1394_v29, 0.0 }
 0x144   :  { %v1343_v5 = vadd.f32 %v1294_v41, %v1200_v20  ;;  %v573_v34 = vsel %vm534_vm2, %v10936_v38, %v572_v62  ;;  %v1058_v28 = vadd.f32 %v1010_v2, %v913_v36  ;;  %v10800_v1 = vshrl.u32 %v8070_v46, 16  ;;  %6599 = vmatpush3.bf16.msra.mxu1 %v7242_v12 }
 0x145   :  { %v10802_v20 = vrot.slane %v8681_v11, 6  ;;  %v8707_v41 = vmul.f32 %v7555_v55, %v288_v14  ;;  %7182 = vmatprep.subr.msk.bf16.mxu1 %vm1560_vm0, %v8686_v23  ;;  %v620_v13 = vadd.f32 %v573_v34, %v470_v35  ;;  %v575_v6 = vsel %vm534_vm2, %v572_v62, %v574_v37  ;;  %v420_v34 = vpop.permute.xlu1 %419 }
 0x146   :  { %v1369_v59 = vmul.f32 %v10871_v30, %v1343_v5  ;;  %v8715_v36 = vmul.f32 %v7591_v8, %v288_v14  ;;  %v8717_v12 = vpack.c.bf16 %v1416_v47, %v1415_v4  ;;  %v337_v51 = vadd.f32 %v315_v33, %v201_v44 }
 0x147   :  { %v10801_v29 = vrot.slane %v8707_v41, 3  ;;  %v10804_v2 = vshll.u32 %v8070_v46, 16  ;;  %v336_v5 = vadd.f32 %v8491_v50, %v200_v18  ;;  %v1495_v62 = vor.u32 %v10799_v49, %v1491_v58 }
 0x148   :  { %v8720_v63 = vadd.f32 %v10876_v16, %v1369_v59  ;;  %6565 = vmatmul.mubr.msk.bf16.gmra.mxu1 %vm1529_vm3, %v8717_v12  ;;  %v10803_v35 = vshll.u32 %v8717_v12, 16  ;;  %v621_v59 = vadd.f32 %v575_v6, %v8597_v53  ;;  %v1012_v38 = vsel %vm973_vm1, %v1009_v31, %v10802_v20 }
 0x149   :  { %v8738_v50 = vrot.slane %v10800_v1, 1  ;;  %v10937_v18 = vrot.slane %v8481_v45, 3  ;;  %v10805_v14 = vrot.slane %v8715_v36, 6  ;;  %v767_v53 = vadd.f32 %v8618_v10, %v620_v13 }
 0x14a   :  { %v1417_v44 = vmax.f32 %v8720_v63, 0.0  ;;  %v802_v33 = vmul.f32 %v7572_v60, %v420_v34  ;;  %v1232_v31 = vmul.f32 %v7594_v9, %v420_v34  ;;  %v1499_v6 = vrot.slane %v10803_v35, 1 }
 0x14b   :  { %v722_v58 = vsel %vm534_vm2, %v10937_v18, %v10801_v29  ;;  %v2047_v45 = vrot.slane %v10804_v2, 2  ;;  %v1201_v18 = vadd.f32 %v8637_v48, %v1058_v28  ;;  %v2050_v4 = vshrl.u32 %v8205_v15, 16 }
 0x14c   :  { %v8753_v49 = vpack.c.bf16 %v1417_v44, %v1416_v47  ;;  %v866_v1 = vrot.slane %v802_v33, 3  ;;  %v10806_v10 = vshll.u32 %v8205_v15, 16  ;;  %v450_v13 = vmul.f32 %v7605_v17, %v420_v34  ;;  %v1065_v34 = vpop.permute.xlu0 %1064 }
 0x14d   :  { %v1295_v29 = vrot.slane %v1232_v31, 6  ;;  %v1500_v20 = vsel %vm1440_vm4, %v1495_v62, %v1499_v6  ;;  %v1501_v35 = vshrl.u32 %v8717_v12, 16  ;;  %v768_v47 = vadd.f32 %v722_v58, %v621_v59  ;;  %v477_v62 = vpop.permute.xlu1 %476 }
 0x14e   :  { %v10938_v2 = vrot.slane %v8501_v39, 6  ;;  %v8769_v48 = vadd.f32 %v8529_v22, %v337_v51  ;;  %v10939_v28 = vrot.slane %v10931_v24, 3  ;;  %6540 = vmatprep.mubr.msk.bf16.mxu0 %vm1529_vm3, %v1500_v20  ;;  %v10940_v59 = vrot.slane %v10933_v27, 6 }
 0x14f   :  { %v2048_v39 = vor.u32 %v2047_v45, %v8738_v50  ;;  %v509_v51 = vmul.f32 %v7552_v54, %v477_v62  ;;  %v947_v24 = vmul.f32 %v10867_v40, %v477_v62  ;;  %v2055_v20 = vrot.slane %v10806_v10, 2 }
 0x150   :  { %v1155_v33 = vsel %vm973_vm1, %v10938_v2, %v10805_v14  ;;  %v867_v17 = vsel %vm534_vm2, %v10939_v28, %v866_v1  ;;  %v1296_v58 = vsel %vm973_vm1, %v10940_v59, %v1295_v29  ;;  %v2052_v2 = vrot.slane %v2050_v4, 1 }
 0x151   :  { %v914_v31 = vadd.f32 %v867_v17, %v767_v53  ;;  %v1344_v22 = vadd.f32 %v1296_v58, %v1201_v18  ;;  %v472_v28 = vadd.f32 %v450_v13, %v336_v5  ;;  %v1503_v27 = vor.u32 %v1501_v35, %v1499_v6 }
 0x152   :  { %v1093_v53 = vmul.f32 %v7591_v8, %v1065_v34  ;;  %v576_v45 = vrot.slane %v509_v51, 3  ;;  %v1013_v17 = vrot.slane %v947_v24, 6  ;;  %v2059_v18 = vshrl.u32 %v8279_v25, 16 }
 0x153   :  { %v1059_v14 = vadd.f32 %v1012_v38, %v914_v31  ;;  %v1370_v50 = vmul.f32 %v10871_v30, %v1344_v22  ;;  %v10941_v59 = vrot.slane %v8571_v3, 3  ;;  %v10942_v10 = vrot.slane %v8574_v32, 6  ;;  %v626_v38 = vpop.permute.xlu1 %625 }
 0x154   :  { %v2062_v6 = vshll.u32 %v8279_v25, 16  ;;  %v577_v34 = vsel %vm534_vm2, %v574_v37, %v576_v45  ;;  %v657_v31 = vmul.f32 %v7555_v55, %v626_v38  ;;  %v8802_v22 = vor.u32 %v2055_v20, %v2052_v2 }
 0x155   :  { %v869_v62 = vsel %vm534_vm2, %v866_v1, %v10941_v59  ;;  %v1202_v58 = vadd.f32 %v1155_v33, %v1059_v14  ;;  %v1298_v5 = vsel %vm973_vm1, %v1295_v29, %v10942_v10  ;;  %v1396_v13 = vadd.f32 %v10876_v16, %v1370_v50 }
 0x156   :  { %v10943_v1 = vrot.slane %v8681_v11, 6  ;;  %v1091_v29 = vmul.f32 %v7591_v8, %v626_v38  ;;  %v1160_v14 = vrot.slane %v1093_v53, 6  ;;  %v915_v10 = vadd.f32 %v869_v62, %v768_v47 }
 0x157   :  { %v1345_v3 = vadd.f32 %v1298_v5, %v1202_v58  ;;  %v723_v33 = vrot.slane %v657_v31, 3  ;;  %v1418_v51 = vmax.f32 %v1396_v13, 0.0  ;;  %v2061_v52 = vrot.slane %v2059_v18, 1  ;;  %v482_v8 = vpop.permute.xlu1 %481 }
 0x158   :  { %v1014_v32 = vsel %vm973_vm1, %v10943_v1, %v1013_v17  ;;  %v622_v24 = vadd.f32 %v577_v34, %v472_v28  ;;  %v1156_v55 = vrot.slane %v1091_v29, 6  ;;  %v2064_v2 = vrot.slane %v2062_v6, 2 }
 0x159   :  { %v1371_v37 = vmul.f32 %v10871_v30, %v1345_v3  ;;  %v1060_v20 = vadd.f32 %v1014_v32, %v915_v10  ;;  %v10944_v11 = vrot.slane %v8707_v41, 3  ;;  %v8818_v47 = vpack.c.bf16 %v1418_v51, %v1417_v44 }
 0x15a   :  { %v2057_v53 = vsel %vm2040_vm5, %v2048_v39, %v8802_v22  ;;  %v10945_v28 = vrot.slane %v8715_v36, 6  ;;  %v510_v58 = vmul.f32 %v7552_v54, %v482_v8  ;;  %v10946_v5 = vrot.slane %v8668_v57, 6 }
 0x15b   :  { %v724_v50 = vsel %vm534_vm2, %v10944_v11, %v723_v33  ;;  %v948_v63 = vmul.f32 %v10867_v40, %v482_v8  ;;  %6568 = vmatprep.mubr.msk.bf16.mxu1 %vm1529_vm3, %v8818_v47  ;;  %v1505_v44 = vshll.u32 %v8818_v47, 16  ;;  %v1397_v39 = vadd.f32 %v10876_v16, %v1371_v37 }
 0x15c   :  { %v769_v59 = vadd.f32 %v724_v50, %v622_v24  ;;  %v1157_v62 = vsel %vm973_vm1, %v10945_v28, %v1156_v55  ;;  %v8829_v41 = vsel %vm973_vm1, %v10946_v5, %v1160_v14  ;;  %v578_v36 = vrot.slane %v510_v58, 3 }
 0x15d   :  { %v1203_v38 = vadd.f32 %v1157_v62, %v1060_v20  ;;  %v8837_v34 = vor.u32 %v2064_v2, %v2061_v52  ;;  %v2068_v54 = vshrl.u32 %v8382_v7, 16  ;;  %v1015_v3 = vrot.slane %v948_v63, 6  ;;  %v777_v52 = vpop.permute.xlu1 %776 }
 0x15e   :  { %v916_v13 = vadd.f32 %v8626_v26, %v769_v59  ;;  %v1507_v1 = vrot.slane %v1505_v44, 1  ;;  %v1419_v32 = vmax.f32 %v1397_v39, 0.0  ;;  %v10947_v29 = vrot.slane %v8654_v19, 3 }
 0x15f   :  { %v1346_v31 = vadd.f32 %v8651_v21, %v1203_v38  ;;  %v10948_v10 = vmov %v10946_v5  ;;  %v579_v26 = vsel %vm534_vm2, %v576_v45, %v578_v36  ;;  %v2071_v24 = vshll.u32 %v8382_v7, 16 }
 0x160   :  { %v726_v14 = vsel %vm534_vm2, %v723_v33, %v10947_v29  ;;  %v1159_v37 = vsel %vm973_vm1, %v1156_v55, %v10948_v10  ;;  %v623_v2 = vadd.f32 %v579_v26, %v8769_v48  ;;  %v1016_v20 = vsel %vm973_vm1, %v1013_v17, %v1015_v3 }
 0x161   :  { %v1372_v21 = vmul.f32 %v10871_v30, %v1346_v31  ;;  %v805_v11 = vmul.f32 %v7572_v60, %v777_v52  ;;  %v1061_v19 = vadd.f32 %v1016_v20, %v916_v13  ;;  %v8856_v33 = vmul.f32 %v7594_v9, %v777_v52 }
 0x162   :  { %v1508_v57 = vsel %vm1440_vm4, %v1503_v27, %v1507_v1  ;;  %v1432_v55 = vpack.c.bf16 %v1419_v32, %v1419_v32  ;;  %v770_v50 = vadd.f32 %v726_v14, %v623_v2  ;;  %v8863_v59 = vpack.c.bf16 %v1419_v32, %v1418_v51  ;;  %v921_v51 = vpop.permute.xlu1 %920 }
 0x163   :  { %v8860_v45 = vadd.f32 %v10876_v16, %v1372_v21  ;;  %v872_v8 = vrot.slane %v805_v11, 3  ;;  %6541 = vmatmul.mubr.msk.bf16.gmra.mxu0 %vm1529_vm3, %v1508_v57  ;;  %v1204_v48 = vadd.f32 %v1159_v37, %v1061_v19  ;;  %v1301_v17 = vrot.slane %v8856_v33, 6  ;;  %v10951_v37 = vld [vmem:[#allocation28_spill] sm:$0xff]  ;;  %v10952_v21 = vld [vmem:[#allocation2_spill] sm:$0xff] }
 0x164   :  { %6569 = vmatmul.mubr.msk.bf16.gmra.mxu1 %vm1529_vm3, %v1432_v55  ;;  %v2070_v60 = vrot.slane %v2068_v54, 1  ;;  %v2073_v27 = vrot.slane %v2071_v24, 2  ;;  %v10949_v62 = vrot.slane %v8580_v61, 3  ;;  %v2077_v5 = vshrl.u32 %v8459_v56, 16 }
 0x165   :  { %v1420_v28 = vmax.f32 %v8860_v45, 0.0  ;;  %6600 = vmatprep.mubr.msk.bf16.mxu1 %vm1529_vm3, %v2057_v53  ;;  %v10950_v63 = vrot.slane %v8592_v43, 6  ;;  %v949_v36 = vmul.f32 %v10867_v40, %v921_v51  ;;  %v2080_v13 = vshll.u32 %v8459_v56, 16 }
 0x166   :  { %v873_v58 = vsel %vm534_vm2, %v10949_v62, %v872_v8  ;;  %v2066_v61 = vsel %vm2040_vm5, %v8802_v22, %v8837_v34  ;;  %v1509_v53 = vshrl.u32 %v8818_v47, 16  ;;  %v2074_v10 = vor.u32 %v2073_v27, %v2070_v60  ;;  %v1208_v57 = vpop.permute.xlu1 %1207 }
 0x167   :  { %v917_v38 = vadd.f32 %v873_v58, %v770_v50  ;;  %v1302_v39 = vsel %vm973_vm1, %v10950_v63, %v1301_v17  ;;  %v8882_v29 = vpack.c.bf16 %v1420_v28, %v1419_v32  ;;  %v1017_v14 = vrot.slane %v949_v36, 6 }
 0x168   :  { %v1347_v31 = vadd.f32 %v1302_v39, %v1204_v48  ;;  %v2086_v26 = vshrl.u32 %v10951_v37, 16  ;;  %v2089_v43 = vshll.u32 %v10951_v37, 16  ;;  %v1511_v40 = vor.u32 %v1509_v53, %v1507_v1  ;;  %v10953_v48 = vld [vmem:[#allocation9_spill] sm:$0xff] }
 0x169   :  { %v1513_v32 = vshll.u32 %v8882_v29, 16  ;;  %v1836_v2 = vrot.slane %v10952_v21, 1  ;;  %v1018_v20 = vsel %vm973_vm1, %v1015_v3, %v1017_v14  ;;  %v1517_v22 = vshrl.u32 %v8882_v29, 16 }
 0x16a   :  { %v1373_v52 = vmul.f32 %v10871_v30, %v1347_v31  ;;  %v2079_v11 = vrot.slane %v2077_v5, 1  ;;  %v2082_v19 = vrot.slane %v2080_v13, 2  ;;  %v1062_v33 = vadd.f32 %v1018_v20, %v917_v38  ;;  %v10955_v20 = vld [vmem:[#allocation33_spill] sm:$0xff] }
 0x16b   :  { %v1515_v55 = vrot.slane %v1513_v32, 1  ;;  %v2088_v1 = vrot.slane %v2086_v26, 1  ;;  %v2091_v45 = vrot.slane %v2089_v43, 2  ;;  %v1236_v50 = vmul.f32 %v7594_v9, %v1208_v57 }
 0x16c   :  { %v1399_v3 = vadd.f32 %v10876_v16, %v1373_v52  ;;  %6601 = vmatmul.mubr.msk.bf16.vlgmr.msra.gmra.mxu1 %vm1529_vm3, %v2066_v61  ;;  %v2075_v8 = vsel %vm2040_vm5, %v8837_v34, %v2074_v10  ;;  %v1835_v60 = vrot.slane %v10953_v48, 1  ;;  %v1205_v27 = vadd.f32 %v8829_v41, %v1062_v33  ;;  %v10954_v52 = vld [vmem:[#allocation8_spill] sm:$0xff] }
 0x16d   :  { %6604 = vmatprep.mubr.msk.bf16.mxu1 %vm1529_vm3, %v2075_v8  ;;  %v1516_v62 = vsel %vm1440_vm4, %v1511_v40, %v1515_v55  ;;  %v1519_v58 = vor.u32 %v1517_v22, %v1515_v55  ;;  %v1303_v51 = vrot.slane %v1236_v50, 6  ;;  %v2083_v38 = vor.u32 %v2082_v19, %v2079_v11 }
 0x16e   :  { %6544 = vmatprep.mubr.msk.bf16.mxu0 %vm1529_vm3, %v1516_v62  ;;  %v1837_v9 = vsel %vm1834_vm6, %v1835_v60, %v1836_v2  ;;  %v2092_v34 = vor.u32 %v2091_v45, %v2088_v1  ;;  %v2095_v63 = vshrl.u32 %v8660_v0, 16  ;;  %v2098_v41 = vshll.u32 %v8660_v0, 16 }
 0x16f   :  { %6545 = vmatmul.mubr.msk.bf16.gmra.mxu0 %vm1529_vm3, %v1519_v58  ;;  %v1421_v39 = vmax.f32 %v1399_v3, 0.0  ;;  %v1304_v36 = vsel %vm973_vm1, %v1301_v17, %v1303_v51  ;;  %v2104_v31 = vshrl.u32 %v8753_v49, 16  ;;  %v2107_v61 = vshll.u32 %v8753_v49, 16  ;;  %v10956_v3 = vld [vmem:[#allocation12_spill] sm:$0xff] }
 0x170   :  { %6576 = vmatprep.mubr.msk.bf16.mxu0 %vm1529_vm3, %v1837_v9  ;;  %v1348_v14 = vadd.f32 %v1304_v36, %v1205_v27  ;;  %v1838_v40 = vrot.slane %v10954_v52, 1  ;;  %v1840_v33 = vrot.slane %v10955_v20, 1  ;;  %v2084_v19 = vsel %vm2040_vm5, %v2074_v10, %v2083_v38  ;;  %v7246_v27 = vld [vmem:[%s10707_s2 + $0x3c] sm:$0xff]  }
 0x171   :  { %v2097_v57 = vrot.slane %v2095_v63, 1  ;;  %v2100_v17 = vrot.slane %v2098_v41, 2  ;;  %v8935_v55 = vpack.c.bf16 %v1421_v39, %v1420_v28  ;;  %v2093_v1 = vsel %vm2040_vm5, %v2083_v38, %v2092_v34  ;;  %v7244_v28 = vld [vmem:[%s10707_s2 + $0x30] sm:$0xff]  }
 0x172   :  { %v1374_v11 = vmul.f32 %v10871_v30, %v1348_v14  ;;  %v2106_v45 = vrot.slane %v2104_v31, 1  ;;  %v2109_v30 = vrot.slane %v2107_v61, 2  ;;  %v2376_v50 = vsel %vm1560_vm0, %v10956_v3, 0  ;;  %v8971_v14 = vld [vmem:[%s10707_s2 + $0x50] ss:$0 sps:$4 sm:$0xff]  }
 0x173   :  { %v1839_v8 = vsel %vm1834_vm6, %v1836_v2, %v1838_v40  ;;  %v1841_v48 = vsel %vm1834_vm6, %v1838_v40, %v1840_v33  ;;  %v2113_v60 = vshrl.u32 %v8863_v59, 16  ;;  %v2101_v62 = vor.u32 %v2100_v17, %v2097_v57  ;;  %v10957_v40 = vld [vmem:[#allocation11_spill] sm:$0xff]  ;;  %v8979_v57 = vld [vmem:[%s10707_s2 + $0x5c] ss:$0 sps:$4 sm:$0xff]  }
 0x174   :  { %6605 = vmatmul.mubr.msk.bf16.gmra.mxu1 %vm1529_vm3, %v2084_v19  ;;  %v1400_v10 = vadd.f32 %v10876_v16, %v1374_v11  ;;  %v2116_v58 = vshll.u32 %v8863_v59, 16  ;;  %v2592_v51 = vsel %vm1560_vm0, %v8686_v23, 0  ;;  %v2110_v2 = vor.u32 %v2109_v30, %v2106_v45  ;;  %v10958_v17 = vld [vmem:[#allocation27_spill] sm:$0xff] }
 0x175   :  { %6608 = vmatprep.mubr.msk.bf16.mxu1 %vm1529_vm3, %v2093_v1  ;;  %v2122_v9 = vshrl.u32 %v8935_v55, 16  ;;  %v10807_v38 = vshll.u32 %v8935_v55, 16  ;;  %6645 = vmatpush3.bf16.msra.mxu1 %v2592_v51  ;;  %v1842_v23 = vrot.slane %v10957_v40, 1  ;;  %v1850_v11 = vrot.slane %v8818_v47, 1 }
 0x176   :  { %v8956_v16 = vmax.f32 %v1400_v10, 0.0  ;;  %6646 = vmatprep.subr.bf16.mxu1 %v7246_v27  ;;  %v1852_v19 = vrot.slane %v8882_v29, 1  ;;  %v1844_v1 = vrot.slane %v10958_v17, 1  ;;  %v2115_v45 = vrot.slane %v2113_v60, 1 }
 0x177   :  { %6577 = vmatmul.mubr.msk.bf16.vlgmr.msra.gmra.mxu0 %vm1529_vm3, %v1839_v8  ;;  %v2118_v30 = vrot.slane %v2116_v58, 2  ;;  %v2111_v10 = vsel %vm2040_vm5, %v2101_v62, %v2110_v2  ;;  %v2124_v3 = vrot.slane %v2122_v9, 1  ;;  %v1843_v8 = vsel %vm1834_vm6, %v1840_v33, %v1842_v23 }
 0x178   :  { %6580 = vmatprep.mubr.msk.bf16.mxu0 %vm1529_vm3, %v1841_v48  ;;  %6621 = vmatpush3.bf16.msra.mxu0 %v2376_v50  ;;  %v8966_v36 = vpack.c.bf16 %v8956_v16, %v1421_v39  ;;  %v2102_v39 = vsel %vm2040_vm5, %v2092_v34, %v2101_v62  ;;  %v2127_v50 = vrot.slane %v10807_v38, 2  ;;  %v1853_v34 = vsel %vm1834_vm6, %v1850_v11, %v1852_v19 }
 0x179   :  { %6622 = vmatprep.subr.bf16.mxu0 %v7244_v28  ;;  %6647 = vmatpush3.bf16.msra.mxu1 %v7246_v27  ;;  %v1845_v48 = vsel %vm1834_vm6, %v1842_v23, %v1844_v1  ;;  %v1846_v51 = vrot.slane %v8609_v42, 1  ;;  %v1848_v33 = vrot.slane %v8717_v12, 1 }
 0x17a   :  { %7184 = vmatprep.subr.msk.bf16.mxu1 %vm1560_vm0, %v8979_v57  ;;  %v2128_v62 = vor.u32 %v2127_v50, %v2124_v3  ;;  %v10961_v3 = vshrl.u32 %v10955_v20, 16 }
 0x17b   :  { %v1847_v50 = vsel %vm1834_vm6, %v1844_v1, %v1846_v51  ;;  %v2521_v1 = vrot.slane %v2062_v6, 3  ;;  %v2950_v6 = vrot.slane %v1501_v35, 3  ;;  %v2532_v35 = vrot.slane %v2086_v26, 2 }
 0x17c   :  { %6609 = vmatmul.mubr.msk.bf16.gmra.mxu1 %vm1529_vm3, %v2102_v39  ;;  %6623 = vmatpush3.bf16.msra.mxu0 %v7244_v28  ;;  %v2119_v28 = vor.u32 %v2118_v30, %v2115_v45  ;;  %v10960_v45 = vshll.u32 %v10955_v20, 16  ;;  %v2533_v26 = vrot.slane %v2089_v43, 3 }
 0x17d   :  { %6612 = vmatprep.mubr.msk.bf16.mxu1 %vm1529_vm3, %v2111_v10  ;;  %7183 = vmatprep.subr.msk.bf16.mxu0 %vm1560_vm0, %v8971_v14  ;;  %v2516_v10 = vrot.slane %v2050_v4, 2  ;;  %v1849_v4 = vsel %vm1834_vm6, %v1846_v51, %v1848_v33  ;;  %v2524_v51 = vrot.slane %v2068_v54, 2 }
 0x17e   :  { %v2120_v27 = vsel %vm2040_vm5, %v2110_v2, %v2119_v28  ;;  %v2129_v39 = vsel %vm2040_vm5, %v2119_v28, %v2128_v62  ;;  %v2935_v30 = vrot.slane %v10960_v45, 4  ;;  %v2934_v2 = vrot.slane %v10961_v3, 3 }
 0x17f   :  { %6581 = vmatmul.mubr.msk.bf16.gmra.mxu0 %vm1529_vm3, %v1843_v8  ;;  %v10959_v8 = vshll.u32 %v8205_v15, 16  ;;  %v10963_v28 = vshll.u32 %v8070_v46, 16  ;;  %v2520_v45 = vrot.slane %v2059_v18, 2 }
 0x180   :  { %6584 = vmatprep.mubr.msk.bf16.mxu0 %vm1529_vm3, %v1845_v48  ;;  %v10962_v48 = vshrl.u32 %v8070_v46, 16  ;;  %v9031_v3 = vor.u32 %v2935_v30, %v2934_v2  ;;  %v2317_v30 = vrot.slane %v8070_v46, 2  ;;  %v2529_v2 = vrot.slane %v2080_v13, 3 }
 0x181   :  { %v2517_v23 = vrot.slane %v10959_v8, 3  ;;  %v2514_v38 = vrot.slane %v10963_v28, 3  ;;  %v2522_v18 = vor.u32 %v2521_v1, %v2520_v45  ;;  %v3011_v46 = vsel %vm1560_vm0, %v8979_v57, 0 }
 0x182   :  { %v2959_v13 = vrot.slane %v1513_v32, 4  ;;  %v2963_v28 = vshrl.u32 %v8966_v36, 16 }
 0x183   :  { %v2518_v8 = vor.u32 %v2517_v23, %v2516_v10  ;;  %v2525_v10 = vrot.slane %v2071_v24, 3  ;;  %v2318_v24 = vrot.slane %v8205_v15, 2 }
 0x184   :  { %6613 = vmatmul.mubr.msk.bf16.gmra.mxu1 %vm1529_vm3, %v2120_v27  ;;  %v2513_v27 = vrot.slane %v10962_v48, 2  ;;  %v2965_v43 = vrot.slane %v2963_v28, 3  ;;  %v10965_v28 = vshll.u32 %v8935_v55, 16 }
 0x185   :  { %6616 = vmatprep.mubr.msk.bf16.mxu1 %vm1529_vm3, %v2129_v39  ;;  %v2526_v54 = vor.u32 %v2525_v10, %v2524_v51  ;;  %v2319_v51 = vsel %vm2316_vm8, %v2317_v30, %v2318_v24  ;;  %v2322_v30 = vrot.slane %v8382_v7, 2 }
 0x186   :  { %v2515_v39 = vor.u32 %v2514_v38, %v2513_v27  ;;  %v1851_v38 = vsel %vm1834_vm6, %v1848_v33, %v1850_v11  ;;  %v2954_v11 = vrot.slane %v1509_v53, 3  ;;  %v2528_v33 = vrot.slane %v2077_v5, 2  ;;  %v7250_v53 = vld [vmem:[%s10707_s2 + $0x54] sm:$0xff]  }
 0x187   :  { %6585 = vmatmul.mubr.msk.bf16.gmra.mxu0 %vm1529_vm3, %v1847_v50  ;;  %v2523_v50 = vsel %vm2512_vm7, %v2518_v8, %v2522_v18  ;;  %v2958_v5 = vrot.slane %v1517_v22, 3  ;;  %v2527_v57 = vsel %vm2512_vm7, %v2522_v18, %v2526_v54  ;;  %v2744_v22 = vrot.slane %v8818_v47, 3 }
 0x188   :  { %6588 = vmatprep.mubr.msk.bf16.mxu0 %vm1529_vm3, %v1849_v4  ;;  %v2519_v48 = vsel %vm2512_vm7, %v2515_v39, %v2518_v8  ;;  %v2966_v8 = vshll.u32 %v8966_v36, 16  ;;  %v2746_v39 = vrot.slane %v8882_v29, 3  ;;  %v2530_v10 = vor.u32 %v2529_v2, %v2528_v33 }
 0x189   :  { %v2960_v4 = vor.u32 %v2959_v13, %v2958_v5  ;;  %v2534_v18 = vor.u32 %v2533_v26, %v2532_v35  ;;  %v2320_v29 = vrot.slane %v8279_v25, 2  ;;  %v2537_v33 = vrot.slane %v2098_v41, 3 }
 0x18a   :  { %v2968_v1 = vrot.slane %v2966_v8, 4  ;;  %v2540_v35 = vrot.slane %v2104_v31, 2  ;;  %v2544_v5 = vrot.slane %v2113_v60, 2  ;;  %v2545_v13 = vrot.slane %v2116_v58, 3 }
 0x18b   :  { %v2535_v2 = vsel %vm2512_vm7, %v2530_v10, %v2534_v18  ;;  %v2321_v41 = vsel %vm2316_vm8, %v2318_v24, %v2320_v29  ;;  %v2326_v24 = vrot.slane %v10951_v37, 2 }
 0x18c   :  { %6617 = vmatmul.mubr.msk.bf16.gmra.mxu1 %vm1529_vm3, %v2128_v62  ;;  %v10964_v62 = vshll.u32 %v8717_v12, 16 }
 0x18d   :  { %6648 = vmatprep.mubr.msk.bf16.mxu1 %vm1529_vm3, %v2519_v48  ;;  %v2748_v48 = vrot.slane %v8966_v36, 3 }
 0x18e   :  { %v2951_v23 = vrot.slane %v10964_v62, 4 }
 0x18f   :  { %6589 = vmatmul.mubr.msk.bf16.gmra.mxu0 %vm1529_vm3, %v1851_v38  ;;  %v9095_v38 = vsel %vm534_vm2, %v2744_v22, %v2746_v39  ;;  %v9103_v62 = vsel %vm534_vm2, %v2746_v39, %v2748_v48  ;;  %v2330_v39 = vrot.slane %v8753_v49, 2 }
 0x190   :  { %6592 = vmatprep.mubr.msk.bf16.mxu0 %vm1529_vm3, %v1853_v34  ;;  %v2955_v34 = vrot.slane %v1505_v44, 4  ;;  %v9071_v27 = vor.u32 %v2951_v23, %v2950_v6  ;;  %v9098_v6 = vor.u32 %v2968_v1, %v2965_v43  ;;  %v2531_v23 = vsel %vm2512_vm7, %v2526_v54, %v2530_v10 }
 0x191   :  { %v2790_v54 = vsel %vm1560_vm0, %v8971_v14, 0  ;;  %v2324_v14 = vrot.slane %v8459_v56, 2 }
 0x192   :  { %v2956_v44 = vor.u32 %v2955_v34, %v2954_v11  ;;  %v2536_v11 = vrot.slane %v2095_v63, 2  ;;  %v2541_v34 = vrot.slane %v2107_v61, 3  ;;  %v7248_v63 = vld [vmem:[%s10707_s2 + $0x48] sm:$0xff]  }
 0x193   :  { %v9135_v61 = vld [vmem:[%s10707_s2 + $0x68] ss:$0 sps:$4 sm:$0xff]   ;;  %v2325_v60 = vsel %vm2316_vm8, %v2322_v30, %v2324_v14  ;;  %v2327_v58 = vsel %vm2316_vm8, %v2324_v14, %v2326_v24  ;;  %v10971_v14 = vshll.u32 %v10957_v40, 16 }
 0x194   :  { %6649 = vmatmul.mubr.msk.bf16.vlgmr.msra.gmra.mxu1 %vm1529_vm3, %v2523_v50  ;;  %v9080_v32 = vsel %vm2926_vm9, %v9071_v27, %v2956_v44  ;;  %v9085_v45 = vsel %vm2926_vm9, %v2956_v44, %v2960_v4  ;;  %v2323_v50 = vsel %vm2316_vm8, %v2320_v29, %v2322_v30  ;;  %v2542_v31 = vor.u32 %v2541_v34, %v2540_v35 }
 0x195   :  { %6652 = vmatprep.mubr.msk.bf16.mxu1 %vm1529_vm3, %v2527_v57  ;;  %6693 = vmatpush3.bf16.msra.mxu1 %v3011_v46  ;;  %v2538_v46 = vor.u32 %v2537_v33, %v2536_v11  ;;  %v2548_v44 = vrot.slane %v2122_v9, 2  ;;  %v2549_v57 = vrot.slane %v10965_v28, 3  ;;  %v2328_v9 = vrot.slane %v8660_v0, 2 }
 0x196   :  { %6694 = vmatprep.subr.bf16.mxu1 %v7250_v53  ;;  %v10969_v33 = vshrl.u32 %v10952_v21, 16  ;;  %v10972_v28 = vshrl.u32 %v10958_v17, 16 }
 0x197   :  { %6593 = vmatmul.mubr.msk.bf16.gmra.mxu0 %vm1529_vm3, %v1852_v19  ;;  %v9108_v19 = vsel %vm2926_vm9, %v2960_v4, %v9098_v6  ;;  %v2543_v26 = vsel %vm2512_vm7, %v2538_v46, %v2542_v31  ;;  %v2546_v4 = vor.u32 %v2545_v13, %v2544_v5  ;;  %v2550_v8 = vor.u32 %v2549_v57, %v2548_v44 }
 0x198   :  { %6624 = vmatprep.mubr.msk.bf16.mxu0 %vm1529_vm3, %v2319_v51  ;;  %v10966_v51 = vshrl.u32 %v10954_v52, 16  ;;  %v2329_v11 = vsel %vm2316_vm8, %v2326_v24, %v2328_v9  ;;  %v2331_v35 = vsel %vm2316_vm8, %v2328_v9, %v2330_v39  ;;  %v2732_v44 = vrot.slane %v10954_v52, 3 }
 0x199   :  { %6695 = vmatpush3.bf16.msra.mxu1 %v7250_v53  ;;  %v2539_v53 = vsel %vm2512_vm7, %v2534_v18, %v2538_v46  ;;  %v2547_v43 = vsel %vm2512_vm7, %v2542_v31, %v2546_v4  ;;  %v2551_v1 = vsel %vm2512_vm7, %v2546_v4, %v2550_v8  ;;  %v10967_v18 = vshll.u32 %v10954_v52, 16 }
 0x19a   :  { %v2930_v10 = vrot.slane %v10966_v51, 3  ;;  %v10970_v46 = vshrl.u32 %v10957_v40, 16  ;;  %v2942_v57 = vrot.slane %v10972_v28, 3  ;;  %v2731_v52 = vrot.slane %v10952_v21, 3 }
 0x19b   :  { %v2931_v29 = vrot.slane %v10967_v18, 4 }
 0x19c   :  { %6653 = vmatmul.mubr.msk.bf16.gmra.mxu1 %vm1529_vm3, %v2531_v23  ;;  %v10968_v23 = vshll.u32 %v10952_v21, 16  ;;  %v2938_v31 = vrot.slane %v10970_v46, 3  ;;  %v2733_v51 = vsel %vm534_vm2, %v2731_v52, %v2732_v44  ;;  %v2738_v46 = vrot.slane %v10958_v17, 3 }
 0x19d   :  { %6656 = vmatprep.mubr.msk.bf16.mxu1 %vm1529_vm3, %v2535_v2  ;;  %v2927_v2 = vrot.slane %v10969_v33, 3  ;;  %v2932_v34 = vor.u32 %v2931_v29, %v2930_v10 }
 0x19e   :  { %v2928_v30 = vrot.slane %v10968_v23, 4 }
 0x19f   :  { %6625 = vmatmul.mubr.msk.bf16.vlgmr.msra.gmra.mxu0 %vm1529_vm3, %v2321_v41  ;;  %v2334_v41 = vrot.slane %v8935_v55, 2 }
 0x1a0   :  { %6628 = vmatprep.mubr.msk.bf16.mxu0 %vm1529_vm3, %v2323_v50  ;;  %6669 = vmatpush3.bf16.msra.mxu0 %v2790_v54  ;;  %v2929_v54 = vor.u32 %v2928_v30, %v2927_v2  ;;  %v2734_v30 = vrot.slane %v10955_v20, 3  ;;  %v2736_v2 = vrot.slane %v10957_v40, 3  ;;  %v7252_v20 = vld [vmem:[%s10707_s2 + $0x60] sm:$0xff]  }
 0x1a1   :  { %6670 = vmatprep.subr.bf16.mxu0 %v7248_v63 }
 0x1a2   :  { %v2933_v50 = vsel %vm2926_vm9, %v2929_v54, %v2932_v34  ;;  %v2735_v40 = vsel %vm534_vm2, %v2732_v44, %v2734_v30 }
 0x1a4   :  { %6657 = vmatmul.mubr.msk.bf16.gmra.mxu1 %vm1529_vm3, %v2539_v53  ;;  %6671 = vmatpush3.bf16.msra.mxu0 %v7248_v63  ;;  %v2332_v63 = vrot.slane %v8863_v59, 2  ;;  %v2939_v53 = vrot.slane %v10971_v14, 4  ;;  %v2739_v14 = vsel %vm534_vm2, %v2736_v2, %v2738_v46 }
 0x1a5   :  { %6660 = vmatprep.mubr.msk.bf16.mxu1 %vm1529_vm3, %v2543_v26  ;;  %7185 = vmatprep.subr.msk.bf16.mxu0 %vm1560_vm0, %v9135_v61  ;;  %v2937_v26 = vsel %vm2926_vm9, %v2932_v34, %v9031_v3 }
 0x1a6   :  { %v2333_v24 = vsel %vm2316_vm8, %v2330_v39, %v2332_v63  ;;  %v2335_v5 = vsel %vm2316_vm8, %v2332_v63, %v2334_v41  ;;  %v2940_v13 = vor.u32 %v2939_v53, %v2938_v31  ;;  %v3179_v63 = vsel %vm1560_vm0, %v9135_v61, 0 }
 0x1a7   :  { %6629 = vmatmul.mubr.msk.bf16.gmra.mxu0 %vm1529_vm3, %v2325_v60  ;;  %v10973_v60 = vshll.u32 %v10958_v17, 16  ;;  %v2740_v31 = vrot.slane %v8609_v42, 3  ;;  %v2742_v17 = vrot.slane %v8717_v12, 3 }
 0x1a8   :  { %6632 = vmatprep.mubr.msk.bf16.mxu0 %vm1529_vm3, %v2327_v58  ;;  %v2941_v4 = vsel %vm2926_vm9, %v9031_v3, %v2940_v13 }
 0x1a9   :  { %v2943_v58 = vrot.slane %v10973_v60, 4  ;;  %v2741_v53 = vsel %vm534_vm2, %v2738_v46, %v2740_v31 }
 0x1ab   :  { %v2944_v10 = vor.u32 %v2943_v58, %v2942_v57 }
 0x1ac   :  { %6661 = vmatmul.mubr.msk.bf16.gmra.mxu1 %vm1529_vm3, %v2547_v43  ;;  %v10975_v43 = vshll.u32 %v8609_v42, 16 }
 0x1ad   :  { %6664 = vmatprep.mubr.msk.bf16.mxu1 %vm1529_vm3, %v2551_v1  ;;  %v6554_v1 = vpop.f32.mrf.mxu1  ;;  %v2945_v33 = vsel %vm2926_vm9, %v2940_v13, %v2944_v10 }
 0x1ae   :  { %v2947_v39 = vrot.slane %v10975_v43, 4 }
 0x1af   :  { %6633 = vmatmul.mubr.msk.bf16.gmra.mxu0 %vm1529_vm3, %v2329_v11  ;;  %v1743_v3 = vpop.f32.mrf.mxu1 }
 0x1b0   :  { %6636 = vmatprep.mubr.msk.bf16.mxu0 %vm1529_vm3, %v2331_v35 }
 0x1b1   :  { %v6555_v34 = vpop.f32.mrf.mxu1 }
 0x1b4   :  { %6665 = vmatmul.mubr.msk.bf16.gmra.mxu1 %vm1529_vm3, %v2550_v8  ;;  %v10974_v8 = vshrl.u32 %v8609_v42, 16  ;;  %v2743_v42 = vsel %vm534_vm2, %v2740_v31, %v2742_v17 }
 0x1b5   :  { %6696 = vmatprep.mubr.msk.bf16.mxu1 %vm1529_vm3, %v2933_v50  ;;  %v2737_v50 = vsel %vm534_vm2, %v2734_v30, %v2736_v2 }
 0x1b6   :  { %v2946_v9 = vrot.slane %v10974_v8, 3 }
 0x1b7   :  { %6637 = vmatmul.mubr.msk.bf16.gmra.mxu0 %vm1529_vm3, %v2333_v24 }
 0x1b8   :  { %6640 = vmatprep.mubr.msk.bf16.mxu0 %vm1529_vm3, %v2335_v5  ;;  %v2948_v18 = vor.u32 %v2947_v39, %v2946_v9  ;;  %v6530_v29 = vpop.f32.mrf.mxu0  ;;  %v10808_v39 = vmov 0.0  }
 0x1b9   :  { %v9207_v23 = vadd.f32 %v6554_v1, %v6530_v29  ;;  %6740 = vmatprep.subr.bf16.mxu1 %v10808_v39 }
 0x1ba   :  { %v1598_v11 = vpop.f32.mrf.mxu0  ;;  %v2949_v35 = vsel %vm2926_vm9, %v2944_v10, %v2948_v18  ;;  %v2953_v61 = vsel %vm2926_vm9, %v2948_v18, %v9071_v27  ;;  %v2745_v27 = vsel %vm534_vm2, %v2742_v17, %v2744_v22 }
 0x1bb   :  { %v9212_v21 = vadd.f32 %v1743_v3, %v1598_v11 }
 0x1bc   :  { %6697 = vmatmul.mubr.msk.bf16.vlgmr.msra.gmra.mxu1 %vm1529_vm3, %v2937_v26  ;;  %v6531_v54 = vpop.f32.mrf.mxu0 }
 0x1bd   :  { %6700 = vmatprep.mubr.msk.bf16.mxu1 %vm1529_vm3, %v2941_v4 }
 0x1bf   :  { %6641 = vmatmul.mubr.msk.bf16.gmra.mxu0 %vm1529_vm3, %v2334_v41  ;;  %v9222_v41 = vadd.f32 %v6555_v34, %v6531_v54 }
 0x1c0   :  { %6672 = vmatprep.mubr.msk.bf16.mxu0 %vm1529_vm3, %v2733_v51  ;;  %v7253_v51 = vld [vmem:[%s10710_s3 + $0x24] ss:$0 sps:$4 sm:$0xff]  }
 0x1c1   :  { %v3549_v3 = vsel %vm1560_vm0, %v7253_v51, 0 }
 0x1c2   :  { %6741 = vmatpush3.bf16.msra.mxu1 %v3549_v3 }
 0x1c3   :  { %6742 = vmatprep.subr.bf16.mxu1 %v10808_v39 }
 0x1c4   :  { %6701 = vmatmul.mubr.msk.bf16.gmra.mxu1 %vm1529_vm3, %v2945_v33 }
 0x1c5   :  { %6704 = vmatprep.mubr.msk.bf16.mxu1 %vm1529_vm3, %v2949_v35 }
 0x1c7   :  { %6673 = vmatmul.mubr.msk.bf16.vlgmr.msra.gmra.mxu0 %vm1529_vm3, %v2735_v40 }
 0x1c8   :  { %6676 = vmatprep.mubr.msk.bf16.mxu0 %vm1529_vm3, %v2737_v50  ;;  %6717 = vmatpush3.bf16.msra.mxu0 %v3179_v63 }
 0x1c9   :  { %6718 = vmatprep.subr.bf16.mxu0 %v7252_v20 }
 0x1cc   :  { %6705 = vmatmul.mubr.msk.bf16.gmra.mxu1 %vm1529_vm3, %v2953_v61  ;;  %6719 = vmatpush3.bf16.msra.mxu0 %v7252_v20 }
 0x1cd   :  { %6708 = vmatprep.mubr.msk.bf16.mxu1 %vm1529_vm3, %v9080_v32  ;;  %v9250_v32 = vpop.f32.mrf.mxu1  ;;  %6774 = vmatprep.subr.bf16.mxu0 %v10808_v39 }
 0x1cf   :  { %6677 = vmatmul.mubr.msk.bf16.gmra.mxu0 %vm1529_vm3, %v2739_v14  ;;  %v6558_v12 = vpop.f32.mrf.mxu1 }
 0x1d0   :  { %6680 = vmatprep.mubr.msk.bf16.mxu0 %vm1529_vm3, %v2741_v53 }
 0x1d4   :  { %6709 = vmatmul.mubr.msk.bf16.gmra.mxu1 %vm1529_vm3, %v9085_v45  ;;  %v9254_v45 = vpop.f32.mrf.mxu0 }
 0x1d5   :  { %6712 = vmatprep.mubr.msk.bf16.mxu1 %vm1529_vm3, %v9108_v19  ;;  %v1759_v19 = vpop.f32.mrf.mxu1 }
 0x1d7   :  { %6681 = vmatmul.mubr.msk.bf16.gmra.mxu0 %vm1529_vm3, %v2743_v42  ;;  %v6559_v13 = vpop.f32.mrf.mxu1 }
 0x1d8   :  { %6684 = vmatprep.mubr.msk.bf16.mxu0 %vm1529_vm3, %v2745_v27 }
 0x1db   :  { %v6534_v47 = vpop.f32.mrf.mxu0 }
 0x1dc   :  { %6713 = vmatmul.mubr.msk.bf16.gmra.mxu1 %vm1529_vm3, %v9098_v6  ;;  %v9260_v24 = vadd.f32 %v6558_v12, %v6534_v47 }
 0x1dd   :  { %v1614_v22 = vpop.f32.mrf.mxu0  ;;  %6746 = vmatprep.mubr.msk.bf16.mxu1 %vm7310_vm10, %v10808_v39 }
 0x1de   :  { %v9262_v5 = vadd.f32 %v1759_v19, %v1614_v22 }
 0x1df   :  { %6685 = vmatmul.mubr.msk.bf16.gmra.mxu0 %vm1529_vm3, %v9095_v38  ;;  %v6535_v26 = vpop.f32.mrf.mxu0  ;;  %v9279_v38 = vpop.f32.mrf.mxu1 }
 0x1e0   :  { %6688 = vmatprep.mubr.msk.bf16.mxu0 %vm1529_vm3, %v9103_v62  ;;  %v9264_v44 = vadd.f32 %v6559_v13, %v6535_v26 }
 0x1e2   :  { %v6562_v36 = vpop.f32.mrf.mxu1 }
 0x1e7   :  { %6689 = vmatmul.mubr.msk.bf16.gmra.mxu0 %vm1529_vm3, %v2748_v48 }
 0x1e8   :  { %6720 = vmatprep.mubr.msk.bf16.mxu0 %vm1529_vm3, %v8205_v15  ;;  %v9285_v15 = vpop.f32.mrf.mxu0 }
 0x1ef   :  { %6721 = vmatmul.mubr.msk.bf16.vlgmr.msra.gmra.mxu0 %vm1529_vm3, %v8279_v25  ;;  %v1775_v25 = vpop.f32.mrf.mxu1 }
 0x1f0   :  { %6724 = vmatprep.mubr.msk.bf16.mxu0 %vm1529_vm3, %v8382_v7 }
 0x1f7   :  { %6725 = vmatmul.mubr.msk.bf16.gmra.mxu0 %vm1529_vm3, %v8459_v56 }
 0x1f8   :  { %6728 = vmatprep.mubr.msk.bf16.mxu0 %vm1529_vm3, %v10951_v37  ;;  %v6563_v37 = vpop.f32.mrf.mxu1 }
 0x1fa   :  { %v9300_v28 = vpop.f32.mrf.mxu1 }
 0x1ff   :  { %6729 = vmatmul.mubr.msk.bf16.gmra.mxu0 %vm1529_vm3, %v8660_v0 }
 0x200   :  { %6732 = vmatprep.mubr.msk.bf16.mxu0 %vm1529_vm3, %v8753_v49  ;;  %v3144_v49 = vpack.c.bf16 %v8956_v16, %v8956_v16 }
 0x201   :  { %v6538_v48 = vpop.f32.mrf.mxu0 }
 0x202   :  { %v9287_v7 = vadd.f32 %v6562_v36, %v6538_v48 }
 0x203   :  { %v1630_v6 = vpop.f32.mrf.mxu0 }
 0x204   :  { %v9289_v56 = vadd.f32 %v1775_v25, %v1630_v6 }
 0x205   :  { %v6539_v62 = vpop.f32.mrf.mxu0 }
 0x206   :  { %v9295_v0 = vadd.f32 %v6563_v37, %v6539_v62 }
 0x207   :  { %6733 = vmatmul.mubr.msk.bf16.gmra.mxu0 %vm1529_vm3, %v8863_v59  ;;  %v9302_v4 = vpop.f32.mrf.mxu0 }
 0x208   :  { %6736 = vmatprep.mubr.msk.bf16.mxu0 %vm1529_vm3, %v8935_v55  ;;  %v6566_v57 = vpop.f32.mrf.mxu1 }
 0x20a   :  { %v1791_v60 = vpop.f32.mrf.mxu1 }
 0x20c   :  { %v6567_v58 = vpop.f32.mrf.mxu1 }
 0x20e   :  { %v9304_v59 = vpop.f32.mrf.mxu1 }
 0x20f   :  { %6737 = vmatmul.mubr.msk.bf16.gmra.mxu0 %vm1529_vm3, %v3144_v49 }
 0x210   :  { %6780 = vmatprep.mubr.msk.bf16.mxu0 %vm7310_vm10, %v10808_v39 }
 0x223   :  { %v6542_v8 = vpop.f32.mrf.mxu0 }
 0x224   :  { %v9306_v9 = vadd.f32 %v6566_v57, %v6542_v8  ;;  %v6570_v55 = vpop.f32.mrf.mxu1 }
 0x225   :  { %v1646_v43 = vpop.f32.mrf.mxu0 }
 0x226   :  { %v9310_v16 = vadd.f32 %v1791_v60, %v1646_v43  ;;  %v1807_v1 = vpop.f32.mrf.mxu1 }
 0x227   :  { %v6543_v52 = vpop.f32.mrf.mxu0 }
 0x228   :  { %v9315_v10 = vadd.f32 %v6567_v58, %v6543_v52  ;;  %v6571_v18 = vpop.f32.mrf.mxu1 }
 0x229   :  { %v9321_v11 = vpop.f32.mrf.mxu0 }
 0x22a   :  { %v9318_v29 = vpop.f32.mrf.mxu1 }
 0x22c   :  { %v6602_v30 = vpop.f32.mrf.mxu1 }
 0x22e   :  { %v2206_v33 = vpop.f32.mrf.mxu1 }
 0x22f   :  { %v6546_v2 = vpop.f32.mrf.mxu0 }
 0x230   :  { %v9323_v35 = vadd.f32 %v6570_v55, %v6546_v2  ;;  %v6603_v34 = vpop.f32.mrf.mxu1 }
 0x231   :  { %v1662_v54 = vpop.f32.mrf.mxu0 }
 0x232   :  { %v9325_v63 = vadd.f32 %v1807_v1, %v1662_v54  ;;  %v9327_v20 = vpop.f32.mrf.mxu1 }
 0x233   :  { %v6547_v40 = vpop.f32.mrf.mxu0 }
 0x234   :  { %v6606_v50 = vpop.f32.mrf.mxu1 }
 0x235   :  { %v9329_v46 = vpop.f32.mrf.mxu0 }
 0x236   :  { %v2222_v61 = vpop.f32.mrf.mxu1 }
 0x237   :  { %v6578_v31 = vpop.f32.mrf.mxu0 }
 0x238   :  { %v2010_v14 = vadd.f32 %v6578_v31, %v9207_v23  ;;  %v6607_v53 = vpop.f32.mrf.mxu1  ;;  %v7254_v23 = vld [vmem:[%s10710_s3 + $0x1c] sm:$0xff]   ;;  %v7256_v31 = vld [vmem:[%s10710_s3 + $0x8] sm:$0xff]  }
 0x239   :  { %v1930_v17 = vpop.f32.mrf.mxu0  ;;  %6743 = vmatpush3.bf16.msra.mxu1 %v7254_v23 }
 0x23a   :  { %v2008_v42 = vadd.f32 %v1930_v17, %v9212_v21  ;;  %v9333_v27 = vpop.f32.mrf.mxu1  ;;  %v9335_v12 = vadd.f32 %v6602_v30, %v2010_v14  ;;  %6744 = vmatprep.subr.bf16.mxu1 %v10808_v39  ;;  %v7257_v14 = vld [vmem:[%s10710_s3 + $0x14] sm:$0xff]  }
 0x23b   :  { %v6579_v19 = vpop.f32.mrf.mxu0 }
 0x23c   :  { %v2011_v47 = vadd.f32 %v6579_v19, %v9222_v41  ;;  %v6610_v22 = vpop.f32.mrf.mxu1  ;;  %v9338_v13 = vadd.f32 %v2206_v33, %v2008_v42  ;;  %v7258_v42 = vld [vmem:[%s10710_s3] sm:$0xff]  }
 0x23d   :  { %v9340_v26 = vpop.f32.mrf.mxu0  ;;  %6745 = vmatpush3.bf16.msra.mxu1 %v7257_v14 }
 0x23e   :  { %v2238_v36 = vpop.f32.mrf.mxu1  ;;  %v9342_v25 = vadd.f32 %v6603_v34, %v2011_v47  ;;  %6808 = vmatprep.subr.bf16.mxu1 %v10808_v39 }
 0x23f   :  { %v6582_v21 = vpop.f32.mrf.mxu0 }
 0x240   :  { %v2014_v48 = vadd.f32 %v6582_v21, %v9260_v24  ;;  %v6611_v6 = vpop.f32.mrf.mxu1 }
 0x241   :  { %v1946_v37 = vpop.f32.mrf.mxu0 }
 0x242   :  { %v2012_v41 = vadd.f32 %v1946_v37, %v9262_v5  ;;  %v9350_v62 = vpop.f32.mrf.mxu1  ;;  %v9352_v49 = vadd.f32 %v6606_v50, %v2014_v48  ;;  %v7255_v5 = vld [vmem:[%s10710_s3 + $0x10] ss:$0 sps:$4 sm:$0xff]  }
 0x243   :  { %v6583_v57 = vpop.f32.mrf.mxu0  ;;  %v3677_v33 = vsel %vm1560_vm0, %v7255_v5, 0 }
 0x244   :  { %v2015_v60 = vadd.f32 %v6583_v57, %v9264_v44  ;;  %v6614_v58 = vpop.f32.mrf.mxu1  ;;  %v9355_v8 = vadd.f32 %v2222_v61, %v2012_v41  ;;  %6775 = vmatpush3.bf16.msra.mxu0 %v3677_v33 }
 0x245   :  { %v9357_v55 = vpop.f32.mrf.mxu0  ;;  %6776 = vmatprep.subr.bf16.mxu0 %v10808_v39 }
 0x246   :  { %v2254_v24 = vpop.f32.mrf.mxu1  ;;  %v9359_v43 = vadd.f32 %v6607_v53, %v2015_v60 }
 0x247   :  { %v6586_v1 = vpop.f32.mrf.mxu0 }
 0x248   :  { %v2018_v52 = vadd.f32 %v6586_v1, %v9287_v7  ;;  %v6615_v51 = vpop.f32.mrf.mxu1  ;;  %6777 = vmatpush3.bf16.msra.mxu0 %v7256_v31 }
 0x249   :  { %v1962_v18 = vpop.f32.mrf.mxu0  ;;  %6778 = vmatprep.subr.bf16.mxu0 %v10808_v39 }
 0x24a   :  { %v2016_v3 = vadd.f32 %v1962_v18, %v9289_v56  ;;  %v9366_v44 = vpop.f32.mrf.mxu1  ;;  %v9368_v30 = vadd.f32 %v6610_v22, %v2018_v52 }
 0x24b   :  { %v6587_v2 = vpop.f32.mrf.mxu0 }
 0x24c   :  { %v2019_v34 = vadd.f32 %v6587_v2, %v9295_v0  ;;  %v6618_v54 = vpop.f32.mrf.mxu1  ;;  %v9372_v7 = vadd.f32 %v2238_v36, %v2016_v3  ;;  %6779 = vmatpush3.bf16.msra.mxu0 %v7258_v42 }
 0x24d   :  { %v9375_v40 = vpop.f32.mrf.mxu0  ;;  %6842 = vmatprep.subr.bf16.mxu0 %v10808_v39 }
 0x24e   :  { %v2270_v50 = vpop.f32.mrf.mxu1  ;;  %v9377_v61 = vadd.f32 %v6611_v6, %v2019_v34 }
 0x24f   :  { %v6590_v56 = vpop.f32.mrf.mxu0 }
 0x250   :  { %v2022_v0 = vadd.f32 %v6590_v56, %v9306_v9  ;;  %v6619_v53 = vpop.f32.mrf.mxu1 }
 0x251   :  { %v1978_v17 = vpop.f32.mrf.mxu0 }
 0x252   :  { %v2020_v19 = vadd.f32 %v1978_v17, %v9310_v16  ;;  %v9390_v47 = vpop.f32.mrf.mxu1  ;;  %v9392_v22 = vadd.f32 %v6614_v58, %v2022_v0 }
 0x253   :  { %10976 = vst [vmem:[#allocation3_spill] sm:$0xff] %v9390_v47  ;;  %v6591_v36 = vpop.f32.mrf.mxu0 }
 0x254   :  { %v2023_v9 = vadd.f32 %v6591_v36, %v9315_v10  ;;  %v6650_v23 = vpop.f32.mrf.mxu1  ;;  %v9401_v16 = vadd.f32 %v2254_v24, %v2020_v19 }
 0x255   :  { %v9403_v21 = vpop.f32.mrf.mxu0 }
 0x256   :  { %v2628_v48 = vpop.f32.mrf.mxu1  ;;  %v9405_v6 = vadd.f32 %v6615_v51, %v2023_v9 }
 0x257   :  { %v6594_v37 = vpop.f32.mrf.mxu0 }
 0x258   :  { %v2026_v41 = vadd.f32 %v6594_v37, %v9323_v35  ;;  %v6651_v57 = vpop.f32.mrf.mxu1 }
 0x259   :  { %v1994_v60 = vpop.f32.mrf.mxu0 }
 0x25a   :  { %v2024_v58 = vadd.f32 %v1994_v60, %v9325_v63  ;;  %v9410_v1 = vpop.f32.mrf.mxu1  ;;  %v9412_v10 = vadd.f32 %v6618_v54, %v2026_v41 }
 0x25b   :  { %v6595_v24 = vpop.f32.mrf.mxu0 }
 0x25c   :  { %v6654_v52 = vpop.f32.mrf.mxu1  ;;  %v9414_v5 = vadd.f32 %v2270_v50, %v2024_v58 }
 0x25d   :  { %v9416_v18 = vpop.f32.mrf.mxu0 }
 0x25e   :  { %v2644_v51 = vpop.f32.mrf.mxu1 }
 0x25f   :  { %v6626_v3 = vpop.f32.mrf.mxu0 }
 0x260   :  { %v2492_v33 = vadd.f32 %v6626_v3, %v9335_v12  ;;  %v6655_v2 = vpop.f32.mrf.mxu1 }
 0x261   :  { %v2412_v35 = vpop.f32.mrf.mxu0 }
 0x262   :  { %v2490_v34 = vadd.f32 %v2412_v35, %v9338_v13  ;;  %v9420_v56 = vpop.f32.mrf.mxu1  ;;  %v9422_v63 = vadd.f32 %v6650_v23, %v2492_v33 }
 0x263   :  { %10977 = vst [vmem:[#allocation4_spill] sm:$0xff] %v9420_v56  ;;  %v6627_v54 = vpop.f32.mrf.mxu0 }
 0x264   :  { %v2493_v31 = vadd.f32 %v6627_v54, %v9342_v25  ;;  %v6658_v14 = vpop.f32.mrf.mxu1  ;;  %v9425_v50 = vadd.f32 %v2628_v48, %v2490_v34 }
 0x265   :  { %v9427_v0 = vpop.f32.mrf.mxu0 }
 0x266   :  { %v2660_v53 = vpop.f32.mrf.mxu1  ;;  %v9429_v17 = vadd.f32 %v6651_v57, %v2493_v31 }
 0x267   :  { %v6630_v12 = vpop.f32.mrf.mxu0 }
 0x268   :  { %v2496_v42 = vadd.f32 %v6630_v12, %v9352_v49  ;;  %v6659_v19 = vpop.f32.mrf.mxu1 }
 0x269   :  { %v2428_v13 = vpop.f32.mrf.mxu0 }
 0x26a   :  { %v2494_v36 = vadd.f32 %v2428_v13, %v9355_v8  ;;  %v9433_v9 = vpop.f32.mrf.mxu1  ;;  %v2712_v23 = vadd.f32 %v6654_v52, %v2496_v42 }
 0x26b   :  { %10978 = vst [vmem:[#allocation14_spill] sm:$0xff] %v9433_v9  ;;  %v6631_v37 = vpop.f32.mrf.mxu0 }
 0x26c   :  { %v2497_v25 = vadd.f32 %v6631_v37, %v9359_v43  ;;  %v6662_v48 = vpop.f32.mrf.mxu1  ;;  %v9436_v41 = vadd.f32 %v2644_v51, %v2494_v36 }
 0x26d   :  { %v9438_v60 = vpop.f32.mrf.mxu0 }
 0x26e   :  { %v2676_v57 = vpop.f32.mrf.mxu1  ;;  %v2713_v58 = vadd.f32 %v6655_v2, %v2497_v25 }
 0x26f   :  { %v6634_v24 = vpop.f32.mrf.mxu0 }
 0x270   :  { %v2500_v49 = vadd.f32 %v6634_v24, %v9368_v30  ;;  %v6663_v3 = vpop.f32.mrf.mxu1 }
 0x271   :  { %v2444_v33 = vpop.f32.mrf.mxu0 }
 0x272   :  { %v2498_v8 = vadd.f32 %v2444_v33, %v9372_v7  ;;  %v9442_v35 = vpop.f32.mrf.mxu1  ;;  %v2716_v52 = vadd.f32 %v6658_v14, %v2500_v49 }
 0x273   :  { %10979 = vst [vmem:[#allocation17_spill] sm:$0xff] %v9442_v35  ;;  %v6635_v34 = vpop.f32.mrf.mxu0 }
 0x274   :  { %v2501_v43 = vadd.f32 %v6635_v34, %v9377_v61  ;;  %v6666_v54 = vpop.f32.mrf.mxu1  ;;  %v9445_v51 = vadd.f32 %v2660_v53, %v2498_v8 }
 0x275   :  { %v9447_v31 = vpop.f32.mrf.mxu0 }
 0x276   :  { %10980 = vst [vmem:[#allocation13_spill] sm:$0xff] %v9445_v51  ;;  %v2692_v12 = vpop.f32.mrf.mxu1  ;;  %v2717_v2 = vadd.f32 %v6659_v19, %v2501_v43 }
 0x277   :  { %v6638_v42 = vpop.f32.mrf.mxu0 }
 0x278   :  { %v2504_v30 = vadd.f32 %v6638_v42, %v9392_v22  ;;  %v6667_v13 = vpop.f32.mrf.mxu1 }
 0x279   :  { %v2460_v36 = vpop.f32.mrf.mxu0 }
 0x27a   :  { %v2502_v7 = vadd.f32 %v2460_v36, %v9401_v16  ;;  %v9451_v37 = vpop.f32.mrf.mxu1  ;;  %v2720_v14 = vadd.f32 %v6662_v48, %v2504_v30 }
 0x27b   :  { %10981 = vst [vmem:[#allocation24_spill] sm:$0xff] %v9451_v37  ;;  %v6639_v25 = vpop.f32.mrf.mxu0 }
 0x27c   :  { %v2505_v61 = vadd.f32 %v6639_v25, %v9405_v6  ;;  %v9454_v24 = vpop.f32.mrf.mxu1  ;;  %v2718_v53 = vadd.f32 %v2676_v57, %v2502_v7 }
 0x27d   :  { %v9456_v49 = vpop.f32.mrf.mxu0 }
 0x27e   :  { %v9458_v33 = vpop.f32.mrf.mxu1  ;;  %v2721_v19 = vadd.f32 %v6663_v3, %v2505_v61 }
 0x27f   :  { %v6642_v8 = vpop.f32.mrf.mxu0 }
 0x280   :  { %v2508_v22 = vadd.f32 %v6642_v8, %v9412_v10  ;;  %v9461_v34 = vpop.f32.mrf.mxu1 }
 0x281   :  { %v2476_v16 = vpop.f32.mrf.mxu0 }
 0x282   :  { %v2506_v43 = vadd.f32 %v2476_v16, %v9414_v5  ;;  %v9464_v48 = vpop.f32.mrf.mxu1  ;;  %v2724_v42 = vadd.f32 %v6666_v54, %v2508_v22 }
 0x283   :  { %v6643_v6 = vpop.f32.mrf.mxu0 }
 0x284   :  { %v6702_v30 = vpop.f32.mrf.mxu1  ;;  %v2722_v13 = vadd.f32 %v2692_v12, %v2506_v43 }
 0x285   :  { %v9466_v57 = vpop.f32.mrf.mxu0 }
 0x286   :  { %10982 = vst [vmem:[#allocation22_spill] sm:$0xff] %v9466_v57  ;;  %v9468_v36 = vpop.f32.mrf.mxu1 }
 0x287   :  { %10983 = vst [vmem:[#allocation23_spill] sm:$0xff] %v9468_v36  ;;  %v6674_v7 = vpop.f32.mrf.mxu0 }
 0x288   :  { %v6703_v3 = vpop.f32.mrf.mxu1 }
 0x289   :  { %v2826_v25 = vpop.f32.mrf.mxu0 }
 0x28a   :  { %v9470_v61 = vpop.f32.mrf.mxu1 }
 0x28b   :  { %10984 = vst [vmem:[#allocation18_spill] sm:$0xff] %v9470_v61  ;;  %v6675_v10 = vpop.f32.mrf.mxu0 }
 0x28c   :  { %v6706_v8 = vpop.f32.mrf.mxu1 }
 0x28d   :  { %v2829_v39 = vpop.f32.mrf.mxu0 }
 0x28e   :  { %v9472_v37 = vpop.f32.mrf.mxu1 }
 0x28f   :  { %10985 = vst [vmem:[#allocation16_spill] sm:$0xff] %v9472_v37  ;;  %v6678_v5 = vpop.f32.mrf.mxu0 }
 0x290   :  { %v2910_v16 = vadd.f32 %v6678_v5, %v2712_v23  ;;  %v6707_v54 = vpop.f32.mrf.mxu1 }
 0x291   :  { %v9474_v22 = vpop.f32.mrf.mxu0 }
 0x292   :  { %v9476_v12 = vpop.f32.mrf.mxu1  ;;  %v9478_v43 = vadd.f32 %v6702_v30, %v2910_v16 }
 0x293   :  { %10986 = vst [vmem:[#allocation31_spill] sm:$0xff] %v9476_v12  ;;  %v6679_v6 = vpop.f32.mrf.mxu0 }
 0x294   :  { %10987 = vst [vmem:[#allocation15_spill] sm:$0xff] %v9478_v43  ;;  %v2911_v35 = vadd.f32 %v6679_v6, %v2713_v58  ;;  %v6710_v57 = vpop.f32.mrf.mxu1 }
 0x295   :  { %v9480_v9 = vpop.f32.mrf.mxu0 }
 0x296   :  { %10988 = vst [vmem:[#allocation25_spill] sm:$0xff] %v9480_v9  ;;  %v3095_v61 = vpop.f32.mrf.mxu1  ;;  %v9482_v51 = vadd.f32 %v6703_v3, %v2911_v35 }
 0x297   :  { %v6682_v36 = vpop.f32.mrf.mxu0 }
 0x298   :  { %10989 = vst [vmem:[#allocation26_spill] sm:$0xff] %v9482_v51  ;;  %v2914_v56 = vadd.f32 %v6682_v36, %v2716_v52  ;;  %v6711_v37 = vpop.f32.mrf.mxu1  ;;  %v1747_v52 = vadd.f32 %v9250_v32, %v9254_v45 }
 0x299   :  { %v9484_v47 = vpop.f32.mrf.mxu0 }
 0x29a   :  { %10990 = vst [vmem:[#allocation20_spill] sm:$0xff] %v9484_v47  ;;  %v9486_v23 = vpop.f32.mrf.mxu1  ;;  %v9488_v5 = vadd.f32 %v6706_v8, %v2914_v56  ;;  %v2009_v56 = vadd.f32 %v9340_v26, %v1747_v52  ;;  %v1763_v26 = vadd.f32 %v9279_v38, %v9285_v15  ;;  %v7304_v15 = vld [vmem:[%s10709_s8] sm:$0xff] }
 0x29b   :  { %10991 = vst [vmem:[#allocation19_spill] sm:$0xff] %v9486_v23  ;;  %v6683_v12 = vpop.f32.mrf.mxu0 }
 0x29c   :  { %v2915_v30 = vadd.f32 %v6683_v12, %v2717_v2  ;;  %v6714_v16 = vpop.f32.mrf.mxu1 }
 0x29d   :  { %v9490_v43 = vpop.f32.mrf.mxu0 }
 0x29e   :  { %v3111_v58 = vpop.f32.mrf.mxu1  ;;  %v9492_v6 = vadd.f32 %v6707_v54, %v2915_v30 }
 0x29f   :  { %v6686_v9 = vpop.f32.mrf.mxu0 }
 0x2a0   :  { %v2918_v35 = vadd.f32 %v6686_v9, %v2720_v14  ;;  %v6715_v3 = vpop.f32.mrf.mxu1  ;;  %v2285_v9 = vadd.f32 %v9327_v20, %v2009_v56  ;;  %v1779_v20 = vadd.f32 %v9300_v28, %v9302_v4  ;;  %v1795_v28 = vadd.f32 %v9304_v59, %v9321_v11 }
 0x2a1   :  { %v2874_v36 = vpop.f32.mrf.mxu0 }
 0x2a2   :  { %v2916_v51 = vadd.f32 %v2874_v36, %v2718_v53  ;;  %v9496_v47 = vadd.f32 %v6710_v57, %v2918_v35  ;;  %v2491_v32 = vadd.f32 %v9427_v0, %v2285_v9  ;;  %v2906_v53 = vadd.f32 %v6674_v7, %v9422_v63 }
 0x2a3   :  { %v6687_v8 = vpop.f32.mrf.mxu0  ;;  %v2013_v0 = vadd.f32 %v9357_v55, %v1763_v26  ;;  %v2017_v4 = vadd.f32 %v9375_v40, %v1779_v20  ;;  %v10996_v26 = vld [vmem:[#allocation23_spill] sm:$0xff] }
 0x2a4   :  { %v2919_v2 = vadd.f32 %v6687_v8, %v2721_v19  ;;  %v9499_v12 = vadd.f32 %v3095_v61, %v2916_v51  ;;  %v2904_v19 = vadd.f32 %v2826_v25, %v9425_v50  ;;  %v2707_v63 = vadd.f32 %v9410_v1, %v2491_v32  ;;  %v10993_v50 = vld [vmem:[#allocation10_spill] sm:$0xff] }
 0x2a5   :  { %v9501_v23 = vpop.f32.mrf.mxu0  ;;  %v3127_v38 = vadd.f32 %v9454_v24, %v2906_v53  ;;  %v9528_v7 = vrot.slane %v7304_v15, %v10993_v50  ;;  %v2293_v56 = vadd.f32 %v9350_v62, %v2017_v4  ;;  %v11001_v4 = vld [vmem:[#allocation14_spill] sm:$0xff] }
 0x2a6   :  { %v9503_v54 = vadd.f32 %v6711_v37, %v2919_v2  ;;  %v10992_v37 = vld [vmem:[#allocation5_spill] sm:$0xff]  ;;  %v2905_v55 = vadd.f32 %v2829_v39, %v2707_v63  ;;  %v3125_v24 = vadd.f32 %v9458_v33, %v2904_v19  ;;  %v10999_v63 = vld [vmem:[#allocation20_spill] sm:$0xff] }
 0x2a7   :  { %v6690_v14 = vpop.f32.mrf.mxu0  ;;  %v10810_v61 = vsub.s32 3, %v10992_v37  ;;  %v2499_v62 = vadd.f32 %v9447_v31, %v2293_v56  ;;  %v10997_v19 = vld [vmem:[#allocation25_spill] sm:$0xff] }
 0x2a8   :  { %v2922_v30 = vadd.f32 %v6690_v14, %v2724_v42  ;;  %v3126_v8 = vadd.f32 %v9464_v48, %v2905_v55 }
 0x2a9   :  { %v2890_v45 = vpop.f32.mrf.mxu0  ;;  %v2715_v55 = vadd.f32 %v11001_v4, %v2499_v62 }
 0x2aa   :  { %v2920_v57 = vadd.f32 %v2890_v45, %v2722_v13  ;;  %v9508_v35 = vadd.f32 %v6714_v16, %v2922_v30  ;;  %v2907_v13 = vadd.f32 %v6675_v10, %v9429_v17  ;;  %v9535_v17 = vrot.slane %v7304_v15, %v10810_v61  ;;  %v10995_v30 = vld [vmem:[#allocation4_spill] sm:$0xff] }
 0x2ab   :  { %v6691_v51 = vpop.f32.mrf.mxu0  ;;  %v1811_v10 = vadd.f32 %v9318_v29, %v9329_v46  ;;  %v2021_v16 = vadd.f32 %v9403_v21, %v1795_v28  ;;  %v2908_v29 = vadd.f32 %v9474_v22, %v9436_v41  ;;  %v10994_v22 = vld [vmem:[#allocation3_spill] sm:$0xff] }
 0x2ac   :  { %v9514_v3 = vadd.f32 %v3111_v58, %v2920_v57  ;;  %v2289_v58 = vadd.f32 %v9333_v27, %v2013_v0  ;;  %v3128_v39 = vadd.f32 %v9461_v34, %v2907_v13  ;;  %v7261_v34 = vld [vmem:[%s10710_s3 + $0x4c] ss:$0 sps:$4 sm:$0xff]   ;;  %v10998_v0 = vld [vmem:[#allocation13_spill] sm:$0xff] }
 0x2ad   :  { %v9520_v42 = vpop.f32.mrf.mxu0  ;;  %v2025_v40 = vadd.f32 %v9416_v18, %v1811_v10  ;;  %v2297_v18 = vadd.f32 %v9366_v44, %v2021_v16  ;;  %v3129_v51 = vadd.f32 %v10996_v26, %v2908_v29  ;;  %v9566_v31 = vsel %vm1560_vm0, %v7261_v34, 0  ;;  %v11002_v10 = vld [vmem:[#allocation22_spill] sm:$0xff] }
 0x2ae   :  { %v2495_v36 = vadd.f32 %v9438_v60, %v2289_v58  ;;  %v11003_v58 = vld [vmem:[#allocation17_spill] sm:$0xff] }
 0x2af   :  { %v6722_v1 = vpop.f32.mrf.mxu0  ;;  %v2503_v41 = vadd.f32 %v9456_v49, %v2297_v18  ;;  %v2301_v14 = vadd.f32 %v10994_v22, %v2025_v40  ;;  %v2912_v49 = vadd.f32 %v10999_v63, %v10998_v0  ;;  %v11006_v18 = vld [vmem:[#allocation16_spill] sm:$0xff] }
 0x2b0   :  { %v3295_v25 = vadd.f32 %v6722_v1, %v3127_v38  ;;  %v2711_v32 = vadd.f32 %v10995_v30, %v2495_v36  ;;  %v11000_v38 = vld [vmem:[#allocation15_spill] sm:$0xff] }
 0x2b1   :  { %v3215_v52 = vpop.f32.mrf.mxu0  ;;  %v2507_v16 = vadd.f32 %v11002_v10, %v2301_v14 }
 0x2b2   :  { %v3318_v59 = vmul.f32 %v9528_v7, %v3295_v25  ;;  %v3293_v11 = vadd.f32 %v3215_v52, %v3125_v24  ;;  %v2909_v20 = vadd.f32 %v10997_v19, %v2711_v32  ;;  %v2719_v52 = vadd.f32 %v11003_v58, %v2503_v41 }
 0x2b3   :  { %v6723_v33 = vpop.f32.mrf.mxu0  ;;  %v2913_v41 = vadd.f32 %v9490_v43, %v2715_v55 }
 0x2b4   :  { %v3341_v46 = vadd.f32 %v9535_v17, %v3318_v59  ;;  %v3316_v27 = vmul.f32 %v9528_v7, %v3293_v11  ;;  %v3296_v21 = vadd.f32 %v6723_v33, %v3128_v39  ;;  %v11004_v33 = vld [vmem:[#allocation26_spill] sm:$0xff] }
 0x2b5   :  { %v3218_v60 = vpop.f32.mrf.mxu0 }
 0x2b6   :  { %v3339_v2 = vadd.f32 %v9535_v17, %v3316_v27  ;;  %v3319_v48 = vmul.f32 %v9528_v7, %v3296_v21  ;;  %v3294_v9 = vadd.f32 %v3218_v60, %v3126_v8  ;;  %v3360_v45 = vmax.f32 %v3341_v46, 0.0  ;;  %v11005_v27 = vld [vmem:[#allocation18_spill] sm:$0xff] }
 0x2b7   :  { %v6726_v53 = vpop.f32.mrf.mxu0  ;;  %v3130_v21 = vadd.f32 %v11005_v27, %v2909_v20  ;;  %v3133_v60 = vadd.f32 %v11006_v18, %v2912_v49  ;;  %v11010_v18 = vld [vmem:[#allocation19_spill] sm:$0xff] }
 0x2b8   :  { %v3342_v57 = vadd.f32 %v9535_v17, %v3319_v48  ;;  %v3317_v44 = vmul.f32 %v9528_v7, %v3294_v9  ;;  %v3358_v13 = vmax.f32 %v3339_v2, 0.0  ;;  %v3299_v15 = vadd.f32 %v6726_v53, %v11000_v38 }
 0x2b9   :  { %v3231_v28 = vpop.f32.mrf.mxu0  ;;  %v3400_v59 = vrot.slane %v3360_v45, 1 }
 0x2ba   :  { %v3361_v1 = vmax.f32 %v3342_v57, 0.0  ;;  %v3340_v25 = vadd.f32 %v9535_v17, %v3317_v44  ;;  %v3297_v24 = vadd.f32 %v3231_v28, %v3129_v51  ;;  %v3322_v11 = vmul.f32 %v9528_v7, %v3299_v15 }
 0x2bb   :  { %v6727_v39 = vpop.f32.mrf.mxu0  ;;  %v3397_v29 = vrot.slane %v3358_v13, 1  ;;  %v2917_v51 = vadd.f32 %v9501_v23, %v2719_v52  ;;  %v7259_v23 = vld [vmem:[%s10710_s3 + $0x38] ss:$0 sps:$4 sm:$0xff]  }
 0x2bc   :  { %v3402_v40 = vrot.slane %v3361_v1, 1  ;;  %v3359_v36 = vmax.f32 %v3340_v25, 0.0  ;;  %v3320_v56 = vmul.f32 %v9528_v7, %v3297_v24  ;;  %v3300_v8 = vadd.f32 %v6727_v39, %v11004_v33 }
 0x2bd   :  { %v3345_v46 = vadd.f32 %v9535_v17, %v3322_v11  ;;  %v3234_v34 = vpop.f32.mrf.mxu0 }
 0x2be   :  { %v3403_v62 = vsel %vm1834_vm6, %v3400_v59, %v3402_v40  ;;  %v3398_v2 = vrot.slane %v3359_v36, 1  ;;  %v3343_v48 = vadd.f32 %v9535_v17, %v3320_v56  ;;  %v3323_v9 = vmul.f32 %v9528_v7, %v3300_v8 }
 0x2bf   :  { %v3454_v22 = vmax.f32 %v3360_v45, %v3403_v62  ;;  %v3364_v14 = vmax.f32 %v3345_v46, 0.0  ;;  %v3298_v30 = vadd.f32 %v3234_v34, %v3130_v21  ;;  %v6730_v32 = vpop.f32.mrf.mxu0  ;;  %v11007_v56 = vmov 0.0   ;;  %v7263_v46 = vld [vmem:[%s10710_s3 + $0x44] sm:$0xff]  }
 0x2c0   :  { %v3399_v53 = vsel %vm1834_vm6, %v3397_v29, %v3398_v2  ;;  %v3401_v57 = vsel %vm1834_vm6, %v3398_v2, %v3400_v59  ;;  %v3362_v44 = vmax.f32 %v3343_v48, 0.0  ;;  %v9589_v26 = vadd.f32 %v9535_v17, %v3323_v9  ;;  %v11009_v21 = vld [vmem:[#allocation31_spill] sm:$0xff] }
 0x2c1   :  { %v3452_v19 = vmax.f32 %v3358_v13, %v3399_v53  ;;  %v3453_v20 = vmax.f32 %v3359_v36, %v3401_v57  ;;  %v3321_v0 = vmul.f32 %v9528_v7, %v3298_v30  ;;  %v3247_v63 = vpop.f32.mrf.mxu0  ;;  %v3303_v49 = vadd.f32 %v6730_v32, %v9488_v5 }
 0x2c2   :  { %v3404_v43 = vrot.slane %v3362_v44, 1  ;;  %v3365_v45 = vmax.f32 %v9589_v26, 0.0  ;;  %v3301_v38 = vadd.f32 %v3247_v63, %v3133_v60  ;;  %v3408_v4 = vrot.slane %v3364_v14, 1 }
 0x2c3   :  { %v9595_v15 = vpack.c.bf16 %v3453_v20, %v3452_v19  ;;  %v9597_v28 = vpack.c.bf16 %v3454_v22, %v3453_v20  ;;  %v3344_v55 = vadd.f32 %v9535_v17, %v3321_v0  ;;  %v6731_v25 = vpop.f32.mrf.mxu0  ;;  %v3326_v10 = vmul.f32 %v9528_v7, %v3303_v49 }
 0x2c4   :  { %v3405_v13 = vsel %vm1834_vm6, %v3402_v40, %v3404_v43  ;;  %v3410_v24 = vrot.slane %v3365_v45, 1  ;;  %v3324_v5 = vmul.f32 %v9528_v7, %v3301_v38  ;;  %v3304_v36 = vadd.f32 %v6731_v25, %v9492_v6  ;;  %v11008_v40 = vld [vmem:[#allocation24_spill] sm:$0xff]  ;;  %v3114_v38 = vpop.f32.mrf.mxu1 }
 0x2c5   :  { %v3455_v58 = vmax.f32 %v3361_v1, %v3405_v13  ;;  %v3363_v52 = vmax.f32 %v3344_v55, 0.0  ;;  %v3250_v59 = vpop.f32.mrf.mxu0  ;;  %6781 = vmatmul.mubr.msk.bf16.vlgmr.msra.gmra.mxu0 %vm3526_vm11, %v9595_v15  ;;  %v2723_v33 = vadd.f32 %v11008_v40, %v2507_v16  ;;  %v9617_v8 = vadd.f32 %v9535_v17, %v3326_v10 }
 0x2c6   :  { %v3411_v11 = vsel %vm1834_vm6, %v3408_v4, %v3410_v24  ;;  %v9610_v39 = vadd.f32 %v9535_v17, %v3324_v5  ;;  %6784 = vmatprep.mubr.msk.bf16.mxu0 %vm7310_vm10, %v11007_v56  ;;  %v9620_v29 = vsel %vm1560_vm0, %v7259_v23, 0  ;;  %6843 = vmatpush3.bf16.msra.mxu0 %v9566_v31  ;;  %v3134_v34 = vadd.f32 %v11009_v21, %v2913_v41 }
 0x2c7   :  { %v6734_v1 = vpop.f32.mrf.mxu0  ;;  %v9626_v27 = vpack.c.bf16 %v3455_v58, %v3454_v22  ;;  %v3406_v6 = vrot.slane %v3363_v52, 1  ;;  %v3138_v16 = vadd.f32 %v11010_v18, %v2917_v51  ;;  %6844 = vmatprep.subr.bf16.mxu0 %v11007_v56  ;;  %v2921_v60 = vadd.f32 %v9520_v42, %v2723_v33  ;;  %v7264_v42 = vld [vmem:[%s10710_s3 + $0x3c] sm:$0xff]  }
 0x2c8   :  { %v3458_v62 = vmax.f32 %v3364_v14, %v3411_v11  ;;  %v3366_v2 = vmax.f32 %v9610_v39, 0.0  ;;  %v3327_v31 = vmul.f32 %v9528_v7, %v3304_v36  ;;  %v3302_v30 = vadd.f32 %v3250_v59, %v3134_v34 }
 0x2c9   :  { %v3263_v48 = vpop.f32.mrf.mxu0  ;;  %v3407_v9 = vsel %vm1834_vm6, %v3404_v43, %v3406_v6  ;;  %v3409_v22 = vsel %vm1834_vm6, %v3406_v6, %v3408_v4  ;;  %v3307_v32 = vadd.f32 %v6734_v1, %v9496_v47  ;;  %v3368_v57 = vmax.f32 %v9617_v8, 0.0 }
 0x2ca   :  { %v3456_v41 = vmax.f32 %v3362_v44, %v3407_v9  ;;  %v3457_v53 = vmax.f32 %v3363_v52, %v3409_v22  ;;  %v3412_v26 = vrot.slane %v3366_v2, 1  ;;  %6845 = vmatpush3.bf16.msra.mxu0 %v7263_v46  ;;  %v9642_v14 = vadd.f32 %v9535_v17, %v3327_v31 }
 0x2cb   :  { %v6735_v51 = vpop.f32.mrf.mxu0  ;;  %v3325_v19 = vmul.f32 %v9528_v7, %v3302_v30  ;;  %v3330_v20 = vmul.f32 %v9528_v7, %v3307_v32  ;;  %v3305_v47 = vadd.f32 %v3263_v48, %v9499_v12  ;;  %6846 = vmatprep.subr.bf16.mxu0 %v11007_v56  ;;  %v3416_v23 = vrot.slane %v3368_v57, 1 }
 0x2cc   :  { %v9648_v44 = vpack.c.bf16 %v3457_v53, %v3456_v41  ;;  %v9650_v0 = vpack.c.bf16 %v3456_v41, %v3455_v58  ;;  %v9652_v63 = vpack.c.bf16 %v3458_v62, %v3457_v53  ;;  %v3413_v43 = vsel %vm1834_vm6, %v3410_v24, %v3412_v26  ;;  %v7260_v41 = vld [vmem:[%s10710_s3 + $0x30] sm:$0xff]  }
 0x2cd   :  { %v3266_v49 = vpop.f32.mrf.mxu0  ;;  %6785 = vmatmul.mubr.msk.bf16.gmra.mxu0 %vm3526_vm11, %v9626_v27  ;;  %v3459_v4 = vmax.f32 %v3365_v45, %v3413_v43  ;;  %v3369_v55 = vmax.f32 %v9642_v14, 0.0  ;;  %v3348_v12 = vadd.f32 %v9535_v17, %v3325_v19  ;;  %v9660_v25 = vadd.f32 %v9535_v17, %v3330_v20 }
 0x2ce   :  { %6788 = vmatprep.mubr.msk.bf16.mxu0 %vm7310_vm10, %v11007_v56  ;;  %v3328_v13 = vmul.f32 %v9528_v7, %v3305_v47  ;;  %v3308_v24 = vadd.f32 %v6735_v51, %v9503_v54  ;;  %v3142_v5 = vadd.f32 %v3114_v38, %v2921_v60  ;;  %6847 = vmatpush3.bf16.msra.mxu0 %v7264_v42  ;;  %v3496_v36 = vrot.slane %v9595_v15, 1 }
 0x2cf   :  { %v6738_v10 = vpop.f32.mrf.mxu0  ;;  %v9666_v58 = vpack.c.bf16 %v3459_v4, %v3458_v62  ;;  %v3418_v45 = vrot.slane %v3369_v55, 1  ;;  %v3367_v52 = vmax.f32 %v3348_v12, 0.0  ;;  %v3372_v59 = vmax.f32 %v9660_v25, 0.0  ;;  %6910 = vmatprep.subr.bf16.mxu0 %v11007_v56  ;;  %v7262_v12 = vld [vmem:[%s10710_s3 + $0x28] sm:$0xff]  }
 0x2d0   :  { %v3351_v11 = vadd.f32 %v9535_v17, %v3328_v13  ;;  %v3331_v39 = vmul.f32 %v9528_v7, %v3308_v24  ;;  %v3497_v40 = vrot.slane %v9626_v27, 1  ;;  %v3306_v46 = vadd.f32 %v3266_v49, %v3138_v16 }
 0x2d1   :  { %v3279_v54 = vpop.f32.mrf.mxu0  ;;  %v3419_v33 = vsel %vm1834_vm6, %v3416_v23, %v3418_v45  ;;  %v3414_v8 = vrot.slane %v3367_v52, 1  ;;  %v3424_v1 = vrot.slane %v3372_v59, 1  ;;  %v3311_v9 = vadd.f32 %v6738_v10, %v9508_v35 }
 0x2d2   :  { %v3462_v6 = vmax.f32 %v3368_v57, %v3419_v33  ;;  %v3370_v21 = vmax.f32 %v3351_v11, 0.0  ;;  %v9676_v34 = vadd.f32 %v9535_v17, %v3331_v39  ;;  %v3498_v18 = vsel %vm1834_vm6, %v3496_v36, %v3497_v40 }
 0x2d3   :  { %v6739_v60 = vpop.f32.mrf.mxu0  ;;  %v3415_v62 = vsel %vm1834_vm6, %v3412_v26, %v3414_v8  ;;  %v3417_v31 = vsel %vm1834_vm6, %v3414_v8, %v3416_v23  ;;  %6747 = vmatmul.mubr.msk.bf16.vlgmr.msra.gmra.mxu1 %vm3526_vm11, %v3498_v18  ;;  %v3329_v48 = vmul.f32 %v9528_v7, %v3306_v46  ;;  %v3334_v57 = vmul.f32 %v9528_v7, %v3311_v9 }
 0x2d4   :  { %v3460_v22 = vmax.f32 %v3366_v2, %v3415_v62  ;;  %v3461_v16 = vmax.f32 %v3367_v52, %v3417_v31  ;;  %v3420_v30 = vrot.slane %v3370_v21, 1  ;;  %v3373_v32 = vmax.f32 %v9676_v34, 0.0  ;;  %6809 = vmatpush3.bf16.msra.mxu1 %v9620_v29  ;;  %6750 = vmatprep.mubr.msk.bf16.mxu1 %vm7310_vm10, %v11007_v56 }
 0x2d5   :  { %v3352_v53 = vadd.f32 %v9535_v17, %v3329_v48  ;;  %v3309_v35 = vadd.f32 %v3279_v54, %v9514_v3  ;;  %v3499_v2 = vrot.slane %v9648_v44, 1  ;;  %v3282_v26 = vpop.f32.mrf.mxu0  ;;  %6789 = vmatmul.mubr.msk.bf16.gmra.mxu0 %vm3526_vm11, %v9648_v44  ;;  %6810 = vmatprep.subr.bf16.mxu1 %v11007_v56  ;;  %v3357_v47 = vadd.f32 %v9535_v17, %v3334_v57 }
 0x2d6   :  { %v9698_v29 = vpack.c.bf16 %v3461_v16, %v3460_v22  ;;  %v9700_v51 = vpack.c.bf16 %v3460_v22, %v3459_v4  ;;  %v9702_v42 = vpack.c.bf16 %v3462_v6, %v3461_v16  ;;  %v3421_v14 = vsel %vm1834_vm6, %v3418_v45, %v3420_v30  ;;  %6792 = vmatprep.mubr.msk.bf16.mxu0 %vm7310_vm10, %v11007_v56 }
 0x2d7   :  { %v3463_v3 = vmax.f32 %v3369_v55, %v3421_v14  ;;  %v3426_v19 = vrot.slane %v3373_v32, 1  ;;  %v3371_v20 = vmax.f32 %v3352_v53, 0.0  ;;  %v3332_v43 = vmul.f32 %v9528_v7, %v3309_v35 }
 0x2d8   :  { %v3500_v49 = vsel %vm1834_vm6, %v3497_v40, %v3499_v2  ;;  %v3310_v38 = vadd.f32 %v3282_v26, %v3142_v5  ;;  %v3501_v4 = vrot.slane %v9666_v58, 1  ;;  %6811 = vmatpush3.bf16.msra.mxu1 %v7260_v41  ;;  %v3376_v11 = vmax.f32 %v3357_v47, 0.0 }
 0x2d9   :  { %v9714_v25 = vpack.c.bf16 %v3463_v3, %v3462_v6  ;;  %v3427_v55 = vsel %vm1834_vm6, %v3424_v1, %v3426_v19  ;;  %v3422_v23 = vrot.slane %v3371_v20, 1  ;;  %6812 = vmatprep.subr.bf16.mxu1 %v11007_v56  ;;  %v3355_v24 = vadd.f32 %v9535_v17, %v3332_v43 }
 0x2da   :  { %v9718_v13 = vmax.f32 %v3372_v59, %v3427_v55  ;;  %v3333_v10 = vmul.f32 %v9528_v7, %v3310_v38  ;;  %v3502_v5 = vsel %vm1834_vm6, %v3499_v2, %v3501_v4  ;;  %v3503_v39 = vrot.slane %v9698_v29, 1 }
 0x2db   :  { %v3423_v45 = vsel %vm1834_vm6, %v3420_v30, %v3422_v23  ;;  %v3425_v52 = vsel %vm1834_vm6, %v3422_v23, %v3424_v1  ;;  %6751 = vmatmul.mubr.msk.bf16.gmra.mxu1 %vm3526_vm11, %v3500_v49  ;;  %v3374_v54 = vmax.f32 %v3355_v24, 0.0  ;;  %v3505_v33 = vrot.slane %v9714_v25, 1 }
 0x2dc   :  { %v3464_v36 = vmax.f32 %v3370_v21, %v3423_v45  ;;  %v3465_v40 = vmax.f32 %v3371_v20, %v3425_v52  ;;  %v3356_v59 = vadd.f32 %v9535_v17, %v3333_v10  ;;  %6754 = vmatprep.mubr.msk.bf16.mxu1 %vm7310_vm10, %v11007_v56  ;;  %6813 = vmatpush3.bf16.msra.mxu1 %v7262_v12  ;;  %v3432_v18 = vrot.slane %v3376_v11, 1 }
 0x2dd   :  { %6793 = vmatmul.mubr.msk.bf16.gmra.mxu0 %vm3526_vm11, %v9666_v58  ;;  %v3504_v7 = vsel %vm1834_vm6, %v3501_v4, %v3503_v39  ;;  %v3482_v8 = vpack.c.bf16 %v9718_v13, %v9718_v13  ;;  %6876 = vmatprep.subr.bf16.mxu1 %v11007_v56  ;;  %v3428_v6 = vrot.slane %v3374_v54, 1  ;;  %v3506_v34 = vsel %vm1834_vm6, %v3503_v39, %v3505_v33 }
 0x2de   :  { %v9737_v1 = vpack.c.bf16 %v3465_v40, %v3464_v36  ;;  %v9739_v46 = vpack.c.bf16 %v3464_v36, %v3463_v3  ;;  %v9742_v17 = vpack.c.bf16 %v9718_v13, %v3465_v40  ;;  %6796 = vmatprep.mubr.msk.bf16.mxu0 %vm7310_vm10, %v11007_v56  ;;  %v3375_v21 = vmax.f32 %v3356_v59, 0.0 }
 0x2df   :  { %v3429_v60 = vsel %vm1834_vm6, %v3426_v19, %v3428_v6  ;;  %v3509_v31 = vrot.slane %v3482_v8, 1  ;;  %v3773_v22 = vrot.slane %v9595_v15, 2  ;;  %v3774_v16 = vrot.slane %v9626_v27, 2 }
 0x2e0   :  { %v3507_v62 = vrot.slane %v9737_v1, 1  ;;  %v9749_v48 = vmax.f32 %v3373_v32, %v3429_v60  ;;  %v3430_v9 = vrot.slane %v3375_v21, 1  ;;  %v3776_v2 = vrot.slane %v9648_v44, 2 }
 0x2e1   :  { %v9763_v32 = vsel %vm2316_vm8, %v3773_v22, %v3774_v16  ;;  %v3778_v26 = vrot.slane %v9666_v58, 2  ;;  %v9781_v3 = vshrl.u32 %v9597_v28, 16  ;;  %v9784_v19 = vshll.u32 %v9597_v28, 16 }
 0x2e2   :  { %v9754_v30 = vsel %vm1834_vm6, %v3505_v33, %v3507_v62  ;;  %v9757_v41 = vsel %vm1834_vm6, %v3507_v62, %v3509_v31  ;;  %v3431_v53 = vsel %vm1834_vm6, %v3428_v6, %v3430_v9  ;;  %v3433_v57 = vsel %vm1834_vm6, %v3430_v9, %v3432_v18 }
 0x2e3   :  { %6755 = vmatmul.mubr.msk.bf16.gmra.mxu1 %vm3526_vm11, %v3502_v5  ;;  %v9765_v35 = vmax.f32 %v3374_v54, %v3431_v53  ;;  %v9767_v15 = vmax.f32 %v3375_v21, %v3433_v57  ;;  %v9778_v14 = vsel %vm2316_vm8, %v3774_v16, %v3776_v2  ;;  %v9787_v20 = vsel %vm2316_vm8, %v3776_v2, %v3778_v26 }
 0x2e4   :  { %6758 = vmatprep.mubr.msk.bf16.mxu1 %vm7310_vm10, %v11007_v56  ;;  %v3780_v47 = vrot.slane %v9698_v29, 2  ;;  %v3782_v43 = vrot.slane %v9714_v25, 2  ;;  %v4161_v38 = vrot.slane %v9781_v3, 2  ;;  %v4162_v4 = vrot.slane %v9784_v19, 3 }
 0x2e5   :  { %6797 = vmatmul.mubr.msk.bf16.gmra.mxu0 %vm3526_vm11, %v9698_v29  ;;  %v9803_v12 = vshrl.u32 %v9650_v0, 16  ;;  %v9806_v55 = vshll.u32 %v9650_v0, 16  ;;  %v3784_v23 = vrot.slane %v9737_v1, 2  ;;  %v3786_v24 = vrot.slane %v3482_v8, 2 }
 0x2e6   :  { %6800 = vmatprep.mubr.msk.bf16.mxu0 %vm7310_vm10, %v11007_v56  ;;  %v9793_v49 = vsel %vm2316_vm8, %v3778_v26, %v3780_v47  ;;  %v9800_v28 = vsel %vm2316_vm8, %v3780_v47, %v3782_v43  ;;  %v9814_v10 = vshrl.u32 %v9652_v63, 16  ;;  %v9817_v5 = vshll.u32 %v9652_v63, 16  ;;  %v7267_v26 = vld [vmem:[%s10710_s3 + $0x74] ss:$0 sps:$4 sm:$0xff]  }
 0x2e7   :  { %v9820_v45 = vsel %vm2316_vm8, %v3782_v43, %v3784_v23  ;;  %v9823_v52 = vsel %vm2316_vm8, %v3784_v23, %v3786_v24  ;;  %v4163_v11 = vor.u32 %v4162_v4, %v4161_v38  ;;  %v9826_v39 = vshrl.u32 %v9700_v51, 16 }
 0x2e8   :  { %v9829_v36 = vshll.u32 %v9700_v51, 16  ;;  %v4164_v40 = vrot.slane %v9803_v12, 2  ;;  %v4165_v54 = vrot.slane %v9806_v55, 3  ;;  %v3954_v59 = vrot.slane %v9803_v12, 1 }
 0x2e9   :  { %v9839_v33 = vshll.u32 %v9702_v42, 16  ;;  %v4168_v6 = vrot.slane %v9814_v10, 2  ;;  %v4169_v21 = vrot.slane %v9817_v5, 3  ;;  %v3937_v18 = vpack.c.bf16 %v9749_v48, %v9749_v48 }
 0x2ea   :  { %v4166_v8 = vor.u32 %v4165_v54, %v4164_v40  ;;  %v3957_v60 = vrot.slane %v9806_v55, 2  ;;  %v9849_v62 = vshrl.u32 %v9739_v46, 16  ;;  %v4172_v22 = vrot.slane %v9826_v39, 2 }
 0x2eb   :  { %6759 = vmatmul.mubr.msk.bf16.gmra.mxu1 %vm3526_vm11, %v3504_v7  ;;  %v9835_v7 = vshrl.u32 %v9702_v42, 16  ;;  %v4170_v9 = vor.u32 %v4169_v21, %v4168_v6  ;;  %v4173_v16 = vrot.slane %v9829_v36, 3  ;;  %v3946_v53 = vrot.slane %v9781_v3, 1 }
 0x2ec   :  { %6762 = vmatprep.mubr.msk.bf16.mxu1 %vm7310_vm10, %v11007_v56  ;;  %v9857_v31 = vsel %vm2512_vm7, %v4163_v11, %v4166_v8  ;;  %v3949_v57 = vrot.slane %v9784_v19, 2  ;;  %v9866_v2 = vshrl.u32 %v9742_v17, 16  ;;  %v4177_v4 = vrot.slane %v9839_v33, 3 }
 0x2ed   :  { %6801 = vmatmul.mubr.msk.bf16.gmra.mxu0 %vm3526_vm11, %v9714_v25  ;;  %v9872_v47 = vsel %vm2512_vm7, %v4166_v8, %v4170_v9  ;;  %v4174_v43 = vor.u32 %v4173_v16, %v4172_v22  ;;  %v4176_v38 = vrot.slane %v9835_v7, 2  ;;  %v3958_v23 = vor.u32 %v3957_v60, %v3954_v59 }
 0x2ee   :  { %6804 = vmatprep.mubr.msk.bf16.mxu0 %vm7310_vm10, %v11007_v56  ;;  %v9877_v24 = vshll.u32 %v9742_v17, 16  ;;  %v9879_v11 = vshrl.u32 %v3937_v18, 16  ;;  %v9881_v40 = vshll.u32 %v3937_v18, 16  ;;  %v4180_v8 = vrot.slane %v9849_v62, 2 }
 0x2ef   :  { %v9884_v54 = vsel %vm2512_vm7, %v4170_v9, %v4174_v43  ;;  %v4178_v6 = vor.u32 %v4177_v4, %v4176_v38  ;;  %v3950_v22 = vor.u32 %v3949_v57, %v3946_v53  ;;  %v4407_v59 = vsel %vm1560_vm0, %v7267_v26, 0  ;;  %v7269_v4 = vld [vmem:[%s10710_s3 + $0x6c] sm:$0xff]  }
 0x2f0   :  { %v4184_v18 = vrot.slane %v9866_v2, 2  ;;  %v3963_v38 = vrot.slane %v9814_v10, 1  ;;  %v3966_v53 = vrot.slane %v9817_v5, 2  ;;  %v4185_v57 = vrot.slane %v9877_v24, 3 }
 0x2f1   :  { %v9892_v60 = vsel %vm2512_vm7, %v4174_v43, %v4178_v6  ;;  %v3959_v9 = vsel %vm2040_vm5, %v3950_v22, %v3958_v23  ;;  %v4188_v26 = vrot.slane %v9879_v11, 2  ;;  %v4189_v43 = vrot.slane %v9881_v40, 3 }
 0x2f2   :  { %v4522_v22 = vrot.slane %v9648_v44, 3  ;;  %v3967_v61 = vor.u32 %v3966_v53, %v3963_v38  ;;  %v4526_v44 = vrot.slane %v9698_v29, 3  ;;  %v3975_v38 = vrot.slane %v9829_v36, 2  ;;  %v7265_v53 = vld [vmem:[%s10710_s3 + $0x60] ss:$0 sps:$4 sm:$0xff]  }
 0x2f3   :  { %6763 = vmatmul.mubr.msk.bf16.gmra.mxu1 %vm3526_vm11, %v3506_v34  ;;  %v9852_v34 = vshll.u32 %v9739_v46, 16  ;;  %v4528_v29 = vrot.slane %v9714_v25, 3  ;;  %v3984_v25 = vrot.slane %v9839_v33, 2 }
 0x2f4   :  { %6766 = vmatprep.mubr.msk.bf16.mxu1 %vm7310_vm10, %v11007_v56 }
 0x2f5   :  { %6805 = vmatmul.mubr.msk.bf16.gmra.mxu0 %vm3526_vm11, %v9737_v1  ;;  %v4181_v21 = vrot.slane %v9852_v34, 3 }
 0x2f6   :  { %6848 = vmatprep.mubr.msk.bf16.mxu0 %vm7310_vm10, %v11007_v56 }
 0x2f7   :  { %v4182_v16 = vor.u32 %v4181_v21, %v4180_v8  ;;  %v4186_v8 = vor.u32 %v4185_v57, %v4184_v18  ;;  %v4521_v21 = vrot.slane %v9626_v27, 3  ;;  %v7270_v27 = vld [vmem:[%s10710_s3 + $0x64] sm:$0xff]   ;;  %v4229_v57 = vsel %vm1560_vm0, %v7265_v53, 0 }
 0x2f8   :  { %v3990_v53 = vrot.slane %v9849_v62, 1 }
 0x2f9   :  { %v9917_v50 = vsel %vm2512_vm7, %v4182_v16, %v4186_v8 }
 0x2fb   :  { %6767 = vmatmul.mubr.msk.bf16.gmra.mxu1 %vm3526_vm11, %v9754_v30  ;;  %v9903_v30 = vsel %vm2512_vm7, %v4178_v6, %v4182_v16  ;;  %v4190_v6 = vor.u32 %v4189_v43, %v4188_v26  ;;  %v3972_v16 = vrot.slane %v9826_v39, 1  ;;  %v9953_v26 = vsel %vm534_vm2, %v4526_v44, %v4528_v29 }
 0x2fc   :  { %6770 = vmatprep.mubr.msk.bf16.mxu1 %vm7310_vm10, %v11007_v56  ;;  %v4530_v43 = vrot.slane %v9737_v1, 3 }
 0x2fd   :  { %6849 = vmatmul.mubr.msk.bf16.vlgmr.msra.gmra.mxu0 %vm3526_vm11, %v3959_v9  ;;  %v4524_v9 = vrot.slane %v9666_v58, 3  ;;  %v9923_v37 = vsel %vm2512_vm7, %v4186_v8, %v4190_v6  ;;  %v3968_v58 = vsel %vm2040_vm5, %v3958_v23, %v3967_v61  ;;  %v3976_v23 = vor.u32 %v3975_v38, %v3972_v16 }
 0x2fe   :  { %6852 = vmatprep.mubr.msk.bf16.mxu0 %vm7310_vm10, %v11007_v56  ;;  %6911 = vmatpush3.bf16.msra.mxu0 %v4407_v59  ;;  %v9920_v59 = vsel %vm534_vm2, %v4521_v21, %v4522_v22  ;;  %v3981_v8 = vrot.slane %v9835_v7, 1  ;;  %v7266_v21 = vld [vmem:[%s10710_s3 + $0x58] sm:$0xff]   ;;  %v9971_v1 = vsel %vm534_vm2, %v4528_v29, %v4530_v43  ;;  %v3993_v29 = vrot.slane %v9852_v34, 2 }
 0x2ff   :  { %6912 = vmatprep.subr.bf16.mxu0 %v11007_v56  ;;  %v9926_v18 = vsel %vm534_vm2, %v4522_v22, %v4524_v9  ;;  %v4820_v22 = vpack.c.bf16 %v9767_v15, %v9767_v15  ;;  %v7268_v15 = vld [vmem:[%s10710_s3 + $0x50] sm:$0xff]  }
 0x300   :  { %v3985_v6 = vor.u32 %v3984_v25, %v3981_v8  ;;  %v4008_v8 = vrot.slane %v9879_v11, 1  ;;  %v4011_v25 = vrot.slane %v9881_v40, 2 }
 0x302   :  { %6913 = vmatpush3.bf16.msra.mxu0 %v7269_v4  ;;  %v3977_v4 = vsel %vm2040_vm5, %v3967_v61, %v3976_v23  ;;  %v4512_v61 = vpack.c.bf16 %v9749_v48, %v9718_v13  ;;  %v4513_v13 = vpack.c.bf16 %v9765_v35, %v9765_v35  ;;  %v3986_v38 = vsel %vm2040_vm5, %v3976_v23, %v3985_v6 }
 0x303   :  { %6771 = vmatmul.mubr.msk.bf16.gmra.mxu1 %vm3526_vm11, %v9757_v41  ;;  %6914 = vmatprep.subr.bf16.mxu0 %v11007_v56  ;;  %v9945_v41 = vsel %vm534_vm2, %v4524_v9, %v4526_v44  ;;  %v4847_v9 = vrot.slane %v4820_v22, 1  ;;  %v9986_v44 = vpack.c.bf16 %v9765_v35, %v9749_v48  ;;  %v4342_v22 = vrot.slane %v9803_v12, 3 }
 0x304   :  { %6814 = vmatprep.mubr.msk.bf16.mxu1 %vm7310_vm10, %v11007_v56 }
 0x305   :  { %6853 = vmatmul.mubr.msk.bf16.gmra.mxu0 %vm3526_vm11, %v3968_v58  ;;  %v4534_v58 = vrot.slane %v4513_v13, 3  ;;  %v4845_v16 = vrot.slane %v9986_v44, 1 }
 0x306   :  { %6856 = vmatprep.mubr.msk.bf16.mxu0 %vm7310_vm10, %v11007_v56  ;;  %6915 = vmatpush3.bf16.msra.mxu0 %v7270_v27 }
 0x307   :  { %6978 = vmatprep.subr.bf16.mxu0 %v11007_v56  ;;  %v10006_v35 = vsel %vm1834_vm6, %v4845_v16, %v4847_v9 }
 0x30b   :  { %6815 = vmatmul.mubr.msk.bf16.vlgmr.msra.gmra.mxu1 %vm3526_vm11, %v9763_v32  ;;  %v4532_v32 = vrot.slane %v4512_v61, 3  ;;  %v4343_v61 = vrot.slane %v9806_v55, 4  ;;  %v4347_v55 = vrot.slane %v9817_v5, 4 }
 0x30c   :  { %6877 = vmatpush3.bf16.msra.mxu1 %v4229_v57  ;;  %6818 = vmatprep.mubr.msk.bf16.mxu1 %vm7310_vm10, %v11007_v56  ;;  %v3999_v57 = vrot.slane %v9866_v2, 1 }
 0x30d   :  { %6857 = vmatmul.mubr.msk.bf16.gmra.mxu0 %vm3526_vm11, %v3977_v4  ;;  %6878 = vmatprep.subr.bf16.mxu1 %v11007_v56  ;;  %v9982_v27 = vsel %vm534_vm2, %v4530_v43, %v4532_v32  ;;  %v10001_v48 = vsel %vm534_vm2, %v4532_v32, %v4534_v58  ;;  %v4002_v43 = vrot.slane %v9877_v24, 2  ;;  %v4339_v32 = vrot.slane %v9781_v3, 3 }
 0x30e   :  { %6860 = vmatprep.mubr.msk.bf16.mxu0 %vm7310_vm10, %v11007_v56  ;;  %v4350_v58 = vrot.slane %v9826_v39, 3 }
 0x30f   :  { %v4003_v4 = vor.u32 %v4002_v43, %v3999_v57  ;;  %v7274_v57 = vld [vmem:[%s10710_s3 + $0x78] sm:$0xff]   ;;  %v4359_v43 = vrot.slane %v9852_v34, 4  ;;  %v4363_v34 = vrot.slane %v9877_v24, 4 }
 0x310   :  { %6879 = vmatpush3.bf16.msra.mxu1 %v7266_v21  ;;  %v4012_v21 = vor.u32 %v4011_v25, %v4008_v8  ;;  %v4366_v8 = vrot.slane %v9879_v11, 3 }
 0x311   :  { %6880 = vmatprep.subr.bf16.mxu1 %v11007_v56 }
 0x313   :  { %6819 = vmatmul.mubr.msk.bf16.gmra.mxu1 %vm3526_vm11, %v9778_v14  ;;  %v3994_v14 = vor.u32 %v3993_v29, %v3990_v53  ;;  %v7271_v53 = vld [vmem:[%s10710_s3 + $0x88] ss:$0 sps:$4 sm:$0xff]  }
 0x314   :  { %6822 = vmatprep.mubr.msk.bf16.mxu1 %vm7310_vm10, %v11007_v56  ;;  %6881 = vmatpush3.bf16.msra.mxu1 %v7268_v15  ;;  %v4344_v15 = vor.u32 %v4343_v61, %v4342_v22  ;;  %v4573_v29 = vsel %vm1560_vm0, %v7271_v53, 0 }
 0x315   :  { %6861 = vmatmul.mubr.msk.bf16.gmra.mxu0 %vm3526_vm11, %v3986_v38  ;;  %6944 = vmatprep.subr.bf16.mxu1 %v11007_v56  ;;  %v3995_v23 = vsel %vm2040_vm5, %v3985_v6, %v3994_v14  ;;  %v4340_v6 = vrot.slane %v9784_v19, 4  ;;  %v4346_v19 = vrot.slane %v9814_v10, 3  ;;  %v7276_v10 = vld [vmem:[%s10710_s3 + $0x8c] sm:$0xff]   ;;  %v4351_v38 = vrot.slane %v9829_v36, 4 }
 0x316   :  { %6864 = vmatprep.mubr.msk.bf16.mxu0 %vm7310_vm10, %v11007_v56  ;;  %v4354_v36 = vrot.slane %v9835_v7, 3 }
 0x317   :  { %v4341_v9 = vor.u32 %v4340_v6, %v4339_v32  ;;  %v4348_v13 = vor.u32 %v4347_v55, %v4346_v19 }
 0x319   :  { %v4345_v3 = vsel %vm2926_vm9, %v4341_v9, %v4344_v15  ;;  %v4349_v5 = vsel %vm2926_vm9, %v4344_v15, %v4348_v13 }
 0x31b   :  { %6823 = vmatmul.mubr.msk.bf16.gmra.mxu1 %vm3526_vm11, %v9787_v20  ;;  %v4004_v20 = vsel %vm2040_vm5, %v3994_v14, %v4003_v4  ;;  %v4355_v14 = vrot.slane %v9839_v33, 4  ;;  %v4358_v33 = vrot.slane %v9849_v62, 3  ;;  %v4362_v62 = vrot.slane %v9866_v2, 3 }
 0x31c   :  { %6826 = vmatprep.mubr.msk.bf16.mxu1 %vm7310_vm10, %v11007_v56  ;;  %v4367_v2 = vrot.slane %v9881_v40, 4  ;;  %v7279_v40 = vld [vmem:[%s10710_s3 + $0xa0] sm:$0xff]  }
 0x31d   :  { %6865 = vmatmul.mubr.msk.bf16.gmra.mxu0 %vm3526_vm11, %v3995_v23  ;;  %v7272_v23 = vld [vmem:[%s10710_s3 + $0x80] sm:$0xff]  }
 0x31e   :  { %6868 = vmatprep.mubr.msk.bf16.mxu0 %vm7310_vm10, %v11007_v56  ;;  %v4368_v24 = vor.u32 %v4367_v2, %v4366_v8 }
 0x323   :  { %6827 = vmatmul.mubr.msk.bf16.gmra.mxu1 %vm3526_vm11, %v9793_v49  ;;  %v4013_v49 = vsel %vm2040_vm5, %v4003_v4, %v4012_v21  ;;  %v4360_v4 = vor.u32 %v4359_v43, %v4358_v33 }
 0x324   :  { %6830 = vmatprep.mubr.msk.bf16.mxu1 %vm7310_vm10, %v11007_v56 }
 0x325   :  { %6869 = vmatmul.mubr.msk.bf16.gmra.mxu0 %vm3526_vm11, %v4004_v20  ;;  %v4364_v20 = vor.u32 %v4363_v34, %v4362_v62  ;;  %v4834_v34 = vrot.slane %v9650_v0, 1 }
 0x326   :  { %6872 = vmatprep.mubr.msk.bf16.mxu0 %vm7310_vm10, %v11007_v56 }
 0x32b   :  { %6831 = vmatmul.mubr.msk.bf16.gmra.mxu1 %vm3526_vm11, %v9800_v28  ;;  %v7273_v28 = vld [vmem:[%s10710_s3 + $0x9c] ss:$0 sps:$4 sm:$0xff]  }
 0x32c   :  { %6834 = vmatprep.mubr.msk.bf16.mxu1 %vm7310_vm10, %v11007_v56  ;;  %v4715_v12 = vsel %vm1560_vm0, %v7273_v28, 0 }
 0x32d   :  { %6873 = vmatmul.mubr.msk.bf16.gmra.mxu0 %vm3526_vm11, %v4013_v49 }
 0x32e   :  { %6916 = vmatprep.mubr.msk.bf16.mxu0 %vm7310_vm10, %v11007_v56 }
 0x333   :  { %6835 = vmatmul.mubr.msk.bf16.gmra.mxu1 %vm3526_vm11, %v9820_v45  ;;  %v7275_v45 = vld [vmem:[%s10710_s3 + $0x94] sm:$0xff]  }
 0x334   :  { %6838 = vmatprep.mubr.msk.bf16.mxu1 %vm7310_vm10, %v11007_v56 }
 0x335   :  { %6917 = vmatmul.mubr.msk.bf16.vlgmr.msra.gmra.mxu0 %vm3526_vm11, %v4345_v3 }
 0x336   :  { %6920 = vmatprep.mubr.msk.bf16.mxu0 %vm7310_vm10, %v11007_v56  ;;  %6979 = vmatpush3.bf16.msra.mxu0 %v4715_v12 }
 0x337   :  { %6980 = vmatprep.subr.bf16.mxu0 %v11007_v56 }
 0x33a   :  { %6981 = vmatpush3.bf16.msra.mxu0 %v7275_v45 }
 0x33b   :  { %6839 = vmatmul.mubr.msk.bf16.gmra.mxu1 %vm3526_vm11, %v9823_v52  ;;  %6982 = vmatprep.subr.bf16.mxu0 %v11007_v56  ;;  %v4352_v52 = vor.u32 %v4351_v38, %v4350_v58 }
 0x33c   :  { %6882 = vmatprep.mubr.msk.bf16.mxu1 %vm7310_vm10, %v11007_v56 }
 0x33d   :  { %6921 = vmatmul.mubr.msk.bf16.gmra.mxu0 %vm3526_vm11, %v4349_v5  ;;  %v4353_v39 = vsel %vm2926_vm9, %v4348_v13, %v4352_v52 }
 0x33e   :  { %6924 = vmatprep.mubr.msk.bf16.mxu0 %vm7310_vm10, %v11007_v56  ;;  %6983 = vmatpush3.bf16.msra.mxu0 %v7276_v10 }
 0x343   :  { %6883 = vmatmul.mubr.msk.bf16.vlgmr.msra.gmra.mxu1 %vm3526_vm11, %v9857_v31  ;;  %v4356_v31 = vor.u32 %v4355_v14, %v4354_v36 }
 0x344   :  { %6945 = vmatpush3.bf16.msra.mxu1 %v4573_v29  ;;  %6886 = vmatprep.mubr.msk.bf16.mxu1 %vm7310_vm10, %v11007_v56 }
 0x345   :  { %6925 = vmatmul.mubr.msk.bf16.gmra.mxu0 %vm3526_vm11, %v4353_v39  ;;  %6946 = vmatprep.subr.bf16.mxu1 %v11007_v56  ;;  %v4357_v7 = vsel %vm2926_vm9, %v4352_v52, %v4356_v31 }
 0x346   :  { %6928 = vmatprep.mubr.msk.bf16.mxu0 %vm7310_vm10, %v11007_v56 }
 0x348   :  { %6947 = vmatpush3.bf16.msra.mxu1 %v7272_v23 }
 0x349   :  { %6948 = vmatprep.subr.bf16.mxu1 %v11007_v56 }
 0x34b   :  { %6887 = vmatmul.mubr.msk.bf16.gmra.mxu1 %vm3526_vm11, %v9872_v47  ;;  %v4361_v47 = vsel %vm2926_vm9, %v4356_v31, %v4360_v4 }
 0x34c   :  { %6890 = vmatprep.mubr.msk.bf16.mxu1 %vm7310_vm10, %v11007_v56  ;;  %6949 = vmatpush3.bf16.msra.mxu1 %v7274_v57 }
 0x34d   :  { %6929 = vmatmul.mubr.msk.bf16.gmra.mxu0 %vm3526_vm11, %v4357_v7  ;;  %7012 = vmatprep.subr.bf16.mxu1 %v11007_v56 }
 0x34e   :  { %6932 = vmatprep.mubr.msk.bf16.mxu0 %vm7310_vm10, %v11007_v56 }
 0x353   :  { %6891 = vmatmul.mubr.msk.bf16.gmra.mxu1 %vm3526_vm11, %v9884_v54  ;;  %v4365_v54 = vsel %vm2926_vm9, %v4360_v4, %v4364_v20 }
 0x354   :  { %6894 = vmatprep.mubr.msk.bf16.mxu1 %vm7310_vm10, %v11007_v56 }
 0x355   :  { %6933 = vmatmul.mubr.msk.bf16.gmra.mxu0 %vm3526_vm11, %v4361_v47 }
 0x356   :  { %6936 = vmatprep.mubr.msk.bf16.mxu0 %vm7310_vm10, %v11007_v56 }
 0x35b   :  { %6895 = vmatmul.mubr.msk.bf16.gmra.mxu1 %vm3526_vm11, %v9892_v60  ;;  %v4369_v60 = vsel %vm2926_vm9, %v4364_v20, %v4368_v24  ;;  %v4835_v20 = vrot.slane %v9652_v63, 1 }
 0x35c   :  { %6898 = vmatprep.mubr.msk.bf16.mxu1 %vm7310_vm10, %v11007_v56 }
 0x35d   :  { %6937 = vmatmul.mubr.msk.bf16.gmra.mxu0 %vm3526_vm11, %v4365_v54 }
 0x35e   :  { %6940 = vmatprep.mubr.msk.bf16.mxu0 %vm7310_vm10, %v11007_v56 }
 0x363   :  { %6899 = vmatmul.mubr.msk.bf16.gmra.mxu1 %vm3526_vm11, %v9903_v30 }
 0x364   :  { %6902 = vmatprep.mubr.msk.bf16.mxu1 %vm7310_vm10, %v11007_v56 }
 0x365   :  { %6941 = vmatmul.mubr.msk.bf16.gmra.mxu0 %vm3526_vm11, %v4369_v60 }
 0x366   :  { %6984 = vmatprep.mubr.msk.bf16.mxu0 %vm7310_vm10, %v11007_v56 }
 0x36b   :  { %6903 = vmatmul.mubr.msk.bf16.gmra.mxu1 %vm3526_vm11, %v9917_v50  ;;  %v7277_v50 = vld [vmem:[%s10710_s3 + $0xb0] ss:$0 sps:$4 sm:$0xff]  }
 0x36c   :  { %6906 = vmatprep.mubr.msk.bf16.mxu1 %vm7310_vm10, %v11007_v56  ;;  %v4886_v11 = vsel %vm1560_vm0, %v7277_v50, 0 }
 0x36d   :  { %6985 = vmatmul.mubr.msk.bf16.vlgmr.msra.gmra.mxu0 %vm3526_vm11, %v9650_v0 }
 0x36e   :  { %6988 = vmatprep.mubr.msk.bf16.mxu0 %vm7310_vm10, %v11007_v56 }
 0x373   :  { %6907 = vmatmul.mubr.msk.bf16.gmra.mxu1 %vm3526_vm11, %v9923_v37  ;;  %v7278_v37 = vld [vmem:[%s10710_s3 + $0xa8] sm:$0xff]  }
 0x374   :  { %6950 = vmatprep.mubr.msk.bf16.mxu1 %vm7310_vm10, %v11007_v56 }
 0x375   :  { %6989 = vmatmul.mubr.msk.bf16.gmra.mxu0 %vm3526_vm11, %v9652_v63  ;;  %v4837_v63 = vrot.slane %v9700_v51, 1 }
 0x376   :  { %6992 = vmatprep.mubr.msk.bf16.mxu0 %vm7310_vm10, %v11007_v56 }
 0x37b   :  { %6951 = vmatmul.mubr.msk.bf16.vlgmr.msra.gmra.mxu1 %vm3526_vm11, %v9920_v59 }
 0x37c   :  { %7013 = vmatpush3.bf16.msra.mxu1 %v4886_v11  ;;  %6954 = vmatprep.mubr.msk.bf16.mxu1 %vm7310_vm10, %v11007_v56 }
 0x37d   :  { %6993 = vmatmul.mubr.msk.bf16.gmra.mxu0 %vm3526_vm11, %v9700_v51  ;;  %7014 = vmatprep.subr.bf16.mxu1 %v11007_v56  ;;  %v4839_v51 = vrot.slane %v9702_v42, 1 }
 0x37e   :  { %6996 = vmatprep.mubr.msk.bf16.mxu0 %vm7310_vm10, %v11007_v56 }
 0x380   :  { %7015 = vmatpush3.bf16.msra.mxu1 %v7278_v37 }
 0x381   :  { %7016 = vmatprep.subr.bf16.mxu1 %v11007_v56 }
 0x383   :  { %6955 = vmatmul.mubr.msk.bf16.gmra.mxu1 %vm3526_vm11, %v9926_v18 }
 0x384   :  { %6958 = vmatprep.mubr.msk.bf16.mxu1 %vm7310_vm10, %v11007_v56  ;;  %7017 = vmatpush3.bf16.msra.mxu1 %v7279_v40 }
 0x385   :  { %v3713_v30 = vpop.f32.mrf.mxu0  ;;  %6997 = vmatmul.mubr.msk.bf16.gmra.mxu0 %vm3526_vm11, %v9702_v42  ;;  %v4841_v42 = vrot.slane %v9739_v46, 1 }
 0x386   :  { %7000 = vmatprep.mubr.msk.bf16.mxu0 %vm7310_vm10, %v11007_v56 }
 0x387   :  { %v6782_v59 = vpop.f32.mrf.mxu0 }
 0x389   :  { %v3716_v25 = vpop.f32.mrf.mxu0 }
 0x38b   :  { %v6783_v21 = vpop.f32.mrf.mxu0  ;;  %6959 = vmatmul.mubr.msk.bf16.gmra.mxu1 %vm3526_vm11, %v9945_v41 }
 0x38c   :  { %6962 = vmatprep.mubr.msk.bf16.mxu1 %vm7310_vm10, %v11007_v56 }
 0x38d   :  { %v3721_v18 = vpop.f32.mrf.mxu0  ;;  %7001 = vmatmul.mubr.msk.bf16.gmra.mxu0 %vm3526_vm11, %v9739_v46  ;;  %v4843_v46 = vrot.slane %v9742_v17, 1 }
 0x38e   :  { %7004 = vmatprep.mubr.msk.bf16.mxu0 %vm7310_vm10, %v11007_v56 }
 0x38f   :  { %v6786_v49 = vpop.f32.mrf.mxu0 }
 0x390   :  { %v4838_v49 = vsel %vm1834_vm6, %v4835_v20, %v4837_v63 }
 0x391   :  { %v3724_v22 = vpop.f32.mrf.mxu0 }
 0x393   :  { %v6787_v61 = vpop.f32.mrf.mxu0  ;;  %v3585_v32 = vpop.f32.mrf.mxu1  ;;  %6963 = vmatmul.mubr.msk.bf16.gmra.mxu1 %vm3526_vm11, %v9953_v26 }
 0x394   :  { %v10189_v6 = vadd.f32 %v3713_v30, %v3585_v32  ;;  %6966 = vmatprep.mubr.msk.bf16.mxu1 %vm7310_vm10, %v11007_v56 }
 0x395   :  { %v6748_v41 = vpop.f32.mrf.mxu1  ;;  %v3729_v28 = vpop.f32.mrf.mxu0  ;;  %7005 = vmatmul.mubr.msk.bf16.gmra.mxu0 %vm3526_vm11, %v9742_v17 }
 0x396   :  { %7008 = vmatprep.mubr.msk.bf16.mxu0 %vm7310_vm10, %v11007_v56 }
 0x397   :  { %v3588_v15 = vpop.f32.mrf.mxu1  ;;  %v6790_v9 = vpop.f32.mrf.mxu0 }
 0x398   :  { %v10197_v12 = vadd.f32 %v3716_v25, %v3588_v15 }
 0x399   :  { %v6749_v3 = vpop.f32.mrf.mxu1  ;;  %v3732_v19 = vpop.f32.mrf.mxu0 }
 0x39b   :  { %v3593_v26 = vpop.f32.mrf.mxu1  ;;  %6967 = vmatmul.mubr.msk.bf16.gmra.mxu1 %vm3526_vm11, %v9971_v1  ;;  %v6791_v55 = vpop.f32.mrf.mxu0 }
 0x39c   :  { %v10201_v45 = vadd.f32 %v3721_v18, %v3593_v26  ;;  %6970 = vmatprep.mubr.msk.bf16.mxu1 %vm7310_vm10, %v11007_v56  ;;  %v4840_v55 = vsel %vm1834_vm6, %v4837_v63, %v4839_v51 }
 0x39d   :  { %v6752_v13 = vpop.f32.mrf.mxu1  ;;  %v3737_v10 = vpop.f32.mrf.mxu0  ;;  %7009 = vmatmul.mubr.msk.bf16.gmra.mxu0 %vm3526_vm11, %v9986_v44 }
 0x39f   :  { %v3596_v5 = vpop.f32.mrf.mxu1  ;;  %v6794_v58 = vpop.f32.mrf.mxu0 }
 0x3a0   :  { %v10207_v38 = vadd.f32 %v3724_v22, %v3596_v5 }
 0x3a1   :  { %v6753_v53 = vpop.f32.mrf.mxu1  ;;  %v3740_v52 = vpop.f32.mrf.mxu0 }
 0x3a3   :  { %v3601_v29 = vpop.f32.mrf.mxu1  ;;  %6971 = vmatmul.mubr.msk.bf16.gmra.mxu1 %vm3526_vm11, %v9982_v27  ;;  %v6795_v1 = vpop.f32.mrf.mxu0 }
 0x3a4   :  { %v10211_v39 = vadd.f32 %v3729_v28, %v3601_v29  ;;  %6974 = vmatprep.mubr.msk.bf16.mxu1 %vm7310_vm10, %v11007_v56 }
 0x3a5   :  { %v6756_v36 = vpop.f32.mrf.mxu1  ;;  %v3745_v14 = vpop.f32.mrf.mxu0 }
 0x3a7   :  { %v3604_v23 = vpop.f32.mrf.mxu1  ;;  %v6798_v31 = vpop.f32.mrf.mxu0 }
 0x3a8   :  { %v10215_v57 = vadd.f32 %v3732_v19, %v3604_v23  ;;  %v4842_v23 = vsel %vm1834_vm6, %v4839_v51, %v4841_v42 }
 0x3a9   :  { %v6757_v7 = vpop.f32.mrf.mxu1  ;;  %v3748_v33 = vpop.f32.mrf.mxu0 }
 0x3ab   :  { %v3609_v43 = vpop.f32.mrf.mxu1  ;;  %6975 = vmatmul.mubr.msk.bf16.gmra.mxu1 %vm3526_vm11, %v10001_v48  ;;  %v6799_v4 = vpop.f32.mrf.mxu0  ;;  %v4836_v48 = vsel %vm1834_vm6, %v4834_v34, %v4835_v20 }
 0x3ac   :  { %v10219_v27 = vadd.f32 %v3737_v10, %v3609_v43  ;;  %7018 = vmatprep.mubr.msk.bf16.mxu1 %vm7310_vm10, %v11007_v56 }
 0x3ad   :  { %v6760_v47 = vpop.f32.mrf.mxu1  ;;  %v3753_v62 = vpop.f32.mrf.mxu0 }
 0x3af   :  { %v3612_v54 = vpop.f32.mrf.mxu1  ;;  %v6802_v8 = vpop.f32.mrf.mxu0 }
 0x3b0   :  { %v10225_v2 = vadd.f32 %v3740_v52, %v3612_v54 }
 0x3b1   :  { %v6761_v24 = vpop.f32.mrf.mxu1  ;;  %v3756_v60 = vpop.f32.mrf.mxu0 }
 0x3b2   :  { %v4844_v24 = vsel %vm1834_vm6, %v4841_v42, %v4843_v46 }
 0x3b3   :  { %v3617_v50 = vpop.f32.mrf.mxu1  ;;  %7019 = vmatmul.mubr.msk.bf16.vlgmr.msra.gmra.mxu1 %vm3526_vm11, %v4836_v48  ;;  %v6803_v11 = vpop.f32.mrf.mxu0 }
 0x3b4   :  { %v10229_v37 = vadd.f32 %v3745_v14, %v3617_v50  ;;  %7022 = vmatprep.mubr.msk.bf16.mxu1 %vm7310_vm10, %v11007_v56 }
 0x3b5   :  { %v6764_v0 = vpop.f32.mrf.mxu1  ;;  %v3761_v40 = vpop.f32.mrf.mxu0 }
 0x3b7   :  { %v3620_v30 = vpop.f32.mrf.mxu1  ;;  %v6806_v59 = vpop.f32.mrf.mxu0 }
 0x3b8   :  { %v10234_v25 = vadd.f32 %v3748_v33, %v3620_v30 }
 0x3b9   :  { %v6765_v21 = vpop.f32.mrf.mxu1  ;;  %v3764_v18 = vpop.f32.mrf.mxu0 }
 0x3ba   :  { %v4846_v21 = vsel %vm1834_vm6, %v4843_v46, %v4845_v16 }
 0x3bb   :  { %v3625_v22 = vpop.f32.mrf.mxu1  ;;  %7023 = vmatmul.mubr.msk.bf16.gmra.mxu1 %vm3526_vm11, %v4838_v49  ;;  %v6807_v61 = vpop.f32.mrf.mxu0 }
 0x3bc   :  { %v10238_v32 = vadd.f32 %v3753_v62, %v3625_v22  ;;  %7026 = vmatprep.mubr.msk.bf16.mxu1 %vm7310_vm10, %v11007_v56 }
 0x3bd   :  { %v6768_v41 = vpop.f32.mrf.mxu1  ;;  %v4087_v28 = vpop.f32.mrf.mxu0 }
 0x3bf   :  { %v3628_v15 = vpop.f32.mrf.mxu1  ;;  %v6850_v9 = vpop.f32.mrf.mxu0 }
 0x3c0   :  { %v10243_v3 = vadd.f32 %v3756_v60, %v3628_v15 }
 0x3c1   :  { %v6769_v19 = vpop.f32.mrf.mxu1  ;;  %v4090_v26 = vpop.f32.mrf.mxu0 }
 0x3c3   :  { %v3633_v13 = vpop.f32.mrf.mxu1  ;;  %7027 = vmatmul.mubr.msk.bf16.gmra.mxu1 %vm3526_vm11, %v4840_v55  ;;  %v6851_v10 = vpop.f32.mrf.mxu0 }
 0x3c4   :  { %v10247_v5 = vadd.f32 %v3761_v40, %v3633_v13  ;;  %7030 = vmatprep.mubr.msk.bf16.mxu1 %vm7310_vm10, %v11007_v56 }
 0x3c5   :  { %v6772_v58 = vpop.f32.mrf.mxu1  ;;  %v4095_v53 = vpop.f32.mrf.mxu0 }
 0x3c7   :  { %v3636_v52 = vpop.f32.mrf.mxu1  ;;  %v6854_v29 = vpop.f32.mrf.mxu0 }
 0x3c8   :  { %v10252_v1 = vadd.f32 %v3764_v18, %v3636_v52 }
 0x3c9   :  { %v6773_v36 = vpop.f32.mrf.mxu1  ;;  %v4098_v14 = vpop.f32.mrf.mxu0 }
 0x3ca   :  { %v7280_v36 = vld [vmem:[%s10711_s4 + $0x38] sm:$0xff]  }
 0x3cb   :  { %v3861_v31 = vpop.f32.mrf.mxu1  ;;  %7031 = vmatmul.mubr.msk.bf16.gmra.mxu1 %vm3526_vm11, %v4842_v23  ;;  %v6855_v7 = vpop.f32.mrf.mxu0  ;;  %7046 = vmatprep.subr.bf16.mxu0 %v7280_v36  ;;  %v7281_v23 = vld [vmem:[%s10711_s4 + $0x18] sm:$0xff]  }
 0x3cc   :  { %v3916_v33 = vadd.f32 %v3861_v31, %v10189_v6  ;;  %7034 = vmatprep.mubr.msk.bf16.mxu1 %vm7310_vm10, %v11007_v56  ;;  %7047 = vmatpush3.bf16.msra.mxu0 %v7280_v36 }
 0x3cd   :  { %v6816_v43 = vpop.f32.mrf.mxu1  ;;  %v4103_v4 = vpop.f32.mrf.mxu0  ;;  %7066 = vmatprep.subr.bf16.mxu1 %v7281_v23 }
 0x3ce   :  { %v10260_v47 = vadd.f32 %v4087_v28, %v3916_v33  ;;  %7067 = vmatpush3.bf16.msra.mxu1 %v7281_v23 }
 0x3cf   :  { %v3864_v62 = vpop.f32.mrf.mxu1  ;;  %v6858_v34 = vpop.f32.mrf.mxu0 }
 0x3d0   :  { %v3917_v20 = vadd.f32 %v3864_v62, %v10197_v12 }
 0x3d1   :  { %v6817_v54 = vpop.f32.mrf.mxu1  ;;  %v4106_v8 = vpop.f32.mrf.mxu0 }
 0x3d2   :  { %v10264_v60 = vadd.f32 %v4090_v26, %v3917_v20 }
 0x3d3   :  { %v3869_v6 = vpop.f32.mrf.mxu1  ;;  %7035 = vmatmul.mubr.msk.bf16.gmra.mxu1 %vm3526_vm11, %v4844_v24  ;;  %v6859_v48 = vpop.f32.mrf.mxu0 }
 0x3d4   :  { %v3918_v50 = vadd.f32 %v3869_v6, %v10201_v45  ;;  %7038 = vmatprep.mubr.msk.bf16.mxu1 %vm7310_vm10, %v11007_v56 }
 0x3d5   :  { %v6820_v17 = vpop.f32.mrf.mxu1  ;;  %v4111_v11 = vpop.f32.mrf.mxu0 }
 0x3d6   :  { %v10270_v0 = vadd.f32 %v4095_v53, %v3918_v50 }
 0x3d7   :  { %v3872_v12 = vpop.f32.mrf.mxu1  ;;  %v6862_v40 = vpop.f32.mrf.mxu0 }
 0x3d8   :  { %v3919_v63 = vadd.f32 %v3872_v12, %v10207_v38 }
 0x3d9   :  { %v6821_v30 = vpop.f32.mrf.mxu1  ;;  %v4114_v59 = vpop.f32.mrf.mxu0 }
 0x3da   :  { %v10276_v18 = vadd.f32 %v4098_v14, %v3919_v63 }
 0x3db   :  { %v3877_v45 = vpop.f32.mrf.mxu1  ;;  %7039 = vmatmul.mubr.msk.bf16.gmra.mxu1 %vm3526_vm11, %v4846_v21  ;;  %v6863_v49 = vpop.f32.mrf.mxu0 }
 0x3dc   :  { %v3920_v22 = vadd.f32 %v3877_v45, %v10211_v39  ;;  %7042 = vmatprep.mubr.msk.bf16.mxu1 %vm7310_vm10, %v11007_v56 }
 0x3dd   :  { %v6824_v61 = vpop.f32.mrf.mxu1  ;;  %v4119_v41 = vpop.f32.mrf.mxu0 }
 0x3de   :  { %v10282_v38 = vadd.f32 %v4103_v4, %v3920_v22  ;;  %v7283_v61 = vld [vmem:[%s10711_s4 + $0x10] sm:$0xff]  }
 0x3df   :  { %v3880_v28 = vpop.f32.mrf.mxu1  ;;  %v6866_v51 = vpop.f32.mrf.mxu0  ;;  %7068 = vmatprep.subr.bf16.mxu1 %v7283_v61 }
 0x3e0   :  { %v3921_v44 = vadd.f32 %v3880_v28, %v10215_v57  ;;  %7069 = vmatpush3.bf16.msra.mxu1 %v7283_v61 }
 0x3e1   :  { %v6825_v16 = vpop.f32.mrf.mxu1  ;;  %v4122_v15 = vpop.f32.mrf.mxu0 }
 0x3e2   :  { %v10285_v9 = vadd.f32 %v4106_v8, %v3921_v44 }
 0x3e3   :  { %v3885_v19 = vpop.f32.mrf.mxu1  ;;  %7043 = vmatmul.mubr.msk.bf16.gmra.mxu1 %vm3526_vm11, %v10006_v35  ;;  %v6867_v39 = vpop.f32.mrf.mxu0 }
 0x3e4   :  { %v3922_v26 = vadd.f32 %v3885_v19, %v10219_v27 }
 0x3e5   :  { %v6828_v55 = vpop.f32.mrf.mxu1  ;;  %v4127_v13 = vpop.f32.mrf.mxu0 }
 0x3e6   :  { %v10290_v10 = vadd.f32 %v4111_v11, %v3922_v26 }
 0x3e7   :  { %v3888_v58 = vpop.f32.mrf.mxu1  ;;  %v6870_v53 = vpop.f32.mrf.mxu0 }
 0x3e8   :  { %v3923_v42 = vadd.f32 %v3888_v58, %v10225_v2 }
 0x3e9   :  { %v6829_v57 = vpop.f32.mrf.mxu1  ;;  %v4130_v52 = vpop.f32.mrf.mxu0 }
 0x3ea   :  { %v10293_v29 = vadd.f32 %v4114_v59, %v3923_v42 }
 0x3eb   :  { %v3893_v35 = vpop.f32.mrf.mxu1  ;;  %v6871_v14 = vpop.f32.mrf.mxu0 }
 0x3ec   :  { %v3924_v27 = vadd.f32 %v3893_v35, %v10229_v37 }
 0x3ed   :  { %v6832_v31 = vpop.f32.mrf.mxu1  ;;  %v4135_v7 = vpop.f32.mrf.mxu0 }
 0x3ee   :  { %v10302_v2 = vadd.f32 %v4119_v41, %v3924_v27  ;;  %v7286_v27 = vld [vmem:[%s10711_s4] sm:$0xff]  }
 0x3ef   :  { %v3896_v33 = vpop.f32.mrf.mxu1  ;;  %v6874_v43 = vpop.f32.mrf.mxu0 }
 0x3f0   :  { %v3925_v4 = vadd.f32 %v3896_v33, %v10234_v25 }
 0x3f1   :  { %v6833_v46 = vpop.f32.mrf.mxu1  ;;  %v4138_v62 = vpop.f32.mrf.mxu0 }
 0x3f2   :  { %v10305_v34 = vadd.f32 %v4122_v15, %v3925_v4 }
 0x3f3   :  { %v3901_v37 = vpop.f32.mrf.mxu1  ;;  %v6875_v20 = vpop.f32.mrf.mxu0 }
 0x3f4   :  { %v3926_v54 = vadd.f32 %v3901_v37, %v10238_v32 }
 0x3f5   :  { %v6836_v8 = vpop.f32.mrf.mxu1  ;;  %v4443_v24 = vpop.f32.mrf.mxu0 }
 0x3f6   :  { %v10308_v6 = vadd.f32 %v4127_v13, %v3926_v54  ;;  %v7284_v13 = vld [vmem:[%s10711_s4 + $0x8] sm:$0xff]  }
 0x3f7   :  { %v3904_v48 = vpop.f32.mrf.mxu1  ;;  %v6918_v50 = vpop.f32.mrf.mxu0  ;;  %7070 = vmatprep.subr.bf16.mxu1 %v7284_v13 }
 0x3f8   :  { %v3927_v17 = vadd.f32 %v3904_v48, %v10243_v3  ;;  %v7282_v3 = vld [vmem:[%s10711_s4 + $0x30] sm:$0xff]   ;;  %7071 = vmatpush3.bf16.msra.mxu1 %v7284_v13 }
 0x3f9   :  { %v6837_v11 = vpop.f32.mrf.mxu1  ;;  %v4446_v12 = vpop.f32.mrf.mxu0  ;;  %7048 = vmatprep.subr.bf16.mxu0 %v7282_v3  ;;  %7072 = vmatprep.subr.bf16.mxu1 %v7286_v27 }
 0x3fa   :  { %v10311_v40 = vadd.f32 %v4130_v52, %v3927_v17  ;;  %7049 = vmatpush3.bf16.msra.mxu0 %v7282_v3  ;;  %v7287_v11 = vld [vmem:[%s10711_s4 + $0x20] sm:$0xff]  }
 0x3fb   :  { %v3909_v25 = vpop.f32.mrf.mxu1  ;;  %v6919_v63 = vpop.f32.mrf.mxu0 }
 0x3fc   :  { %v3928_v30 = vadd.f32 %v3909_v25, %v10247_v5  ;;  %7073 = vmatpush3.bf16.msra.mxu1 %v7286_v27 }
 0x3fd   :  { %v6840_v59 = vpop.f32.mrf.mxu1  ;;  %v4451_v21 = vpop.f32.mrf.mxu0 }
 0x3fe   :  { %v10314_v45 = vadd.f32 %v4135_v7, %v3928_v30 }
 0x3ff   :  { %v3912_v32 = vpop.f32.mrf.mxu1  ;;  %v6922_v49 = vpop.f32.mrf.mxu0 }
 0x400   :  { %v3929_v22 = vadd.f32 %v3912_v32, %v10252_v1 }
 0x401   :  { %v6841_v41 = vpop.f32.mrf.mxu1  ;;  %v4454_v28 = vpop.f32.mrf.mxu0 }
 0x402   :  { %v10323_v51 = vadd.f32 %v4138_v62, %v3929_v22 }
 0x403   :  { %v4265_v5 = vpop.f32.mrf.mxu1  ;;  %v6923_v44 = vpop.f32.mrf.mxu0 }
 0x404   :  { %v4320_v1 = vadd.f32 %v4265_v5, %v10260_v47 }
 0x405   :  { %v6884_v16 = vpop.f32.mrf.mxu1  ;;  %v4459_v15 = vpop.f32.mrf.mxu0 }
 0x406   :  { %v10326_v19 = vadd.f32 %v4443_v24, %v4320_v1 }
 0x407   :  { %v4268_v39 = vpop.f32.mrf.mxu1  ;;  %v6926_v26 = vpop.f32.mrf.mxu0 }
 0x408   :  { %v4321_v55 = vadd.f32 %v4268_v39, %v10264_v60  ;;  %v7285_v60 = vld [vmem:[%s10711_s4 + $0x28] sm:$0xff]  }
 0x409   :  { %v6885_v58 = vpop.f32.mrf.mxu1  ;;  %v4462_v53 = vpop.f32.mrf.mxu0  ;;  %7050 = vmatprep.subr.bf16.mxu0 %v7285_v60 }
 0x40a   :  { %v10332_v42 = vadd.f32 %v4446_v12, %v4321_v55  ;;  %7051 = vmatpush3.bf16.msra.mxu0 %v7285_v60  ;;  %v10373_v55 = vld [vmem:[%s10711_s4 + $0x78] sm:$0xff]  }
 0x40b   :  { %v4273_v57 = vpop.f32.mrf.mxu1  ;;  %v6927_v52 = vpop.f32.mrf.mxu0  ;;  %7052 = vmatprep.subr.bf16.mxu0 %v7287_v11  ;;  %7106 = vmatprep.subr.bf16.mxu1 %v10373_v55 }
 0x40c   :  { %v4322_v47 = vadd.f32 %v4273_v57, %v10270_v0 }
 0x40d   :  { %v6888_v36 = vpop.f32.mrf.mxu1  ;;  %v4467_v35 = vpop.f32.mrf.mxu0 }
 0x40e   :  { %v10335_v14 = vadd.f32 %v4451_v21, %v4322_v47  ;;  %7053 = vmatpush3.bf16.msra.mxu0 %v7287_v11 }
 0x40f   :  { %v4276_v23 = vpop.f32.mrf.mxu1  ;;  %v6930_v31 = vpop.f32.mrf.mxu0 }
 0x410   :  { %v4323_v7 = vadd.f32 %v4276_v23, %v10276_v18 }
 0x411   :  { %v6889_v33 = vpop.f32.mrf.mxu1  ;;  %v4470_v0 = vpop.f32.mrf.mxu0 }
 0x412   :  { %v10344_v43 = vadd.f32 %v4454_v28, %v4323_v7 }
 0x413   :  { %v4281_v4 = vpop.f32.mrf.mxu1  ;;  %v6931_v46 = vpop.f32.mrf.mxu0 }
 0x414   :  { %v4324_v62 = vadd.f32 %v4281_v4, %v10282_v38 }
 0x415   :  { %v6892_v37 = vpop.f32.mrf.mxu1  ;;  %v4475_v20 = vpop.f32.mrf.mxu0 }
 0x416   :  { %v10347_v54 = vadd.f32 %v4459_v15, %v4324_v62 }
 0x417   :  { %v4284_v8 = vpop.f32.mrf.mxu1  ;;  %v6934_v24 = vpop.f32.mrf.mxu0 }
 0x418   :  { %v4325_v18 = vadd.f32 %v4284_v8, %v10285_v9 }
 0x419   :  { %v6893_v48 = vpop.f32.mrf.mxu1  ;;  %v4478_v50 = vpop.f32.mrf.mxu0 }
 0x41a   :  { %v10350_v17 = vadd.f32 %v4462_v53, %v4325_v18 }
 0x41b   :  { %v4289_v12 = vpop.f32.mrf.mxu1  ;;  %v6935_v25 = vpop.f32.mrf.mxu0 }
 0x41c   :  { %v4326_v38 = vadd.f32 %v4289_v12, %v10290_v10 }
 0x41d   :  { %v6896_v63 = vpop.f32.mrf.mxu1  ;;  %v4483_v30 = vpop.f32.mrf.mxu0 }
 0x41e   :  { %v10356_v59 = vadd.f32 %v4467_v35, %v4326_v38 }
 0x41f   :  { %v4292_v21 = vpop.f32.mrf.mxu1  ;;  %v6938_v9 = vpop.f32.mrf.mxu0 }
 0x420   :  { %v4327_v32 = vadd.f32 %v4292_v21, %v10293_v29  ;;  %v10368_v29 = vld [vmem:[%s10711_s4 + $0x58] sm:$0xff]  }
 0x421   :  { %v6897_v49 = vpop.f32.mrf.mxu1  ;;  %v4486_v22 = vpop.f32.mrf.mxu0  ;;  %7086 = vmatprep.subr.bf16.mxu0 %v10368_v29 }
 0x422   :  { %v10359_v3 = vadd.f32 %v4470_v0, %v4327_v32 }
 0x423   :  { %v4297_v61 = vpop.f32.mrf.mxu1  ;;  %v6939_v41 = vpop.f32.mrf.mxu0 }
 0x424   :  { %v4328_v28 = vadd.f32 %v4297_v61, %v10302_v2 }
 0x425   :  { %v6900_v5 = vpop.f32.mrf.mxu1  ;;  %v4491_v10 = vpop.f32.mrf.mxu0 }
 0x426   :  { %v10362_v44 = vadd.f32 %v4475_v20, %v4328_v28 }
 0x427   :  { %v4300_v1 = vpop.f32.mrf.mxu1  ;;  %v6942_v16 = vpop.f32.mrf.mxu0 }
 0x428   :  { %v4329_v15 = vadd.f32 %v4300_v1, %v10305_v34 }
 0x429   :  { %v6901_v39 = vpop.f32.mrf.mxu1  ;;  %v4494_v26 = vpop.f32.mrf.mxu0 }
 0x42a   :  { %v10375_v2 = vadd.f32 %v4478_v50, %v4329_v15 }
 0x42b   :  { %v4305_v13 = vpop.f32.mrf.mxu1  ;;  %v6943_v58 = vpop.f32.mrf.mxu0 }
 0x42c   :  { %v4330_v34 = vadd.f32 %v4305_v13, %v10308_v6 }
 0x42d   :  { %v6904_v53 = vpop.f32.mrf.mxu1  ;;  %v4751_v57 = vpop.f32.mrf.mxu0 }
 0x42e   :  { %v10380_v52 = vadd.f32 %v4483_v30, %v4330_v34 }
 0x42f   :  { %v4308_v47 = vpop.f32.mrf.mxu1  ;;  %v6986_v36 = vpop.f32.mrf.mxu0 }
 0x430   :  { %v4331_v35 = vadd.f32 %v4308_v47, %v10311_v40 }
 0x431   :  { %v6905_v60 = vpop.f32.mrf.mxu1  ;;  %v4754_v27 = vpop.f32.mrf.mxu0 }
 0x432   :  { %v10383_v23 = vadd.f32 %v4486_v22, %v4331_v35 }
 0x433   :  { %v4313_v31 = vpop.f32.mrf.mxu1  ;;  %v6987_v7 = vpop.f32.mrf.mxu0 }
 0x434   :  { %v4332_v33 = vadd.f32 %v4313_v31, %v10314_v45 }
 0x435   :  { %v6908_v0 = vpop.f32.mrf.mxu1  ;;  %v4759_v4 = vpop.f32.mrf.mxu0 }
 0x436   :  { %v10386_v46 = vadd.f32 %v4491_v10, %v4332_v33 }
 0x437   :  { %v4316_v6 = vpop.f32.mrf.mxu1  ;;  %v6990_v62 = vpop.f32.mrf.mxu0 }
 0x438   :  { %v4333_v37 = vadd.f32 %v4316_v6, %v10323_v51 }
 0x439   :  { %v6909_v20 = vpop.f32.mrf.mxu1  ;;  %v4762_v8 = vpop.f32.mrf.mxu0 }
 0x43a   :  { %v10389_v24 = vadd.f32 %v4494_v26, %v4333_v37 }
 0x43b   :  { %v4609_v40 = vpop.f32.mrf.mxu1  ;;  %v6991_v18 = vpop.f32.mrf.mxu0 }
 0x43c   :  { %v4664_v48 = vadd.f32 %v4609_v40, %v10326_v19 }
 0x43d   :  { %v6952_v50 = vpop.f32.mrf.mxu1  ;;  %v4767_v11 = vpop.f32.mrf.mxu0 }
 0x43e   :  { %v10392_v12 = vadd.f32 %v4751_v57, %v4664_v48 }
 0x43f   :  { %v4612_v45 = vpop.f32.mrf.mxu1  ;;  %v6994_v25 = vpop.f32.mrf.mxu0 }
 0x440   :  { %v4665_v38 = vadd.f32 %v4612_v45, %v10332_v42 }
 0x441   :  { %v6953_v63 = vpop.f32.mrf.mxu1  ;;  %v4770_v30 = vpop.f32.mrf.mxu0 }
 0x442   :  { %v10395_v21 = vadd.f32 %v4754_v27, %v4665_v38 }
 0x443   :  { %v4617_v51 = vpop.f32.mrf.mxu1  ;;  %v6995_v9 = vpop.f32.mrf.mxu0 }
 0x444   :  { %v4666_v32 = vadd.f32 %v4617_v51, %v10335_v14 }
 0x445   :  { %v6956_v49 = vpop.f32.mrf.mxu1  ;;  %v4775_v22 = vpop.f32.mrf.mxu0 }
 0x446   :  { %v10398_v61 = vadd.f32 %v4759_v4, %v4666_v32 }
 0x447   :  { %v4620_v19 = vpop.f32.mrf.mxu1  ;;  %v6998_v41 = vpop.f32.mrf.mxu0 }
 0x448   :  { %v4667_v28 = vadd.f32 %v4620_v19, %v10344_v43  ;;  %v11011_v19 = vld [vmem:[#allocation5_spill] sm:$0xff] }
 0x449   :  { %v6957_v5 = vpop.f32.mrf.mxu1  ;;  %v4778_v10 = vpop.f32.mrf.mxu0  ;;  %v4993_v41 = vsub.s32 4, %v11011_v19 }
 0x44a   :  { %v10401_v1 = vadd.f32 %v4762_v8, %v4667_v28 }
 0x44b   :  { %v4625_v42 = vpop.f32.mrf.mxu1  ;;  %v6999_v16 = vpop.f32.mrf.mxu0 }
 0x44c   :  { %v4668_v15 = vadd.f32 %v4625_v42, %v10347_v54  ;;  %v10435_v42 = vld [vmem:[%s10709_s8] sm:$0xff]  ;;  %v5011_v16 = vsub.s32 5, %v11011_v19 }
 0x44d   :  { %v6960_v39 = vpop.f32.mrf.mxu1  ;;  %v4783_v26 = vpop.f32.mrf.mxu0 }
 0x44e   :  { %v10404_v13 = vadd.f32 %v4767_v11, %v4668_v15 }
 0x44f   :  { %v4628_v14 = vpop.f32.mrf.mxu1  ;;  %v7002_v58 = vpop.f32.mrf.mxu0 }
 0x450   :  { %v4669_v34 = vadd.f32 %v4628_v14, %v10350_v17 }
 0x451   :  { %v6961_v53 = vpop.f32.mrf.mxu1  ;;  %v4786_v57 = vpop.f32.mrf.mxu0 }
 0x452   :  { %v10407_v47 = vadd.f32 %v4770_v30, %v4669_v34 }
 0x453   :  { %v4633_v43 = vpop.f32.mrf.mxu1  ;;  %v7003_v36 = vpop.f32.mrf.mxu0 }
 0x454   :  { %v4670_v35 = vadd.f32 %v4633_v43, %v10356_v59 }
 0x455   :  { %v6964_v60 = vpop.f32.mrf.mxu1  ;;  %v4791_v27 = vpop.f32.mrf.mxu0 }
 0x456   :  { %v10410_v31 = vadd.f32 %v4775_v22, %v4670_v35 }
 0x457   :  { %v4636_v54 = vpop.f32.mrf.mxu1  ;;  %v7006_v7 = vpop.f32.mrf.mxu0 }
 0x458   :  { %v4671_v33 = vadd.f32 %v4636_v54, %v10359_v3 }
 0x459   :  { %v6965_v0 = vpop.f32.mrf.mxu1  ;;  %v4794_v4 = vpop.f32.mrf.mxu0 }
 0x45a   :  { %v10413_v6 = vadd.f32 %v4778_v10, %v4671_v33 }
 0x45b   :  { %v4641_v17 = vpop.f32.mrf.mxu1  ;;  %v7007_v62 = vpop.f32.mrf.mxu0 }
 0x45c   :  { %v4672_v37 = vadd.f32 %v4641_v17, %v10362_v44 }
 0x45d   :  { %v6968_v20 = vpop.f32.mrf.mxu1  ;;  %v4799_v8 = vpop.f32.mrf.mxu0 }
 0x45e   :  { %v10416_v40 = vadd.f32 %v4783_v26, %v4672_v37 }
 0x45f   :  { %v4644_v59 = vpop.f32.mrf.mxu1  ;;  %v7010_v18 = vpop.f32.mrf.mxu0 }
 0x460   :  { %v4673_v48 = vadd.f32 %v4644_v59, %v10375_v2 }
 0x461   :  { %v6969_v50 = vpop.f32.mrf.mxu1  ;;  %v4802_v11 = vpop.f32.mrf.mxu0 }
 0x462   :  { %v10419_v45 = vadd.f32 %v4786_v57, %v4673_v48 }
 0x463   :  { %v4649_v3 = vpop.f32.mrf.mxu1  ;;  %v7011_v25 = vpop.f32.mrf.mxu0 }
 0x464   :  { %v4674_v38 = vadd.f32 %v4649_v3, %v10380_v52 }
 0x465   :  { %v6972_v63 = vpop.f32.mrf.mxu1 }
 0x466   :  { %v10422_v30 = vadd.f32 %v4791_v27, %v4674_v38  ;;  %v7290_v38 = vld [vmem:[%s10711_s4 + $0x70] sm:$0xff]  }
 0x467   :  { %v4652_v44 = vpop.f32.mrf.mxu1 }
 0x468   :  { %v4675_v51 = vadd.f32 %v4652_v44, %v10383_v23  ;;  %v10438_v23 = vrot.slane %v10435_v42, %v4993_v41 }
 0x469   :  { %v6973_v9 = vpop.f32.mrf.mxu1 }
 0x46a   :  { %v10425_v32 = vadd.f32 %v4794_v4, %v4675_v51 }
 0x46b   :  { %v4657_v49 = vpop.f32.mrf.mxu1 }
 0x46c   :  { %v4676_v2 = vadd.f32 %v4657_v49, %v10386_v46 }
 0x46d   :  { %v6976_v22 = vpop.f32.mrf.mxu1 }
 0x46e   :  { %v10429_v28 = vadd.f32 %v4799_v8, %v4676_v2 }
 0x46f   :  { %v4660_v5 = vpop.f32.mrf.mxu1 }
 0x470   :  { %v4677_v52 = vadd.f32 %v4660_v5, %v10389_v24  ;;  %v10446_v24 = vrot.slane %v10435_v42, %v5011_v16 }
 0x471   :  { %v6977_v10 = vpop.f32.mrf.mxu1 }
 0x472   :  { %v10441_v46 = vadd.f32 %v4802_v11, %v4677_v52  ;;  %v7292_v10 = vld [vmem:[%s10711_s4 + $0x68] sm:$0xff]  }
 0x473   :  { %v4922_v15 = vpop.f32.mrf.mxu1 }
 0x474   :  { %v4977_v39 = vadd.f32 %v4922_v15, %v10392_v12 }
 0x475   :  { %v7020_v26 = vpop.f32.mrf.mxu1 }
 0x476   :  { %v4995_v14 = vmul.f32 %v10438_v23, %v4977_v39 }
 0x477   :  { %v4925_v58 = vpop.f32.mrf.mxu1 }
 0x478   :  { %v4978_v34 = vadd.f32 %v4925_v58, %v10395_v21  ;;  %v5013_v57 = vadd.f32 %v10446_v24, %v4995_v14 }
 0x479   :  { %v7021_v53 = vpop.f32.mrf.mxu1 }
 0x47a   :  { %v4996_v43 = vmul.f32 %v10438_v23, %v4978_v34  ;;  %v5027_v27 = vmax.f32 %v5013_v57, 0.0 }
 0x47b   :  { %v4930_v36 = vpop.f32.mrf.mxu1 }
 0x47c   :  { %v5014_v35 = vadd.f32 %v10446_v24, %v4996_v43  ;;  %v4979_v60 = vadd.f32 %v4930_v36, %v10398_v61 }
 0x47d   :  { %v7024_v12 = vpop.f32.mrf.mxu1 }
 0x47e   :  { %v5028_v54 = vmax.f32 %v5014_v35, 0.0  ;;  %v4997_v7 = vmul.f32 %v10438_v23, %v4979_v60  ;;  %v7294_v60 = vld [vmem:[%s10711_s4 + $0x60] sm:$0xff]  }
 0x47f   :  { %v4933_v33 = vpop.f32.mrf.mxu1 }
 0x480   :  { %v5041_v0 = vpack.c.bf16 %v5028_v54, %v5027_v27  ;;  %v5015_v21 = vadd.f32 %v10446_v24, %v4997_v7  ;;  %v4980_v4 = vadd.f32 %v4933_v33, %v10401_v1 }
 0x481   :  { %v7025_v17 = vpop.f32.mrf.mxu1 }
 0x482   :  { %v5029_v62 = vmax.f32 %v5015_v21, 0.0  ;;  %v4998_v37 = vmul.f32 %v10438_v23, %v4980_v4  ;;  %7074 = vmatprep.mubr.msk.bf16.mxu1 %vm5108_vm12, %v5041_v0 }
 0x483   :  { %v4938_v20 = vpop.f32.mrf.mxu1 }
 0x484   :  { %v5331_v61 = vpack.c.bf16 %v5029_v62, %v5028_v54  ;;  %v5016_v8 = vadd.f32 %v10446_v24, %v4998_v37  ;;  %v4981_v59 = vadd.f32 %v4938_v20, %v10404_v13  ;;  %v5071_v13 = vrot.slane %v5041_v0, 1 }
 0x485   :  { %v7028_v18 = vpop.f32.mrf.mxu1 }
 0x486   :  { %v5030_v48 = vmax.f32 %v5016_v8, 0.0  ;;  %v4999_v50 = vmul.f32 %v10438_v23, %v4981_v59  ;;  %v5347_v49 = vshrl.u32 %v5331_v61, 16  ;;  %v5350_v2 = vshll.u32 %v5331_v61, 16 }
 0x487   :  { %v4941_v11 = vpop.f32.mrf.mxu1 }
 0x488   :  { %v5042_v3 = vpack.c.bf16 %v5030_v48, %v5029_v62  ;;  %v5017_v1 = vadd.f32 %v10446_v24, %v4999_v50  ;;  %v4982_v25 = vadd.f32 %v4941_v11, %v10407_v47  ;;  %v5551_v58 = vrot.slane %v5347_v49, 2 }
 0x489   :  { %v7029_v63 = vpop.f32.mrf.mxu1  ;;  %v5552_v34 = vrot.slane %v5350_v2, 3  ;;  %v5352_v53 = vrot.slane %v5350_v2, 2 }
 0x48a   :  { %v5031_v44 = vmax.f32 %v5017_v1, 0.0  ;;  %v5000_v51 = vmul.f32 %v10438_v23, %v4982_v25  ;;  %7075 = vmatmul.mubr.msk.bf16.vlgmr.msra.gmra.mxu1 %vm5108_vm12, %v5042_v3  ;;  %v5072_v9 = vrot.slane %v5042_v3, 1  ;;  %v7293_v63 = vld [vmem:[%s10711_s4 + $0x48] sm:$0xff]  }
 0x48b   :  { %v4946_v22 = vpop.f32.mrf.mxu1  ;;  %7107 = vmatpush3.bf16.msra.mxu1 %v10373_v55  ;;  %v5553_v17 = vor.u32 %v5552_v34, %v5551_v58 }
 0x48c   :  { %v5332_v41 = vpack.c.bf16 %v5031_v44, %v5030_v48  ;;  %v5018_v47 = vadd.f32 %v10446_v24, %v5000_v51  ;;  %v4983_v5 = vadd.f32 %v4946_v22, %v10410_v31  ;;  %v5073_v52 = vsel %vm1834_vm6, %v5071_v13, %v5072_v9  ;;  %7108 = vmatprep.subr.bf16.mxu1 %v7290_v38 }
 0x48d   :  { %v7032_v16 = vpop.f32.mrf.mxu1  ;;  %7054 = vmatprep.mubr.msk.bf16.mxu0 %vm5108_vm12, %v5073_v52  ;;  %v5349_v31 = vrot.slane %v5347_v49, 1 }
 0x48e   :  { %v5355_v15 = vshrl.u32 %v5332_v41, 16  ;;  %v5358_v39 = vshll.u32 %v5332_v41, 16  ;;  %v5032_v26 = vmax.f32 %v5018_v47, 0.0  ;;  %v5001_v55 = vmul.f32 %v10438_v23, %v4983_v5 }
 0x48f   :  { %v4949_v14 = vpop.f32.mrf.mxu1  ;;  %7109 = vmatpush3.bf16.msra.mxu1 %v7290_v38  ;;  %v5353_v37 = vor.u32 %v5352_v53, %v5349_v31 }
 0x490   :  { %v10477_v57 = vpack.c.bf16 %v5032_v26, %v5031_v44  ;;  %v5019_v43 = vadd.f32 %v10446_v24, %v5001_v55  ;;  %v4984_v36 = vadd.f32 %v4949_v14, %v10413_v6  ;;  %7110 = vmatprep.subr.bf16.mxu1 %v7292_v10  ;;  %v5554_v35 = vrot.slane %v5355_v15, 2  ;;  %v7291_v6 = vld [vmem:[%s10711_s4 + $0x50] sm:$0xff]  }
 0x491   :  { %v7033_v12 = vpop.f32.mrf.mxu1  ;;  %v5555_v27 = vrot.slane %v5358_v39, 3  ;;  %v5357_v54 = vrot.slane %v5355_v15, 1  ;;  %v5360_v7 = vrot.slane %v5358_v39, 2  ;;  %v7295_v15 = vld [vmem:[%s10711_s4 + $0x40] sm:$0xff]  }
 0x492   :  { %v5074_v33 = vrot.slane %v10477_v57, 1  ;;  %v5033_v0 = vmax.f32 %v5019_v43, 0.0  ;;  %v5002_v21 = vmul.f32 %v10438_v23, %v4984_v36  ;;  %7078 = vmatprep.mubr.msk.bf16.mxu1 %vm5108_vm12, %v10477_v57 }
 0x493   :  { %v4954_v4 = vpop.f32.mrf.mxu1  ;;  %7111 = vmatpush3.bf16.msra.mxu1 %v7292_v10  ;;  %v5556_v62 = vor.u32 %v5555_v27, %v5554_v35  ;;  %v5361_v20 = vor.u32 %v5360_v7, %v5357_v54 }
 0x494   :  { %v5333_v61 = vpack.c.bf16 %v5033_v0, %v5032_v26  ;;  %v5020_v8 = vadd.f32 %v10446_v24, %v5002_v21  ;;  %v4985_v59 = vadd.f32 %v4954_v4, %v10416_v40  ;;  %v5075_v18 = vsel %vm1834_vm6, %v5072_v9, %v5074_v33  ;;  %7112 = vmatprep.subr.bf16.mxu1 %v7294_v60 }
 0x495   :  { %v7036_v48 = vpop.f32.mrf.mxu1  ;;  %7055 = vmatmul.mubr.msk.bf16.vlgmr.msra.gmra.mxu0 %vm5108_vm12, %v5075_v18  ;;  %v10496_v50 = vsel %vm2512_vm7, %v5553_v17, %v5556_v62  ;;  %v10499_v11 = vsel %vm2040_vm5, %v5353_v37, %v5361_v20 }
 0x496   :  { %v5364_v3 = vshrl.u32 %v5333_v61, 16  ;;  %v5367_v1 = vshll.u32 %v5333_v61, 16  ;;  %v5034_v25 = vmax.f32 %v5020_v8, 0.0  ;;  %v5003_v38 = vmul.f32 %v10438_v23, %v4985_v59  ;;  %7087 = vmatpush3.bf16.msra.mxu0 %v10368_v29 }
 0x497   :  { %v4957_v40 = vpop.f32.mrf.mxu1  ;;  %7088 = vmatprep.subr.bf16.mxu0 %v7291_v6  ;;  %7113 = vmatpush3.bf16.msra.mxu1 %v7294_v60 }
 0x498   :  { %v5366_v44 = vrot.slane %v5364_v3, 1  ;;  %v5369_v51 = vrot.slane %v5367_v1, 2  ;;  %v5558_v13 = vrot.slane %v5364_v3, 2  ;;  %v5559_v9 = vrot.slane %v5367_v1, 3  ;;  %7153 = vmatprep.subr.bf16.mxu1 %v11007_v56 }
 0x499   :  { %v5044_v49 = vpack.c.bf16 %v5034_v25, %v5033_v0  ;;  %v5021_v2 = vadd.f32 %v10446_v24, %v5003_v38  ;;  %v4986_v22 = vadd.f32 %v4957_v40, %v10419_v45  ;;  %v7037_v41 = vpop.f32.mrf.mxu1 }
 0x49a   :  { %v5370_v29 = vor.u32 %v5369_v51, %v5366_v44  ;;  %v5560_v47 = vor.u32 %v5559_v9, %v5558_v13  ;;  %7089 = vmatpush3.bf16.msra.mxu0 %v7291_v6 }
 0x49b   :  { %v5035_v5 = vmax.f32 %v5021_v2, 0.0  ;;  %v5004_v52 = vmul.f32 %v10438_v23, %v4986_v22  ;;  %7079 = vmatmul.mubr.msk.bf16.gmra.mxu1 %vm5108_vm12, %v5044_v49  ;;  %v4962_v10 = vpop.f32.mrf.mxu1  ;;  %v5076_v16 = vrot.slane %v5044_v49, 1  ;;  %7090 = vmatprep.subr.bf16.mxu0 %v7293_v63 }
 0x49c   :  { %v4987_v39 = vadd.f32 %v4962_v10, %v10422_v30  ;;  %v10516_v45 = vsel %vm2512_vm7, %v5556_v62, %v5560_v47  ;;  %v10519_v26 = vsel %vm2040_vm5, %v5361_v20, %v5370_v29 }
 0x49d   :  { %v5334_v55 = vpack.c.bf16 %v5035_v5, %v5034_v25  ;;  %v5022_v14 = vadd.f32 %v10446_v24, %v5004_v52  ;;  %v7040_v58 = vpop.f32.mrf.mxu1  ;;  %v5077_v34 = vsel %vm1834_vm6, %v5074_v33, %v5076_v16 }
 0x49e   :  { %v5005_v31 = vmul.f32 %v10438_v23, %v4987_v39  ;;  %7058 = vmatprep.mubr.msk.bf16.mxu0 %vm5108_vm12, %v5077_v34  ;;  %7091 = vmatpush3.bf16.msra.mxu0 %v7293_v63 }
 0x49f   :  { %v5373_v53 = vshrl.u32 %v5334_v55, 16  ;;  %v5376_v57 = vshll.u32 %v5334_v55, 16  ;;  %v5036_v30 = vmax.f32 %v5022_v14, 0.0  ;;  %v4965_v43 = vpop.f32.mrf.mxu1  ;;  %7092 = vmatprep.subr.bf16.mxu0 %v7295_v15 }
 0x4a0   :  { %v5023_v36 = vadd.f32 %v10446_v24, %v5005_v31  ;;  %v4988_v35 = vadd.f32 %v4965_v43, %v10425_v32 }
 0x4a1   :  { %v5045_v60 = vpack.c.bf16 %v5036_v30, %v5035_v5  ;;  %v7041_v12 = vpop.f32.mrf.mxu1  ;;  %v5562_v27 = vrot.slane %v5373_v53, 2  ;;  %v5563_v54 = vrot.slane %v5376_v57, 3  ;;  %v5375_v7 = vrot.slane %v5373_v53, 1 }
 0x4a2   :  { %v5037_v33 = vmax.f32 %v5023_v36, 0.0  ;;  %v5006_v0 = vmul.f32 %v10438_v23, %v4988_v35  ;;  %7093 = vmatpush3.bf16.msra.mxu0 %v7295_v15  ;;  %v5378_v21 = vrot.slane %v5376_v57, 2 }
 0x4a3   :  { %v5078_v4 = vrot.slane %v5045_v60, 1  ;;  %7082 = vmatprep.mubr.msk.bf16.mxu1 %vm5108_vm12, %v5045_v60  ;;  %v4970_v6 = vpop.f32.mrf.mxu1  ;;  %v5564_v17 = vor.u32 %v5563_v54, %v5562_v27  ;;  %7126 = vmatprep.subr.mxu0 %v11007_v56 }
 0x4a4   :  { %v5335_v62 = vpack.c.bf16 %v5037_v33, %v5036_v30  ;;  %v5024_v32 = vadd.f32 %v10446_v24, %v5006_v0  ;;  %v4989_v37 = vadd.f32 %v4970_v6, %v10429_v28  ;;  %v5379_v20 = vor.u32 %v5378_v21, %v5375_v7  ;;  %v7299_v6 = vld [vmem:[%s10712_s5 + $0x8] sm:$0xff]  }
 0x4a5   :  { %v7044_v61 = vpop.f32.mrf.mxu1  ;;  %v5079_v8 = vsel %vm1834_vm6, %v5076_v16, %v5078_v4  ;;  %v5565_v59 = vsel %vm2512_vm7, %v5560_v47, %v5564_v17 }
 0x4a6   :  { %v5382_v18 = vshrl.u32 %v5335_v62, 16  ;;  %v5385_v48 = vshll.u32 %v5335_v62, 16  ;;  %v5038_v3 = vmax.f32 %v5024_v32, 0.0  ;;  %v5007_v1 = vmul.f32 %v10438_v23, %v4989_v37  ;;  %7059 = vmatmul.mubr.msk.bf16.gmra.mxu0 %vm5108_vm12, %v5079_v8 }
 0x4a7   :  { %v4973_v25 = vpop.f32.mrf.mxu1  ;;  %v5380_v38 = vsel %vm2040_vm5, %v5370_v29, %v5379_v20 }
 0x4a8   :  { %v5384_v40 = vrot.slane %v5382_v18, 1  ;;  %v5387_v63 = vrot.slane %v5385_v48, 2  ;;  %v5566_v44 = vrot.slane %v5382_v18, 2  ;;  %v5567_v28 = vrot.slane %v5385_v48, 3 }
 0x4a9   :  { %v5046_v51 = vpack.c.bf16 %v5038_v3, %v5037_v33  ;;  %v5025_v13 = vadd.f32 %v10446_v24, %v5007_v1  ;;  %v4990_v9 = vadd.f32 %v4973_v25, %v10441_v46  ;;  %v7045_v49 = vpop.f32.mrf.mxu1 }
 0x4aa   :  { %v5568_v2 = vor.u32 %v5567_v28, %v5566_v44  ;;  %v5388_v22 = vor.u32 %v5387_v63, %v5384_v40 }
 0x4ab   :  { %v5039_v41 = vmax.f32 %v5025_v13, 0.0  ;;  %v5008_v47 = vmul.f32 %v10438_v23, %v4990_v9  ;;  %7083 = vmatmul.mubr.msk.bf16.gmra.mxu1 %vm5108_vm12, %v5046_v51  ;;  %v5080_v5 = vrot.slane %v5046_v51, 1 }
 0x4ac   :  { %7114 = vmatprep.mubr.msk.bf16.mxu1 %vm5108_vm12, %v10496_v50  ;;  %v5569_v29 = vsel %vm2512_vm7, %v5564_v17, %v5568_v2  ;;  %v5389_v52 = vsel %vm2040_vm5, %v5379_v20, %v5388_v22 }
 0x4ad   :  { %v5055_v10 = vpack.c.bf16 %v5039_v41, %v5039_v41  ;;  %v5336_v16 = vpack.c.bf16 %v5039_v41, %v5038_v3  ;;  %v5026_v46 = vadd.f32 %v10446_v24, %v5008_v47  ;;  %v5081_v15 = vsel %vm1834_vm6, %v5078_v4, %v5080_v5  ;;  %v7298_v4 = vld [vmem:[%s10712_s5 + $0x10] sm:$0xff]  }
 0x4ae   :  { %7062 = vmatprep.mubr.msk.bf16.mxu0 %vm5108_vm12, %v5081_v15 }
 0x4af   :  { %v5082_v39 = vrot.slane %v5055_v10, 1  ;;  %v5391_v23 = vshrl.u32 %v5336_v16, 16  ;;  %v5394_v55 = vshll.u32 %v5336_v16, 16  ;;  %v5040_v14 = vmax.f32 %v5026_v46, 0.0 }
 0x4b1   :  { %v5337_v58 = vpack.c.bf16 %v5040_v14, %v5040_v14  ;;  %v5083_v34 = vsel %vm1834_vm6, %v5080_v5, %v5082_v39  ;;  %v5570_v50 = vrot.slane %v5391_v23, 2  ;;  %v5571_v31 = vrot.slane %v5394_v55, 3 }
 0x4b2   :  { %7063 = vmatmul.mubr.msk.bf16.gmra.mxu0 %vm5108_vm12, %v5083_v34  ;;  %v5393_v53 = vrot.slane %v5391_v23, 1  ;;  %v5396_v57 = vrot.slane %v5394_v55, 2 }
 0x4b3   :  { %v5400_v30 = vshrl.u32 %v5337_v58, 16  ;;  %v5403_v43 = vshll.u32 %v5337_v58, 16  ;;  %7094 = vmatprep.mubr.msk.bf16.mxu0 %vm5108_vm12, %v10499_v11  ;;  %7115 = vmatmul.mubr.msk.bf16.vlgmr.msra.gmra.mxu1 %vm5108_vm12, %v10516_v45  ;;  %v5572_v24 = vor.u32 %v5571_v31, %v5570_v50  ;;  %v7296_v45 = vld [vmem:[%s10712_s5 + $0x20] sm:$0xff]  }
 0x4b4   :  { %7118 = vmatprep.mubr.msk.bf16.mxu1 %vm5108_vm12, %v5565_v59  ;;  %v5397_v36 = vor.u32 %v5396_v57, %v5393_v53  ;;  %7154 = vmatpush3.bf16.msra.mxu1 %v7296_v45 }
 0x4b5   :  { %v5402_v35 = vrot.slane %v5400_v30, 1  ;;  %v5405_v60 = vrot.slane %v5403_v43, 2  ;;  %v5574_v12 = vrot.slane %v5400_v30, 2  ;;  %v5575_v27 = vrot.slane %v5403_v43, 3  ;;  %7155 = vmatprep.subr.bf16.mxu1 %v11007_v56 }
 0x4b6   :  { %v5573_v54 = vsel %vm2512_vm7, %v5568_v2, %v5572_v24  ;;  %v5398_v7 = vsel %vm2040_vm5, %v5388_v22, %v5397_v36  ;;  %v5715_v43 = vsub.s32 6, %v11011_v19 }
 0x4b7   :  { %v5576_v33 = vor.u32 %v5575_v27, %v5574_v12  ;;  %v5406_v0 = vor.u32 %v5405_v60, %v5402_v35 }
 0x4b8   :  { %v10619_v45 = vrot.slane %v10435_v42, %v5715_v43 }
 0x4b9   :  { %v5577_v21 = vsel %vm2512_vm7, %v5572_v24, %v5576_v33  ;;  %v5407_v11 = vsel %vm2040_vm5, %v5397_v36, %v5406_v0 }
 0x4ba   :  { %7095 = vmatmul.mubr.msk.bf16.vlgmr.msra.gmra.mxu0 %vm5108_vm12, %v10519_v26  ;;  %v7297_v26 = vld [vmem:[%s10712_s5 + $0x18] sm:$0xff]  }
 0x4bb   :  { %7098 = vmatprep.mubr.msk.bf16.mxu0 %vm5108_vm12, %v5380_v38  ;;  %7119 = vmatmul.mubr.msk.bf16.gmra.mxu1 %vm5108_vm12, %v5569_v29 }
 0x4bc   :  { %7122 = vmatprep.mubr.msk.bf16.mxu1 %vm5108_vm12, %v5573_v54  ;;  %7156 = vmatpush3.bf16.msra.mxu1 %v7297_v26 }
 0x4bd   :  { %7157 = vmatprep.subr.bf16.mxu1 %v11007_v56 }
 0x4c0   :  { %7158 = vmatpush3.bf16.msra.mxu1 %v7298_v4 }
 0x4c1   :  { %7159 = vmatprep.subr.bf16.mxu1 %v11007_v56 }
 0x4c2   :  { %7099 = vmatmul.mubr.msk.bf16.gmra.mxu0 %vm5108_vm12, %v5389_v52 }
 0x4c3   :  { %7102 = vmatprep.mubr.msk.bf16.mxu0 %vm5108_vm12, %v5398_v7  ;;  %7123 = vmatmul.mubr.msk.bf16.gmra.mxu1 %vm5108_vm12, %v5577_v21  ;;  %v5731_v7 = vsub.s32 7, %v11011_v19 }
 0x4c4   :  { %7163 = vmatprep.mubr.msk.bf16.mxu1 %vm7310_vm10, %v11007_v56  ;;  %7160 = vmatpush3.bf16.msra.mxu1 %v7299_v6 }
 0x4c5   :  { %7161 = vmatprep.subr.bf16.mxu1 %v11007_v56 }
 0x4ca   :  { %7103 = vmatmul.mubr.msk.bf16.gmra.mxu0 %vm5108_vm12, %v5407_v11 }
 0x4cb   :  { %7150 = vmatprep.mubr.msk.f32.mxu0 %vm7310_vm10, %v11007_v56 }
 0x54a   :  { %v10588_v17 = vpop.f32.mrf.mxu1 }
 0x54c   :  { %v10590_v62 = vpop.f32.mrf.mxu1 }
 0x54e   :  { %v10592_v32 = vpop.f32.mrf.mxu1 }
 0x550   :  { %v10596_v20 = vpop.f32.mrf.mxu1 }
 0x555   :  { %v10594_v37 = vpop.f32.mrf.mxu0 }
 0x557   :  { %v10598_v61 = vpop.f32.mrf.mxu0 }
 0x559   :  { %v10600_v59 = vpop.f32.mrf.mxu0 }
 0x55b   :  { %v7080_v8 = vpop.f32.mrf.mxu1  ;;  %v10602_v48 = vpop.f32.mrf.mxu0 }
 0x55d   :  { %v5300_v18 = vpop.f32.mrf.mxu1 }
 0x55f   :  { %v7081_v3 = vpop.f32.mrf.mxu1 }
 0x561   :  { %v5303_v38 = vpop.f32.mrf.mxu1 }
 0x566   :  { %v7060_v1 = vpop.f32.mrf.mxu0 }
 0x567   :  { %v5309_v54 = vadd.f32 %v7080_v8, %v7060_v1  ;;  %v10623_v1 = vrot.slane %v10435_v42, %v5731_v7 }
 0x568   :  { %v5177_v25 = vpop.f32.mrf.mxu0 }
 0x569   :  { %v5301_v8 = vadd.f32 %v5300_v18, %v5177_v25  ;;  %v5293_v25 = vadd.f32 %v10588_v17, %v10594_v37  ;;  %v5285_v17 = vadd.f32 %v10590_v62, %v10598_v61 }
 0x56a   :  { %v7061_v63 = vpop.f32.mrf.mxu0 }
 0x56b   :  { %v7084_v40 = vpop.f32.mrf.mxu1  ;;  %v5312_v60 = vadd.f32 %v7081_v3, %v7061_v63 }
 0x56c   :  { %v5180_v51 = vpop.f32.mrf.mxu0 }
 0x56d   :  { %v5316_v44 = vpop.f32.mrf.mxu1  ;;  %v5304_v6 = vadd.f32 %v5303_v38, %v5180_v51  ;;  %v5296_v38 = vadd.f32 %v10592_v32, %v10600_v59  ;;  %v5288_v59 = vadd.f32 %v10596_v20, %v10602_v48 }
 0x56f   :  { %v7085_v28 = vpop.f32.mrf.mxu1 }
 0x571   :  { %v5319_v13 = vpop.f32.mrf.mxu1 }
 0x572   :  { %v7064_v9 = vpop.f32.mrf.mxu0 }
 0x573   :  { %v10604_v49 = vpop.f32.mrf.mxu1  ;;  %v5325_v53 = vadd.f32 %v7084_v40, %v7064_v9 }
 0x574   :  { %v5193_v2 = vpop.f32.mrf.mxu0 }
 0x575   :  { %v10606_v22 = vpop.f32.mrf.mxu1  ;;  %v5317_v36 = vadd.f32 %v5316_v44, %v5193_v2 }
 0x576   :  { %v7065_v41 = vpop.f32.mrf.mxu0 }
 0x577   :  { %v10608_v47 = vpop.f32.mrf.mxu1  ;;  %v5328_v12 = vadd.f32 %v7085_v28, %v7065_v41 }
 0x578   :  { %v5196_v5 = vpop.f32.mrf.mxu0 }
 0x579   :  { %v10610_v29 = vpop.f32.mrf.mxu1  ;;  %v5320_v11 = vadd.f32 %v5319_v13, %v5196_v5 }
 0x57a   :  { %v7096_v52 = vpop.f32.mrf.mxu0 }
 0x57b   :  { %v7120_v10 = vpop.f32.mrf.mxu1 }
 0x57c   :  { %v10612_v16 = vpop.f32.mrf.mxu0 }
 0x57d   :  { %v5670_v46 = vpop.f32.mrf.mxu1 }
 0x57e   :  { %v7097_v15 = vpop.f32.mrf.mxu0 }
 0x57f   :  { %v7121_v39 = vpop.f32.mrf.mxu1 }
 0x580   :  { %v10614_v23 = vpop.f32.mrf.mxu0 }
 0x581   :  { %v5673_v55 = vpop.f32.mrf.mxu1 }
 0x582   :  { %v7100_v14 = vpop.f32.mrf.mxu0 }
 0x583   :  { %v7124_v34 = vpop.f32.mrf.mxu1  ;;  %v5537_v40 = vadd.f32 %v7100_v14, %v5309_v54 }
 0x584   :  { %v5500_v58 = vpop.f32.mrf.mxu0 }
 0x585   :  { %v5686_v57 = vpop.f32.mrf.mxu1  ;;  %v5707_v51 = vadd.f32 %v7120_v10, %v5537_v40  ;;  %v5535_v14 = vadd.f32 %v5500_v58, %v5301_v8  ;;  %v5533_v10 = vadd.f32 %v7096_v52, %v5293_v25 }
 0x586   :  { %v7101_v50 = vpop.f32.mrf.mxu0 }
 0x587   :  { %v7125_v33 = vpop.f32.mrf.mxu1  ;;  %v5538_v26 = vadd.f32 %v7101_v50, %v5312_v60  ;;  %v5723_v58 = vmul.f32 %v10619_v45, %v5707_v51  ;;  %v5705_v43 = vadd.f32 %v5670_v46, %v5535_v14  ;;  %v5703_v52 = vadd.f32 %v10604_v49, %v5533_v10 }
 0x588   :  { %v5503_v31 = vpop.f32.mrf.mxu0  ;;  %v5531_v46 = vadd.f32 %v10612_v16, %v5285_v17 }
 0x589   :  { %v5689_v2 = vpop.f32.mrf.mxu1  ;;  %v5708_v41 = vadd.f32 %v7121_v39, %v5538_v26  ;;  %v5536_v13 = vadd.f32 %v5503_v31, %v5304_v6  ;;  %v5534_v39 = vadd.f32 %v7097_v15, %v5296_v38  ;;  %v5532_v15 = vadd.f32 %v10614_v23, %v5288_v59  ;;  %v11013_v38 = vld [vmem:[#allocation7_spill] sm:$0xff] }
 0x58a   :  { %v7104_v30 = vpop.f32.mrf.mxu0  ;;  %v5739_v62 = vadd.f32 %v10623_v1, %v5723_v58  ;;  %v5721_v61 = vmul.f32 %v10619_v45, %v5705_v43  ;;  %v5719_v49 = vmul.f32 %v10619_v45, %v5703_v52  ;;  %v5701_v16 = vadd.f32 %v10606_v22, %v5531_v46 }
 0x58b   :  { %v5541_v24 = vadd.f32 %v7104_v30, %v5325_v53  ;;  %v5724_v31 = vmul.f32 %v10619_v45, %v5708_v41  ;;  %v5704_v37 = vadd.f32 %v10608_v47, %v5534_v39  ;;  %v7303_v41 = vld [vmem:[%s10714_s6] sm:$0xff]  }
 0x58c   :  { %v5516_v35 = vpop.f32.mrf.mxu0  ;;  %v5737_v54 = vadd.f32 %v10623_v1, %v5721_v61 }
 0x58d   :  { %v5711_v27 = vadd.f32 %v7124_v34, %v5541_v24  ;;  %v5539_v0 = vadd.f32 %v5516_v35, %v5317_v36  ;;  %v5720_v23 = vmul.f32 %v10619_v45, %v5704_v37  ;;  %v5702_v35 = vadd.f32 %v10610_v29, %v5532_v15 }
 0x58e   :  { %v7105_v21 = vpop.f32.mrf.mxu0 }
 0x58f   :  { %v5542_v4 = vadd.f32 %v7105_v21, %v5328_v12  ;;  %v5727_v44 = vmul.f32 %v10619_v45, %v5711_v27  ;;  %v5709_v3 = vadd.f32 %v5686_v57, %v5539_v0  ;;  %v5706_v57 = vadd.f32 %v5673_v55, %v5536_v13  ;;  %v34_v13 = vld [vmem:[%s10709_s8 + $0x8] sm:$0xff] }
 0x590   :  { %v5519_v9 = vpop.f32.mrf.mxu0  ;;  %v5740_v55 = vadd.f32 %v10623_v1, %v5724_v31  ;;  %v5751_v27 = vmax.f32 %v5739_v62, 0.0  ;;  %v5736_v7 = vadd.f32 %v10623_v1, %v5720_v23  ;;  %v5718_v29 = vmul.f32 %v10619_v45, %v5702_v35 }
 0x591   :  { %v5712_v63 = vadd.f32 %v7125_v33, %v5542_v4  ;;  %v5540_v28 = vadd.f32 %v5519_v9, %v5320_v11  ;;  %v5743_v50 = vadd.f32 %v10623_v1, %v5727_v44  ;;  %v5725_v53 = vmul.f32 %v10619_v45, %v5709_v3  ;;  %v5757_v9 = vld [vmem:[%s10713_s7] sm:$0xff]  ;;  %v7301_v3 = vld [vmem:[%s10714_s6 + $0x10] ss:$0 sps:$4 sm:$0xff]  }
 0x592   :  { %v5722_v20 = vmul.f32 %v10619_v45, %v5706_v57  ;;  %v5752_v60 = vmax.f32 %v5740_v55, 0.0  ;;  %v5735_v0 = vadd.f32 %v10623_v1, %v5719_v49  ;;  %v5717_v21 = vmul.f32 %v10619_v45, %v5701_v16  ;;  %v7300_v44 = vld [vmem:[%s10712_s5] sm:$0xff]  }
 0x593   :  { %v5728_v5 = vmul.f32 %v10619_v45, %v5712_v63  ;;  %v5710_v34 = vadd.f32 %v5689_v2, %v5540_v28  ;;  %v5755_v24 = vmax.f32 %v5743_v50, 0.0  ;;  %v5741_v36 = vadd.f32 %v10623_v1, %v5725_v53  ;;  %7162 = vmatpush3.bf16.msra.mxu1 %v7300_v44  ;;  %v7302_v2 = vld [vmem:[%s10714_s6 + $0x8] sm:$0xff]  }
 0x594   :  { %v5738_v12 = vadd.f32 %v10623_v1, %v5722_v20  ;;  %v5749_v11 = vmax.f32 %v5737_v54, 0.0  ;;  %v5748_v22 = vmax.f32 %v5736_v7, 0.0  ;;  %v5734_v26 = vadd.f32 %v10623_v1, %v5718_v29 }
 0x595   :  { %v5744_v18 = vadd.f32 %v10623_v1, %v5728_v5  ;;  %v5726_v42 = vmul.f32 %v10619_v45, %v5710_v34  ;;  %v5753_v47 = vmax.f32 %v5741_v36, 0.0  ;;  %v5747_v4 = vmax.f32 %v5735_v0, 0.0  ;;  %v11012_v5 = vld [vmem:[#allocation6_spill] sm:$0xff] }
 0x596   :  { %v5750_v33 = vmax.f32 %v5738_v12, 0.0  ;;  %v5733_v6 = vadd.f32 %v10623_v1, %v5717_v21  ;;  %v5746_v40 = vmax.f32 %v5734_v26, 0.0  ;;  %v5953_v63 = vsel %vm1560_vm0, %v7301_v3, 0 }
 0x597   :  { %v5756_v30 = vmax.f32 %v5744_v18, 0.0  ;;  %v5742_v32 = vadd.f32 %v10623_v1, %v5726_v42  ;;  %v5920_v34 = vrot.slane %v34_v13, %v11012_v5  ;;  %v5925_v51 = vrot.slane %v34_v13, %v11013_v38 }
 0x598   :  { %v5745_v45 = vmax.f32 %v5733_v6, 0.0 }
 0x599   :  { %7127 = vmatpush3.msra.mxu0 %v5756_v30  ;;  %v5754_v48 = vmax.f32 %v5742_v32, 0.0  ;;  %v11015_v30 = vsub.s32 3, %v11011_v19 }
 0x59a   :  { %7128 = vmatprep.subr.mxu0 %v11007_v56 }
 0x59b   :  { %7129 = vmatpush3.msra.mxu0 %v5755_v24  ;;  %v6003_v32 = vrot.slane %v34_v13, %v11015_v30 }
 0x59c   :  { %7130 = vmatprep.subr.mxu0 %v11007_v56 }
 0x59d   :  { %7131 = vmatpush3.msra.mxu0 %v5754_v48 }
 0x59e   :  { %7132 = vmatprep.subr.mxu0 %v11007_v56 }
 0x59f   :  { %7133 = vmatpush3.msra.mxu0 %v5753_v47 }
 0x5a0   :  { %7134 = vmatprep.subr.mxu0 %v11007_v56 }
 0x5a1   :  { %7135 = vmatpush3.msra.mxu0 %v5752_v60 }
 0x5a2   :  { %7136 = vmatprep.subr.mxu0 %v11007_v56 }
 0x5a3   :  { %7137 = vmatpush3.msra.mxu0 %v5751_v27 }
 0x5a4   :  { %7138 = vmatprep.subr.mxu0 %v11007_v56 }
 0x5a5   :  { %7139 = vmatpush3.msra.mxu0 %v5750_v33 }
 0x5a6   :  { %7140 = vmatprep.subr.mxu0 %v11007_v56 }
 0x5a7   :  { %7141 = vmatpush3.msra.mxu0 %v5749_v11 }
 0x5a8   :  { %7142 = vmatprep.subr.mxu0 %v11007_v56 }
 0x5a9   :  { %7143 = vmatpush3.msra.mxu0 %v5748_v22 }
 0x5aa   :  { %7144 = vmatprep.subr.mxu0 %v11007_v56 }
 0x5ab   :  { %7145 = vmatpush3.msra.mxu0 %v5747_v4 }
 0x5ac   :  { %7146 = vmatprep.subr.mxu0 %v11007_v56 }
 0x5ad   :  { %7147 = vmatpush3.msra.mxu0 %v5746_v40 }
 0x5ae   :  { %7148 = vmatprep.subr.mxu0 %v11007_v56 }
 0x5af   :  { %7149 = vmatpush3.msra.mxu0 %v5745_v45 }
 0x5b0   :  { %7151 = vmatmul.mubr.msk.f32.vlgmr.msra.gmra.mxu0 %vm5758_vm13, %v5757_v9  ;;  %7167 = vmatprep.subr.bf16.mxu0 %v11007_v56 }
 0x5b1   :  { %7173 = vmatprep.mubr.msk.bf16.mxu0 %vm7310_vm10, %v11007_v56  ;;  %7168 = vmatpush3.bf16.msra.mxu0 %v5953_v63 }
 0x5b2   :  { %7169 = vmatprep.subr.bf16.mxu0 %v11007_v56 }
 0x5b5   :  { %7170 = vmatpush3.bf16.msra.mxu0 %v7302_v2 }
 0x5b6   :  { %7171 = vmatprep.subr.bf16.mxu0 %v11007_v56  ;;  %v11014_v56 = vld [vmem:[#allocation10_spill] sm:$0xff] }
 0x5b7   :  { %v5998_v57 = vrot.slane %v34_v13, %v11014_v56 }
 0x5b9   :  { %7172 = vmatpush3.bf16.msra.mxu0 %v7303_v41 }
 0x670   :  { %v5828_v28 = vpop.f32.mrf.mxu0 }
 0x671   :  { %v5832_v8 = vpack.c.bf16 %v5828_v28, %v5828_v28 }
 0x672   :  { %v7152_v1 = vpop.f32.mrf.mxu0 }
 0x673   :  { %7164 = vmatmul.mubr.msk.bf16.vlgmr.msra.gmra.mxu1 %vm5873_vm14, %v5832_v8 }
 0x733   :  { %v5911_v14 = vpop.f32.mrf.mxu1 }
 0x734   :  { %v5921_v50 = vmul.f32 %v5920_v34, %v5911_v14 }
 0x735   :  { %v7165_v53 = vpop.f32.mrf.mxu1 }
 0x736   :  { %v5926_v18 = vadd.f32 %v5925_v51, %v5921_v50 }
 0x737   :  { %v5914_v42 = vpop.f32.mrf.mxu1 }
 0x738   :  { %v5927_v25 = vmax.f32 %v5926_v18, 0.0 }
 0x739   :  { %v7166_v39 = vpop.f32.mrf.mxu1 }
 0x73a   :  { %v5928_v31 = vpack.c.bf16 %v5927_v25, %v5927_v25 }
 0x73c   :  { %7174 = vmatmul.mubr.msk.bf16.vlgmr.msra.gmra.mxu0 %vm3526_vm11, %v5928_v31 }
 0x7fc   :  { %v5989_v59 = vpop.f32.mrf.mxu0 }
 0x7fd   :  { %v5999_v10 = vmul.f32 %v5998_v57, %v5989_v59 }
 0x7fe   :  { %v7175_v58 = vpop.f32.mrf.mxu0 }
 0x7ff   :  { %v6004_v43 = vadd.f32 %v6003_v32, %v5999_v10 }
 0x800   :  { %v5992_v24 = vpop.f32.mrf.mxu0 }
 0x801   :  { %6005 = vst [vmem:[%s10715_s9] sm:$0xff] %v6004_v43 }
 0x802   :  { %v7176_v36 = vpop.f32.mrf.mxu0 }

</bundles_post_ra>
